<compile_context>
chip_gen: v7x
topology: tpu7x:2x2x1
jax: 0.10.0
libtpu: 0.0.40
codegen_flags: <defaults>
</compile_context>

<pallas_src>
import functools
import math

import numpy as np
import jax
import jax.numpy as jnp
from jax.experimental import pallas as pl
from jax.experimental.pallas import tpu as pltpu


# ---------------------------------------------------------------------------
# Single fused kernel: pools + eMSM_I + eMSM_T + both conv blocks + LeakyReLU.
# Runs once per batch element (grid=(b,), "parallel" -> both TCs on v7x for b>=2).
# ---------------------------------------------------------------------------
def down_block_kernel(pooled_ref, w_qkv_ref, s_ref, w_dw_ref, temp_ref, mask_ref,
                      w_ps_ref, pe_ref, w_q_ref, w_k_ref, w_v_ref, w_pt_ref, b_pt_ref,
                      w1_ref, b1_ref, w2_ref, b2_ref, out_ref, ia_ref,
                      *, num_heads_t, mxu_dtype):
    p = pooled_ref[0]                                    # (c, t, hw)  one batch element
    c, t, hw = p.shape

    def mm(a, bm):                                       # MXU matmul, f32 accumulation
        return jnp.dot(a.astype(mxu_dtype), bm.astype(mxu_dtype),
                       preferred_element_type=jnp.float32)

    # ---- fused pooling: a single pass over the tile feeds both attention branches ----
    xs = jnp.mean(p, axis=1)                             # temporal mean -> (c, hw)  (eMSM_I)
    xt = jnp.mean(p, axis=2)                             # spatial  mean -> (c, t)   (eMSM_T)

    # ---- eMSM_I: 1x1 qkv conv + depthwise 3x3 conv via in-VMEM shift-matrix matmuls ----
    qkv = mm(w_qkv_ref[...], xs)                         # (3c, hw)
    dw = w_dw_ref[:, 0:1] * mm(qkv, s_ref[0])
    for k in range(1, 9):                                # 9 taps; zero padding baked in s_ref
        dw = dw + w_dw_ref[:, k:k + 1] * mm(qkv, s_ref[k])
    q, kk, v = dw[0:c], dw[c:2 * c], dw[2 * c:3 * c]     # (c, hw) each
    qn = q * pl.reciprocal(
        jnp.maximum(jnp.sqrt(jnp.sum(q * q, axis=-1, keepdims=True)), 1e-12), approx=True)
    kn = kk * pl.reciprocal(
        jnp.maximum(jnp.sqrt(jnp.sum(kk * kk, axis=-1, keepdims=True)), 1e-12), approx=True)
    # all heads in one MXU-wide gram matrix; head separation via additive block-diag mask
    logits = jnp.einsum("cn,dn->cd", qn, kn, preferred_element_type=jnp.float32)
    logits = logits * temp_ref[...] + mask_ref[...]      # per-head temperature + -1e30 mask
    logits = logits - jnp.max(logits, axis=-1, keepdims=True)
    e = jnp.exp(logits)
    attn = e * pl.reciprocal(jnp.sum(e, axis=-1, keepdims=True), approx=True)
    o_s = jnp.einsum("cd,dn->cn", attn, v, preferred_element_type=jnp.float32)
    attn_s = mm(w_ps_ref[...], o_s)                      # project_out -> (c, hw)

    # ---- eMSM_T: positional encoding + temporal MHA + projection ----------------------
    # TODO(synk): PositionalEncoding dropout(p=0.1) / project_out Dropout(0.0) omitted (eval).
    xt = xt + pe_ref[...]                                # (c, t)
    qt = mm(w_q_ref[...], xt)
    kt = mm(w_k_ref[...], xt)
    vt = mm(w_v_ref[...], xt)
    d = c // num_heads_t
    scale = float(d) ** -0.5
    heads = []
    for hh in range(num_heads_t):                        # only 2 heads -> tiny static loop
        qh, kh, vh = (a[hh * d:(hh + 1) * d] for a in (qt, kt, vt))
        sim = jnp.einsum("di,dj->ij", qh, kh, preferred_element_type=jnp.float32) * scale
        sim = sim - jnp.max(sim, axis=-1, keepdims=True)
        es = jnp.exp(sim)
        at = es * pl.reciprocal(jnp.sum(es, axis=-1, keepdims=True), approx=True)
        heads.append(jnp.einsum("ij,dj->di", at, vh, preferred_element_type=jnp.float32))
    attn_t = mm(w_pt_ref[...], jnp.concatenate(heads, axis=0)) + b_pt_ref[...]   # (c, t)

    # ---- residual/attention fusion + both 1x1x1 conv blocks + LeakyReLU ---------------
    # inputs_attn = pooled + attn_t (bcast over hw) + attn_s (bcast over t), assembled
    # directly into a lane-dense (c, t*hw) VMEM slab -> each conv block is one wide matmul.
    for tt in range(t):
        ia_ref[:, tt * hw:(tt + 1) * hw] = p[:, tt, :] + attn_t[:, tt:tt + 1] + attn_s
    ia = ia_ref[...]                                     # (c, t*hw)
    h1 = mm(w1_ref[...], ia) + b1_ref[...]               # block-1: convS+convT+identity folded
    y1 = jnp.maximum(h1, 0.01 * h1)                      # LeakyReLU(0.01)
    h2 = mm(w2_ref[...], y1) + b2_ref[...]               # block-2: convS+convT+shortcut folded
    out_ref[0] = jnp.maximum(h2, 0.01 * h2)              # LeakyReLU(0.01), lane-dense store


# ---------------------------------------------------------------------------
# Host-side helpers
# ---------------------------------------------------------------------------
def _shift_matrices(h2, w2):
    """9 (hw, hw) 0/1 matrices: (qkv @ S_k)[c, n] = qkv[c, neighbor_k(n)] (zero padded)."""
    hw = h2 * w2
    n = np.arange(hw)
    y, x = n // w2, n % w2
    mats = np.zeros((9, hw, hw), np.float32)
    k = 0
    for dy in (-1, 0, 1):            # tap order matches Conv2d weight flattening (ky*3+kx)
        for dx in (-1, 0, 1):
            ys, xs = y + dy, x + dx
            valid = (ys >= 0) & (ys < h2) & (xs >= 0) & (xs < w2)
            mats[k, (ys * w2 + xs)[valid], n[valid]] = 1.0
            k += 1
    return jnp.asarray(mats)


def down_forward(x, params, *, num_heads_s=8, num_heads_t=2, use_bf16_mxu=False):
    b, c, t, h, w = x.shape
    assert c % num_heads_s == 0 and c % num_heads_t == 0
    h2, w2 = h // 2, w // 2
    hw = h2 * w2
    c_out = params["w2c"].shape[0]
    f32 = jnp.float32
    x = x.astype(f32)

    # --- nn.MaxPool3d((1,2,2),(1,2,2)) -------------------------------------------------
    # TODO(synk): kept as a single XLA reduce pass (the 2x2 lane-window split does not map
    #             cleanly onto Mosaic's (8,128) vreg layout); everything downstream is Pallas.
    xp = x[:, :, :, :h2 * 2, :w2 * 2].reshape(b, c, t, h2, 2, w2, 2)
    pooled = jnp.max(xp, axis=(4, 6)).reshape(b, c, t, hw)

    s_taps = _shift_matrices(h2, w2)                     # (9, hw, hw), built once per shape

    kernel = functools.partial(
        down_block_kernel, num_heads_t=num_heads_t,
        mxu_dtype=jnp.bfloat16 if use_bf16_mxu else jnp.float32)

    operands = (pooled, params["w_qkv"], s_taps, params["w_dw"], params["temp_row"],
                params["head_mask"], params["w_proj_s"], params["pe_ct"],
                params["w_q"], params["w_k"], params["w_v"],
                params["w_proj_t"], params["b_proj_t"],
                params["w1c"], params["b1c"], params["w2c"], params["b2c"])

    def _resident(a):                                    # weights: fetched once, stay in VMEM
        return pl.BlockSpec(a.shape, lambda i, _nd=a.ndim: (0,) * _nd)

    in_specs = [pl.BlockSpec((1, c, t, hw), lambda i: (i, 0, 0, 0))]
    in_specs += [_resident(a) for a in operands[1:]]

    flops = int(2 * b * ((3 * c) * c * hw + 9 * (3 * c) * hw * hw + 3 * c * c * hw
                         + 4 * c * c * t + 2 * (c // num_heads_t) * t * t * num_heads_t
                         + c * c * t * hw + c_out * c * t * hw))
    bytes_acc = int(4 * (sum(int(np.prod(a.shape)) for a in operands) + b * c_out * t * hw))
    cost = pl.CostEstimate(flops=flops,
                           transcendentals=int(b * (c * c + num_heads_t * t * t)),
                           bytes_accessed=bytes_acc)

    # NOTE(v7x): at large h*w, tile the hw axis with an extra "parallel" grid dim and set
    # pltpu.CompilerParams(vmem_limit_bytes=...) to stay inside the 64 MiB VMEM budget.
    out = pl.pallas_call(
        kernel,
        out_shape=jax.ShapeDtypeStruct((b, c_out, t * hw), f32),
        grid=(b,),
        in_specs=in_specs,
        out_specs=pl.BlockSpec((1, c_out, t * hw), lambda i: (i, 0, 0)),
        scratch_shapes=[pltpu.VMEM((c, t * hw), f32)],
        compiler_params=pltpu.CompilerParams(dimension_semantics=("parallel",)),
        cost_estimate=cost,
    )(*operands)

    return out.reshape(b, c_out, t, h2, w2)


# ---------------------------------------------------------------------------
# Deterministic parameters (shapes follow the PyTorch __init__), plus the exact
# algebraic folding of the point-wise convs / residuals into single matmuls.
# ---------------------------------------------------------------------------
def init_params(key, c_in, c_out, t, num_heads_s=8, num_heads_t=2):
    assert c_in % num_heads_s == 0 and c_in % num_heads_t == 0 and c_in % 2 == 0
    ks = jax.random.split(key, 17)
    rn = lambda k, shape, s=0.1: s * jax.random.normal(k, shape, dtype=jnp.float32)

    # ---- Block 1: LITFormerBlock(c_in, c_in, attn_s + attn_t, kernel_size=1) ----
    # eMSM_I
    w_qkv = rn(ks[0], (3 * c_in, c_in))                            # Conv2d(c,3c,1,bias=False)
    w_dw = rn(ks[1], (3 * c_in, 1, 3, 3)).reshape(3 * c_in, 9)     # depthwise 3x3, groups=3c
    w_proj_s = rn(ks[2], (c_in, c_in))                             # Conv2d(c,c,1,bias=False)
    temperature = jnp.ones((num_heads_s,), jnp.float32)            # nn.Parameter(ones(h,1,1))
    temp_row = jnp.repeat(temperature, c_in // num_heads_s).reshape(c_in, 1)
    head_id = np.arange(c_in) // (c_in // num_heads_s)
    head_mask = jnp.asarray(
        np.where(head_id[:, None] == head_id[None, :], 0.0, -1e30), dtype=jnp.float32)
    # eMSM_T
    w_q = rn(ks[3], (c_in, c_in))
    w_k = rn(ks[4], (c_in, c_in))
    w_v = rn(ks[5], (c_in, c_in))
    w_proj_t = rn(ks[6], (c_in, c_in))
    b_proj_t = rn(ks[7], (c_in,)).reshape(c_in, 1)
    pos = jnp.arange(t, dtype=jnp.float32)[:, None]                # sinusoidal PE, first t rows
    div = jnp.exp(jnp.arange(0, c_in, 2, dtype=jnp.float32) * (-math.log(10000.0) / c_in))
    pe = jnp.zeros((t, c_in), jnp.float32)
    pe = pe.at[:, 0::2].set(jnp.sin(pos * div))
    pe = pe.at[:, 1::2].set(jnp.cos(pos * div))
    pe_ct = pe.T                                                   # (c, t)
    # Block-1 convs: DoubleConv uses the default kernel_size=1 -> both Conv3d are 1x1x1.
    w_s1 = rn(ks[8], (c_in, c_in));  b_s1 = rn(ks[9], (c_in,))     # conv_1x3x3 (here 1x1x1)
    w_t1 = rn(ks[10], (c_in, c_in)); b_t1 = rn(ks[11], (c_in,))    # conv_3x1x1 (here 1x1x1)

    # ---- Block 2: LITFormerBlock(c_in, c_out, no attention, kernel_size=1) ----
    w_s2 = rn(ks[12], (c_out, c_in)); b_s2 = rn(ks[13], (c_out,))
    w_t2 = rn(ks[14], (c_out, c_in)); b_t2 = rn(ks[15], (c_out,))
    w_sc = (rn(ks[16], (c_out, c_in)) if c_in != c_out             # 1x1x1 shortcut, bias=False
            else jnp.eye(c_in, dtype=jnp.float32))                 # identity shortcut

    # Exact folding (all convs are point-wise, res=True):
    #   block1: convS(ia)+convT(ia)+ia           = (Ws1+Wt1+I)   @ ia + (bs1+bt1)
    #   block2: convS(y1)+convT(y1)+shortcut(y1) = (Ws2+Wt2+Wsc) @ y1 + (bs2+bt2)
    eye = jnp.eye(c_in, dtype=jnp.float32)
    w1c = w_s1 + w_t1 + eye
    b1c = (b_s1 + b_t1).reshape(c_in, 1)
    w2c = w_s2 + w_t2 + w_sc
    b2c = (b_s2 + b_t2).reshape(c_out, 1)

    return dict(w_qkv=w_qkv, w_dw=w_dw, w_proj_s=w_proj_s,
                temp_row=temp_row, head_mask=head_mask,
                w_q=w_q, w_k=w_k, w_v=w_v, w_proj_t=w_proj_t, b_proj_t=b_proj_t,
                pe_ct=pe_ct, w1c=w1c, b1c=b1c, w2c=w2c, b2c=b2c)


if __name__ == "__main__":
    b, c_in, c_out, t, h, w = 2, 16, 32, 4, 16, 16
    x = jax.random.normal(jax.random.PRNGKey(0), (b, c_in, t, h, w), dtype=jnp.float32)
    params = init_params(jax.random.PRNGKey(1), c_in, c_out, t,
                         num_heads_s=8, num_heads_t=2)

    out = down_forward(x, params, num_heads_s=8, num_heads_t=2, use_bf16_mxu=False)
    out = jax.block_until_ready(out)

    assert out.shape == (b, c_out, t, h // 2, w // 2), out.shape
    assert bool(jnp.all(jnp.isfinite(out)))
    print("KERNEL_OK")
</pallas_src>

<mosaic_0001>
module attributes {stable_mosaic.version = 11 : i64} {
  func.func @down_block_kernel(%arg0: i32, %arg1: memref<1x16x4x64xf32, #tpu.memory_space<vmem>>, %arg2: memref<48x16xf32, #tpu.memory_space<vmem>>, %arg3: memref<9x64x64xf32, #tpu.memory_space<vmem>>, %arg4: memref<48x9xf32, #tpu.memory_space<vmem>>, %arg5: memref<16x1xf32, #tpu.memory_space<vmem>>, %arg6: memref<16x16xf32, #tpu.memory_space<vmem>>, %arg7: memref<16x16xf32, #tpu.memory_space<vmem>>, %arg8: memref<16x4xf32, #tpu.memory_space<vmem>>, %arg9: memref<16x16xf32, #tpu.memory_space<vmem>>, %arg10: memref<16x16xf32, #tpu.memory_space<vmem>>, %arg11: memref<16x16xf32, #tpu.memory_space<vmem>>, %arg12: memref<16x16xf32, #tpu.memory_space<vmem>>, %arg13: memref<16x1xf32, #tpu.memory_space<vmem>>, %arg14: memref<16x16xf32, #tpu.memory_space<vmem>>, %arg15: memref<16x1xf32, #tpu.memory_space<vmem>>, %arg16: memref<32x16xf32, #tpu.memory_space<vmem>>, %arg17: memref<32x1xf32, #tpu.memory_space<vmem>>, %arg18: memref<1x32x256xf32, #tpu.memory_space<vmem>>, %arg19: memref<16x256xf32, #tpu.memory_space<vmem>>) attributes {dimension_semantics = [#tpu.dimension_semantics<parallel>], iteration_bounds = array<i64: 2>, scalar_prefetch = 0 : i64, scratch_operands = 1 : i64, tpu.core_type = #tpu.core_type<tc>, window_params = [{transform_indices = @transform_0, window_bounds = array<i64: 1, 16, 4, 64>}, {pipeline_mode = #tpu.pipeline_mode<synchronous>, transform_indices = @transform_1, window_bounds = array<i64: 48, 16>}, {pipeline_mode = #tpu.pipeline_mode<synchronous>, transform_indices = @transform_2, window_bounds = array<i64: 9, 64, 64>}, {pipeline_mode = #tpu.pipeline_mode<synchronous>, transform_indices = @transform_3, window_bounds = array<i64: 48, 9>}, {pipeline_mode = #tpu.pipeline_mode<synchronous>, transform_indices = @transform_4, window_bounds = array<i64: 16, 1>}, {pipeline_mode = #tpu.pipeline_mode<synchronous>, transform_indices = @transform_5, window_bounds = array<i64: 16, 16>}, {pipeline_mode = #tpu.pipeline_mode<synchronous>, transform_indices = @transform_6, window_bounds = array<i64: 16, 16>}, {pipeline_mode = #tpu.pipeline_mode<synchronous>, transform_indices = @transform_7, window_bounds = array<i64: 16, 4>}, {pipeline_mode = #tpu.pipeline_mode<synchronous>, transform_indices = @transform_8, window_bounds = array<i64: 16, 16>}, {pipeline_mode = #tpu.pipeline_mode<synchronous>, transform_indices = @transform_9, window_bounds = array<i64: 16, 16>}, {pipeline_mode = #tpu.pipeline_mode<synchronous>, transform_indices = @transform_10, window_bounds = array<i64: 16, 16>}, {pipeline_mode = #tpu.pipeline_mode<synchronous>, transform_indices = @transform_11, window_bounds = array<i64: 16, 16>}, {pipeline_mode = #tpu.pipeline_mode<synchronous>, transform_indices = @transform_12, window_bounds = array<i64: 16, 1>}, {pipeline_mode = #tpu.pipeline_mode<synchronous>, transform_indices = @transform_13, window_bounds = array<i64: 16, 16>}, {pipeline_mode = #tpu.pipeline_mode<synchronous>, transform_indices = @transform_14, window_bounds = array<i64: 16, 1>}, {pipeline_mode = #tpu.pipeline_mode<synchronous>, transform_indices = @transform_15, window_bounds = array<i64: 32, 16>}, {pipeline_mode = #tpu.pipeline_mode<synchronous>, transform_indices = @transform_16, window_bounds = array<i64: 32, 1>}, {transform_indices = @transform_17, window_bounds = array<i64: 1, 32, 256>}]} {
    %c0 = arith.constant 0 : index
    %c0_0 = arith.constant 0 : index
    %c0_1 = arith.constant 0 : index
    %c0_2 = arith.constant 0 : index
    %0 = vector.load %arg1[%c0, %c0_0, %c0_1, %c0_2] : memref<1x16x4x64xf32, #tpu.memory_space<vmem>>, vector<1x16x4x64xf32>
    %1 = vector.shape_cast %0 : vector<1x16x4x64xf32> to vector<16x4x64xf32>
    %cst = arith.constant dense<0.000000e+00> : vector<16x64xf32>
    %2 = vector.multi_reduction <add>, %1, %cst [1] : vector<16x4x64xf32> to vector<16x64xf32>
    %cst_3 = arith.constant 4.000000e+00 : f32
    %3 = vector.broadcast %cst_3 : f32 to vector<16x64xf32>
    %4 = arith.divf %2, %3 : vector<16x64xf32>
    %cst_4 = arith.constant dense<0.000000e+00> : vector<16x4xf32>
    %5 = vector.multi_reduction <add>, %1, %cst_4 [2] : vector<16x4x64xf32> to vector<16x4xf32>
    %cst_5 = arith.constant 6.400000e+01 : f32
    %6 = vector.broadcast %cst_5 : f32 to vector<16x4xf32>
    %7 = arith.divf %5, %6 : vector<16x4xf32>
    %c0_6 = arith.constant 0 : index
    %c0_7 = arith.constant 0 : index
    %8 = vector.load %arg2[%c0_6, %c0_7] : memref<48x16xf32, #tpu.memory_space<vmem>>, vector<48x16xf32>
    %cst_8 = arith.constant dense<0.000000e+00> : vector<48x64xf32>
    %9 = tpu.matmul %8, %4, %cst_8 {dimension_numbers = #tpu.dot_dimension_numbers<[1], [0], [0], [1], [0, 0, 1, 1], [], []>} : vector<48x16xf32>, vector<16x64xf32>, vector<48x64xf32> -> vector<48x64xf32>
    %c0_9 = arith.constant 0 : index
    %c0_10 = arith.constant 0 : index
    %10 = vector.load %arg4[%c0_9, %c0_10] : memref<48x9xf32, #tpu.memory_space<vmem>>, vector<48x1xf32>
    %c0_11 = arith.constant 0 : index
    %c0_12 = arith.constant 0 : index
    %c0_13 = arith.constant 0 : index
    %11 = vector.load %arg3[%c0_11, %c0_12, %c0_13] : memref<9x64x64xf32, #tpu.memory_space<vmem>>, vector<1x64x64xf32>
    %12 = vector.shape_cast %11 : vector<1x64x64xf32> to vector<64x64xf32>
    %cst_14 = arith.constant dense<0.000000e+00> : vector<48x64xf32>
    %13 = tpu.matmul %9, %12, %cst_14 {dimension_numbers = #tpu.dot_dimension_numbers<[1], [0], [0], [1], [0, 0, 1, 1], [], []>} : vector<48x64xf32>, vector<64x64xf32>, vector<48x64xf32> -> vector<48x64xf32>
    %14 = vector.broadcast %10 : vector<48x1xf32> to vector<48x64xf32>
    %15 = arith.mulf %14, %13 : vector<48x64xf32>
    %c0_15 = arith.constant 0 : index
    %c1 = arith.constant 1 : index
    %16 = vector.load %arg4[%c0_15, %c1] : memref<48x9xf32, #tpu.memory_space<vmem>>, vector<48x1xf32>
    %c1_16 = arith.constant 1 : index
    %c0_17 = arith.constant 0 : index
    %c0_18 = arith.constant 0 : index
    %17 = vector.load %arg3[%c1_16, %c0_17, %c0_18] : memref<9x64x64xf32, #tpu.memory_space<vmem>>, vector<1x64x64xf32>
    %18 = vector.shape_cast %17 : vector<1x64x64xf32> to vector<64x64xf32>
    %cst_19 = arith.constant dense<0.000000e+00> : vector<48x64xf32>
    %19 = tpu.matmul %9, %18, %cst_19 {dimension_numbers = #tpu.dot_dimension_numbers<[1], [0], [0], [1], [0, 0, 1, 1], [], []>} : vector<48x64xf32>, vector<64x64xf32>, vector<48x64xf32> -> vector<48x64xf32>
    %20 = vector.broadcast %16 : vector<48x1xf32> to vector<48x64xf32>
    %21 = arith.mulf %20, %19 : vector<48x64xf32>
    %22 = arith.addf %15, %21 : vector<48x64xf32>
    %c0_20 = arith.constant 0 : index
    %c2 = arith.constant 2 : index
    %23 = vector.load %arg4[%c0_20, %c2] : memref<48x9xf32, #tpu.memory_space<vmem>>, vector<48x1xf32>
    %c2_21 = arith.constant 2 : index
    %c0_22 = arith.constant 0 : index
    %c0_23 = arith.constant 0 : index
    %24 = vector.load %arg3[%c2_21, %c0_22, %c0_23] : memref<9x64x64xf32, #tpu.memory_space<vmem>>, vector<1x64x64xf32>
    %25 = vector.shape_cast %24 : vector<1x64x64xf32> to vector<64x64xf32>
    %cst_24 = arith.constant dense<0.000000e+00> : vector<48x64xf32>
    %26 = tpu.matmul %9, %25, %cst_24 {dimension_numbers = #tpu.dot_dimension_numbers<[1], [0], [0], [1], [0, 0, 1, 1], [], []>} : vector<48x64xf32>, vector<64x64xf32>, vector<48x64xf32> -> vector<48x64xf32>
    %27 = vector.broadcast %23 : vector<48x1xf32> to vector<48x64xf32>
    %28 = arith.mulf %27, %26 : vector<48x64xf32>
    %29 = arith.addf %22, %28 : vector<48x64xf32>
    %c0_25 = arith.constant 0 : index
    %c3 = arith.constant 3 : index
    %30 = vector.load %arg4[%c0_25, %c3] : memref<48x9xf32, #tpu.memory_space<vmem>>, vector<48x1xf32>
    %c3_26 = arith.constant 3 : index
    %c0_27 = arith.constant 0 : index
    %c0_28 = arith.constant 0 : index
    %31 = vector.load %arg3[%c3_26, %c0_27, %c0_28] : memref<9x64x64xf32, #tpu.memory_space<vmem>>, vector<1x64x64xf32>
    %32 = vector.shape_cast %31 : vector<1x64x64xf32> to vector<64x64xf32>
    %cst_29 = arith.constant dense<0.000000e+00> : vector<48x64xf32>
    %33 = tpu.matmul %9, %32, %cst_29 {dimension_numbers = #tpu.dot_dimension_numbers<[1], [0], [0], [1], [0, 0, 1, 1], [], []>} : vector<48x64xf32>, vector<64x64xf32>, vector<48x64xf32> -> vector<48x64xf32>
    %34 = vector.broadcast %30 : vector<48x1xf32> to vector<48x64xf32>
    %35 = arith.mulf %34, %33 : vector<48x64xf32>
    %36 = arith.addf %29, %35 : vector<48x64xf32>
    %c0_30 = arith.constant 0 : index
    %c4 = arith.constant 4 : index
    %37 = vector.load %arg4[%c0_30, %c4] : memref<48x9xf32, #tpu.memory_space<vmem>>, vector<48x1xf32>
    %c4_31 = arith.constant 4 : index
    %c0_32 = arith.constant 0 : index
    %c0_33 = arith.constant 0 : index
    %38 = vector.load %arg3[%c4_31, %c0_32, %c0_33] : memref<9x64x64xf32, #tpu.memory_space<vmem>>, vector<1x64x64xf32>
    %39 = vector.shape_cast %38 : vector<1x64x64xf32> to vector<64x64xf32>
    %cst_34 = arith.constant dense<0.000000e+00> : vector<48x64xf32>
    %40 = tpu.matmul %9, %39, %cst_34 {dimension_numbers = #tpu.dot_dimension_numbers<[1], [0], [0], [1], [0, 0, 1, 1], [], []>} : vector<48x64xf32>, vector<64x64xf32>, vector<48x64xf32> -> vector<48x64xf32>
    %41 = vector.broadcast %37 : vector<48x1xf32> to vector<48x64xf32>
    %42 = arith.mulf %41, %40 : vector<48x64xf32>
    %43 = arith.addf %36, %42 : vector<48x64xf32>
    %c0_35 = arith.constant 0 : index
    %c5 = arith.constant 5 : index
    %44 = vector.load %arg4[%c0_35, %c5] : memref<48x9xf32, #tpu.memory_space<vmem>>, vector<48x1xf32>
    %c5_36 = arith.constant 5 : index
    %c0_37 = arith.constant 0 : index
    %c0_38 = arith.constant 0 : index
    %45 = vector.load %arg3[%c5_36, %c0_37, %c0_38] : memref<9x64x64xf32, #tpu.memory_space<vmem>>, vector<1x64x64xf32>
    %46 = vector.shape_cast %45 : vector<1x64x64xf32> to vector<64x64xf32>
    %cst_39 = arith.constant dense<0.000000e+00> : vector<48x64xf32>
    %47 = tpu.matmul %9, %46, %cst_39 {dimension_numbers = #tpu.dot_dimension_numbers<[1], [0], [0], [1], [0, 0, 1, 1], [], []>} : vector<48x64xf32>, vector<64x64xf32>, vector<48x64xf32> -> vector<48x64xf32>
    %48 = vector.broadcast %44 : vector<48x1xf32> to vector<48x64xf32>
    %49 = arith.mulf %48, %47 : vector<48x64xf32>
    %50 = arith.addf %43, %49 : vector<48x64xf32>
    %c0_40 = arith.constant 0 : index
    %c6 = arith.constant 6 : index
    %51 = vector.load %arg4[%c0_40, %c6] : memref<48x9xf32, #tpu.memory_space<vmem>>, vector<48x1xf32>
    %c6_41 = arith.constant 6 : index
    %c0_42 = arith.constant 0 : index
    %c0_43 = arith.constant 0 : index
    %52 = vector.load %arg3[%c6_41, %c0_42, %c0_43] : memref<9x64x64xf32, #tpu.memory_space<vmem>>, vector<1x64x64xf32>
    %53 = vector.shape_cast %52 : vector<1x64x64xf32> to vector<64x64xf32>
    %cst_44 = arith.constant dense<0.000000e+00> : vector<48x64xf32>
    %54 = tpu.matmul %9, %53, %cst_44 {dimension_numbers = #tpu.dot_dimension_numbers<[1], [0], [0], [1], [0, 0, 1, 1], [], []>} : vector<48x64xf32>, vector<64x64xf32>, vector<48x64xf32> -> vector<48x64xf32>
    %55 = vector.broadcast %51 : vector<48x1xf32> to vector<48x64xf32>
    %56 = arith.mulf %55, %54 : vector<48x64xf32>
    %57 = arith.addf %50, %56 : vector<48x64xf32>
    %c0_45 = arith.constant 0 : index
    %c7 = arith.constant 7 : index
    %58 = vector.load %arg4[%c0_45, %c7] : memref<48x9xf32, #tpu.memory_space<vmem>>, vector<48x1xf32>
    %c7_46 = arith.constant 7 : index
    %c0_47 = arith.constant 0 : index
    %c0_48 = arith.constant 0 : index
    %59 = vector.load %arg3[%c7_46, %c0_47, %c0_48] : memref<9x64x64xf32, #tpu.memory_space<vmem>>, vector<1x64x64xf32>
    %60 = vector.shape_cast %59 : vector<1x64x64xf32> to vector<64x64xf32>
    %cst_49 = arith.constant dense<0.000000e+00> : vector<48x64xf32>
    %61 = tpu.matmul %9, %60, %cst_49 {dimension_numbers = #tpu.dot_dimension_numbers<[1], [0], [0], [1], [0, 0, 1, 1], [], []>} : vector<48x64xf32>, vector<64x64xf32>, vector<48x64xf32> -> vector<48x64xf32>
    %62 = vector.broadcast %58 : vector<48x1xf32> to vector<48x64xf32>
    %63 = arith.mulf %62, %61 : vector<48x64xf32>
    %64 = arith.addf %57, %63 : vector<48x64xf32>
    %c0_50 = arith.constant 0 : index
    %c8 = arith.constant 8 : index
    %65 = vector.load %arg4[%c0_50, %c8] : memref<48x9xf32, #tpu.memory_space<vmem>>, vector<48x1xf32>
    %c8_51 = arith.constant 8 : index
    %c0_52 = arith.constant 0 : index
    %c0_53 = arith.constant 0 : index
    %66 = vector.load %arg3[%c8_51, %c0_52, %c0_53] : memref<9x64x64xf32, #tpu.memory_space<vmem>>, vector<1x64x64xf32>
    %67 = vector.shape_cast %66 : vector<1x64x64xf32> to vector<64x64xf32>
    %cst_54 = arith.constant dense<0.000000e+00> : vector<48x64xf32>
    %68 = tpu.matmul %9, %67, %cst_54 {dimension_numbers = #tpu.dot_dimension_numbers<[1], [0], [0], [1], [0, 0, 1, 1], [], []>} : vector<48x64xf32>, vector<64x64xf32>, vector<48x64xf32> -> vector<48x64xf32>
    %69 = vector.broadcast %65 : vector<48x1xf32> to vector<48x64xf32>
    %70 = arith.mulf %69, %68 : vector<48x64xf32>
    %71 = arith.addf %64, %70 : vector<48x64xf32>
    %72 = vector.extract_strided_slice %71 {offsets = [0, 0], sizes = [16, 64], strides = [1, 1]} : vector<48x64xf32> to vector<16x64xf32>
    %73 = vector.extract_strided_slice %71 {offsets = [16, 0], sizes = [16, 64], strides = [1, 1]} : vector<48x64xf32> to vector<16x64xf32>
    %74 = vector.extract_strided_slice %71 {offsets = [32, 0], sizes = [16, 64], strides = [1, 1]} : vector<48x64xf32> to vector<16x64xf32>
    %75 = arith.mulf %72, %72 : vector<16x64xf32>
    %cst_55 = arith.constant dense<0.000000e+00> : vector<16xf32>
    %76 = vector.multi_reduction <add>, %75, %cst_55 [1] : vector<16x64xf32> to vector<16xf32>
    %77 = vector.shape_cast %76 : vector<16xf32> to vector<16x1xf32>
    %78 = math.sqrt %77 : vector<16x1xf32>
    %cst_56 = arith.constant 9.99999996E-13 : f32
    %79 = vector.broadcast %cst_56 : f32 to vector<16x1xf32>
    %80 = arith.maximumf %78, %79 : vector<16x1xf32>
    %81 = tpu.reciprocal %80 {approx = true} : vector<16x1xf32> -> vector<16x1xf32>
    %82 = vector.broadcast %81 : vector<16x1xf32> to vector<16x64xf32>
    %83 = arith.mulf %72, %82 : vector<16x64xf32>
    %84 = arith.mulf %73, %73 : vector<16x64xf32>
    %cst_57 = arith.constant dense<0.000000e+00> : vector<16xf32>
    %85 = vector.multi_reduction <add>, %84, %cst_57 [1] : vector<16x64xf32> to vector<16xf32>
    %86 = vector.shape_cast %85 : vector<16xf32> to vector<16x1xf32>
    %87 = math.sqrt %86 : vector<16x1xf32>
    %cst_58 = arith.constant 9.99999996E-13 : f32
    %88 = vector.broadcast %cst_58 : f32 to vector<16x1xf32>
    %89 = arith.maximumf %87, %88 : vector<16x1xf32>
    %90 = tpu.reciprocal %89 {approx = true} : vector<16x1xf32> -> vector<16x1xf32>
    %91 = vector.broadcast %90 : vector<16x1xf32> to vector<16x64xf32>
    %92 = arith.mulf %73, %91 : vector<16x64xf32>
    "tpu.trace_start"() <{level = 10 : i32, message = "cn,dn->cd"}> : () -> ()
    %cst_59 = arith.constant dense<0.000000e+00> : vector<16x16xf32>
    %93 = tpu.matmul %83, %92, %cst_59 {dimension_numbers = #tpu.dot_dimension_numbers<[1], [1], [0], [0], [0, 0, 1, 0], [], []>} : vector<16x64xf32>, vector<16x64xf32>, vector<16x16xf32> -> vector<16x16xf32>
    "tpu.trace_stop"() : () -> ()
    %c0_60 = arith.constant 0 : index
    %c0_61 = arith.constant 0 : index
    %94 = vector.load %arg5[%c0_60, %c0_61] : memref<16x1xf32, #tpu.memory_space<vmem>>, vector<16x1xf32>
    %95 = vector.broadcast %94 : vector<16x1xf32> to vector<16x16xf32>
    %96 = arith.mulf %93, %95 : vector<16x16xf32>
    %c0_62 = arith.constant 0 : index
    %c0_63 = arith.constant 0 : index
    %97 = vector.load %arg6[%c0_62, %c0_63] : memref<16x16xf32, #tpu.memory_space<vmem>>, vector<16x16xf32>
    %98 = arith.addf %96, %97 : vector<16x16xf32>
    %cst_64 = arith.constant dense<0xFF800000> : vector<16xf32>
    %99 = vector.multi_reduction <maximumf>, %98, %cst_64 [1] : vector<16x16xf32> to vector<16xf32>
    %100 = vector.shape_cast %99 : vector<16xf32> to vector<16x1xf32>
    %101 = vector.broadcast %100 : vector<16x1xf32> to vector<16x16xf32>
    %102 = arith.subf %98, %101 : vector<16x16xf32>
    %103 = math.exp %102 : vector<16x16xf32>
    %cst_65 = arith.constant dense<0.000000e+00> : vector<16xf32>
    %104 = vector.multi_reduction <add>, %103, %cst_65 [1] : vector<16x16xf32> to vector<16xf32>
    %105 = vector.shape_cast %104 : vector<16xf32> to vector<16x1xf32>
    %106 = tpu.reciprocal %105 {approx = true} : vector<16x1xf32> -> vector<16x1xf32>
    %107 = vector.broadcast %106 : vector<16x1xf32> to vector<16x16xf32>
    %108 = arith.mulf %103, %107 : vector<16x16xf32>
    "tpu.trace_start"() <{level = 10 : i32, message = "cd,dn->cn"}> : () -> ()
    %cst_66 = arith.constant dense<0.000000e+00> : vector<16x64xf32>
    %109 = tpu.matmul %108, %74, %cst_66 {dimension_numbers = #tpu.dot_dimension_numbers<[1], [0], [0], [1], [0, 0, 1, 1], [], []>} : vector<16x16xf32>, vector<16x64xf32>, vector<16x64xf32> -> vector<16x64xf32>
    "tpu.trace_stop"() : () -> ()
    %c0_67 = arith.constant 0 : index
    %c0_68 = arith.constant 0 : index
    %110 = vector.load %arg7[%c0_67, %c0_68] : memref<16x16xf32, #tpu.memory_space<vmem>>, vector<16x16xf32>
    %cst_69 = arith.constant dense<0.000000e+00> : vector<16x64xf32>
    %111 = tpu.matmul %110, %109, %cst_69 {dimension_numbers = #tpu.dot_dimension_numbers<[1], [0], [0], [1], [0, 0, 1, 1], [], []>} : vector<16x16xf32>, vector<16x64xf32>, vector<16x64xf32> -> vector<16x64xf32>
    %c0_70 = arith.constant 0 : index
    %c0_71 = arith.constant 0 : index
    %112 = vector.load %arg8[%c0_70, %c0_71] : memref<16x4xf32, #tpu.memory_space<vmem>>, vector<16x4xf32>
    %113 = arith.addf %7, %112 : vector<16x4xf32>
    %c0_72 = arith.constant 0 : index
    %c0_73 = arith.constant 0 : index
    %114 = vector.load %arg9[%c0_72, %c0_73] : memref<16x16xf32, #tpu.memory_space<vmem>>, vector<16x16xf32>
    %cst_74 = arith.constant dense<0.000000e+00> : vector<16x4xf32>
    %115 = tpu.matmul %114, %113, %cst_74 {dimension_numbers = #tpu.dot_dimension_numbers<[1], [0], [0], [1], [0, 0, 1, 1], [], []>} : vector<16x16xf32>, vector<16x4xf32>, vector<16x4xf32> -> vector<16x4xf32>
    %c0_75 = arith.constant 0 : index
    %c0_76 = arith.constant 0 : index
    %116 = vector.load %arg10[%c0_75, %c0_76] : memref<16x16xf32, #tpu.memory_space<vmem>>, vector<16x16xf32>
    %cst_77 = arith.constant dense<0.000000e+00> : vector<16x4xf32>
    %117 = tpu.matmul %116, %113, %cst_77 {dimension_numbers = #tpu.dot_dimension_numbers<[1], [0], [0], [1], [0, 0, 1, 1], [], []>} : vector<16x16xf32>, vector<16x4xf32>, vector<16x4xf32> -> vector<16x4xf32>
    %c0_78 = arith.constant 0 : index
    %c0_79 = arith.constant 0 : index
    %118 = vector.load %arg11[%c0_78, %c0_79] : memref<16x16xf32, #tpu.memory_space<vmem>>, vector<16x16xf32>
    %cst_80 = arith.constant dense<0.000000e+00> : vector<16x4xf32>
    %119 = tpu.matmul %118, %113, %cst_80 {dimension_numbers = #tpu.dot_dimension_numbers<[1], [0], [0], [1], [0, 0, 1, 1], [], []>} : vector<16x16xf32>, vector<16x4xf32>, vector<16x4xf32> -> vector<16x4xf32>
    %120 = vector.extract_strided_slice %115 {offsets = [0, 0], sizes = [8, 4], strides = [1, 1]} : vector<16x4xf32> to vector<8x4xf32>
    %121 = vector.extract_strided_slice %117 {offsets = [0, 0], sizes = [8, 4], strides = [1, 1]} : vector<16x4xf32> to vector<8x4xf32>
    %122 = vector.extract_strided_slice %119 {offsets = [0, 0], sizes = [8, 4], strides = [1, 1]} : vector<16x4xf32> to vector<8x4xf32>
    "tpu.trace_start"() <{level = 10 : i32, message = "di,dj->ij"}> : () -> ()
    %cst_81 = arith.constant dense<0.000000e+00> : vector<4x4xf32>
    %123 = tpu.matmul %120, %121, %cst_81 {dimension_numbers = #tpu.dot_dimension_numbers<[0], [0], [1], [1], [0, 1, 1, 1], [], []>} : vector<8x4xf32>, vector<8x4xf32>, vector<4x4xf32> -> vector<4x4xf32>
    "tpu.trace_stop"() : () -> ()
    %cst_82 = arith.constant 0.353553385 : f32
    %124 = vector.broadcast %cst_82 : f32 to vector<4x4xf32>
    %125 = arith.mulf %123, %124 : vector<4x4xf32>
    %cst_83 = arith.constant dense<0xFF800000> : vector<4xf32>
    %126 = vector.multi_reduction <maximumf>, %125, %cst_83 [1] : vector<4x4xf32> to vector<4xf32>
    %127 = vector.shape_cast %126 : vector<4xf32> to vector<4x1xf32>
    %128 = vector.broadcast %127 : vector<4x1xf32> to vector<4x4xf32>
    %129 = arith.subf %125, %128 : vector<4x4xf32>
    %130 = math.exp %129 : vector<4x4xf32>
    %cst_84 = arith.constant dense<0.000000e+00> : vector<4xf32>
    %131 = vector.multi_reduction <add>, %130, %cst_84 [1] : vector<4x4xf32> to vector<4xf32>
    %132 = vector.shape_cast %131 : vector<4xf32> to vector<4x1xf32>
    %133 = tpu.reciprocal %132 {approx = true} : vector<4x1xf32> -> vector<4x1xf32>
    %134 = vector.broadcast %133 : vector<4x1xf32> to vector<4x4xf32>
    %135 = arith.mulf %130, %134 : vector<4x4xf32>
    "tpu.trace_start"() <{level = 10 : i32, message = "ij,dj->di"}> : () -> ()
    %cst_85 = arith.constant dense<0.000000e+00> : vector<8x4xf32>
    %136 = tpu.matmul %122, %135, %cst_85 {dimension_numbers = #tpu.dot_dimension_numbers<[1], [1], [0], [0], [0, 0, 1, 0], [], []>} : vector<8x4xf32>, vector<4x4xf32>, vector<8x4xf32> -> vector<8x4xf32>
    "tpu.trace_stop"() : () -> ()
    %137 = vector.extract_strided_slice %115 {offsets = [8, 0], sizes = [8, 4], strides = [1, 1]} : vector<16x4xf32> to vector<8x4xf32>
    %138 = vector.extract_strided_slice %117 {offsets = [8, 0], sizes = [8, 4], strides = [1, 1]} : vector<16x4xf32> to vector<8x4xf32>
    %139 = vector.extract_strided_slice %119 {offsets = [8, 0], sizes = [8, 4], strides = [1, 1]} : vector<16x4xf32> to vector<8x4xf32>
    "tpu.trace_start"() <{level = 10 : i32, message = "di,dj->ij"}> : () -> ()
    %cst_86 = arith.constant dense<0.000000e+00> : vector<4x4xf32>
    %140 = tpu.matmul %137, %138, %cst_86 {dimension_numbers = #tpu.dot_dimension_numbers<[0], [0], [1], [1], [0, 1, 1, 1], [], []>} : vector<8x4xf32>, vector<8x4xf32>, vector<4x4xf32> -> vector<4x4xf32>
    "tpu.trace_stop"() : () -> ()
    %cst_87 = arith.constant 0.353553385 : f32
    %141 = vector.broadcast %cst_87 : f32 to vector<4x4xf32>
    %142 = arith.mulf %140, %141 : vector<4x4xf32>
    %cst_88 = arith.constant dense<0xFF800000> : vector<4xf32>
    %143 = vector.multi_reduction <maximumf>, %142, %cst_88 [1] : vector<4x4xf32> to vector<4xf32>
    %144 = vector.shape_cast %143 : vector<4xf32> to vector<4x1xf32>
    %145 = vector.broadcast %144 : vector<4x1xf32> to vector<4x4xf32>
    %146 = arith.subf %142, %145 : vector<4x4xf32>
    %147 = math.exp %146 : vector<4x4xf32>
    %cst_89 = arith.constant dense<0.000000e+00> : vector<4xf32>
    %148 = vector.multi_reduction <add>, %147, %cst_89 [1] : vector<4x4xf32> to vector<4xf32>
    %149 = vector.shape_cast %148 : vector<4xf32> to vector<4x1xf32>
    %150 = tpu.reciprocal %149 {approx = true} : vector<4x1xf32> -> vector<4x1xf32>
    %151 = vector.broadcast %150 : vector<4x1xf32> to vector<4x4xf32>
    %152 = arith.mulf %147, %151 : vector<4x4xf32>
    "tpu.trace_start"() <{level = 10 : i32, message = "ij,dj->di"}> : () -> ()
    %cst_90 = arith.constant dense<0.000000e+00> : vector<8x4xf32>
    %153 = tpu.matmul %139, %152, %cst_90 {dimension_numbers = #tpu.dot_dimension_numbers<[1], [1], [0], [0], [0, 0, 1, 0], [], []>} : vector<8x4xf32>, vector<4x4xf32>, vector<8x4xf32> -> vector<8x4xf32>
    "tpu.trace_stop"() : () -> ()
    %c0_91 = arith.constant 0 : index
    %c0_92 = arith.constant 0 : index
    %154 = vector.load %arg12[%c0_91, %c0_92] : memref<16x16xf32, #tpu.memory_space<vmem>>, vector<16x16xf32>
    %155 = tpu.concatenate %136, %153 in 0 : vector<8x4xf32>, vector<8x4xf32> -> vector<16x4xf32>
    %cst_93 = arith.constant dense<0.000000e+00> : vector<16x4xf32>
    %156 = tpu.matmul %154, %155, %cst_93 {dimension_numbers = #tpu.dot_dimension_numbers<[1], [0], [0], [1], [0, 0, 1, 1], [], []>} : vector<16x16xf32>, vector<16x4xf32>, vector<16x4xf32> -> vector<16x4xf32>
    %c0_94 = arith.constant 0 : index
    %c0_95 = arith.constant 0 : index
    %157 = vector.load %arg13[%c0_94, %c0_95] : memref<16x1xf32, #tpu.memory_space<vmem>>, vector<16x1xf32>
    %158 = vector.broadcast %157 : vector<16x1xf32> to vector<16x4xf32>
    %159 = arith.addf %156, %158 : vector<16x4xf32>
    %160 = vector.extract_strided_slice %1 {offsets = [0, 0, 0], sizes = [16, 1, 64], strides = [1, 1, 1]} : vector<16x4x64xf32> to vector<16x1x64xf32>
    %161 = vector.shape_cast %160 : vector<16x1x64xf32> to vector<16x64xf32>
    %162 = vector.extract_strided_slice %159 {offsets = [0, 0], sizes = [16, 1], strides = [1, 1]} : vector<16x4xf32> to vector<16x1xf32>
    %163 = vector.broadcast %162 : vector<16x1xf32> to vector<16x64xf32>
    %164 = arith.addf %161, %163 : vector<16x64xf32>
    %165 = arith.addf %164, %111 : vector<16x64xf32>
    %c0_96 = arith.constant 0 : index
    %c0_97 = arith.constant 0 : index
    %166 = vector.load %arg19[%c0_96, %c0_97] : memref<16x256xf32, #tpu.memory_space<vmem>>, vector<16x64xf32>
    tpu.vector_store %arg19[%c0_96, %c0_97], %165 {strides = array<i32>} : memref<16x256xf32, #tpu.memory_space<vmem>>, vector<16x64xf32>,
    %167 = vector.extract_strided_slice %1 {offsets = [0, 1, 0], sizes = [16, 1, 64], strides = [1, 1, 1]} : vector<16x4x64xf32> to vector<16x1x64xf32>
    %168 = vector.shape_cast %167 : vector<16x1x64xf32> to vector<16x64xf32>
    %169 = vector.extract_strided_slice %159 {offsets = [0, 1], sizes = [16, 1], strides = [1, 1]} : vector<16x4xf32> to vector<16x1xf32>
    %170 = vector.broadcast %169 : vector<16x1xf32> to vector<16x64xf32>
    %171 = arith.addf %168, %170 : vector<16x64xf32>
    %172 = arith.addf %171, %111 : vector<16x64xf32>
    %c0_98 = arith.constant 0 : index
    %c64 = arith.constant 64 : index
    %173 = vector.load %arg19[%c0_98, %c64] : memref<16x256xf32, #tpu.memory_space<vmem>>, vector<16x64xf32>
    tpu.vector_store %arg19[%c0_98, %c64], %172 {strides = array<i32>} : memref<16x256xf32, #tpu.memory_space<vmem>>, vector<16x64xf32>,
    %174 = vector.extract_strided_slice %1 {offsets = [0, 2, 0], sizes = [16, 1, 64], strides = [1, 1, 1]} : vector<16x4x64xf32> to vector<16x1x64xf32>
    %175 = vector.shape_cast %174 : vector<16x1x64xf32> to vector<16x64xf32>
    %176 = vector.extract_strided_slice %159 {offsets = [0, 2], sizes = [16, 1], strides = [1, 1]} : vector<16x4xf32> to vector<16x1xf32>
    %177 = vector.broadcast %176 : vector<16x1xf32> to vector<16x64xf32>
    %178 = arith.addf %175, %177 : vector<16x64xf32>
    %179 = arith.addf %178, %111 : vector<16x64xf32>
    %c0_99 = arith.constant 0 : index
    %c128 = arith.constant 128 : index
    %180 = vector.load %arg19[%c0_99, %c128] : memref<16x256xf32, #tpu.memory_space<vmem>>, vector<16x64xf32>
    tpu.vector_store %arg19[%c0_99, %c128], %179 {strides = array<i32>} : memref<16x256xf32, #tpu.memory_space<vmem>>, vector<16x64xf32>,
    %181 = vector.extract_strided_slice %1 {offsets = [0, 3, 0], sizes = [16, 1, 64], strides = [1, 1, 1]} : vector<16x4x64xf32> to vector<16x1x64xf32>
    %182 = vector.shape_cast %181 : vector<16x1x64xf32> to vector<16x64xf32>
    %183 = vector.extract_strided_slice %159 {offsets = [0, 3], sizes = [16, 1], strides = [1, 1]} : vector<16x4xf32> to vector<16x1xf32>
    %184 = vector.broadcast %183 : vector<16x1xf32> to vector<16x64xf32>
    %185 = arith.addf %182, %184 : vector<16x64xf32>
    %186 = arith.addf %185, %111 : vector<16x64xf32>
    %c0_100 = arith.constant 0 : index
    %c192 = arith.constant 192 : index
    %187 = vector.load %arg19[%c0_100, %c192] : memref<16x256xf32, #tpu.memory_space<vmem>>, vector<16x64xf32>
    tpu.vector_store %arg19[%c0_100, %c192], %186 {strides = array<i32>} : memref<16x256xf32, #tpu.memory_space<vmem>>, vector<16x64xf32>,
    %c0_101 = arith.constant 0 : index
    %c0_102 = arith.constant 0 : index
    %188 = vector.load %arg19[%c0_101, %c0_102] : memref<16x256xf32, #tpu.memory_space<vmem>>, vector<16x256xf32>
    %c0_103 = arith.constant 0 : index
    %c0_104 = arith.constant 0 : index
    %189 = vector.load %arg14[%c0_103, %c0_104] : memref<16x16xf32, #tpu.memory_space<vmem>>, vector<16x16xf32>
    %cst_105 = arith.constant dense<0.000000e+00> : vector<16x256xf32>
    %190 = tpu.matmul %189, %188, %cst_105 {dimension_numbers = #tpu.dot_dimension_numbers<[1], [0], [0], [1], [0, 0, 1, 1], [], []>} : vector<16x16xf32>, vector<16x256xf32>, vector<16x256xf32> -> vector<16x256xf32>
    %c0_106 = arith.constant 0 : index
    %c0_107 = arith.constant 0 : index
    %191 = vector.load %arg15[%c0_106, %c0_107] : memref<16x1xf32, #tpu.memory_space<vmem>>, vector<16x1xf32>
    %192 = vector.broadcast %191 : vector<16x1xf32> to vector<16x256xf32>
    %193 = arith.addf %190, %192 : vector<16x256xf32>
    %cst_108 = arith.constant 0.00999999977 : f32
    %194 = vector.broadcast %cst_108 : f32 to vector<16x256xf32>
    %195 = arith.mulf %194, %193 : vector<16x256xf32>
    %196 = arith.maximumf %193, %195 : vector<16x256xf32>
    %c0_109 = arith.constant 0 : index
    %c0_110 = arith.constant 0 : index
    %197 = vector.load %arg16[%c0_109, %c0_110] : memref<32x16xf32, #tpu.memory_space<vmem>>, vector<32x16xf32>
    %cst_111 = arith.constant dense<0.000000e+00> : vector<32x256xf32>
    %198 = tpu.matmul %197, %196, %cst_111 {dimension_numbers = #tpu.dot_dimension_numbers<[1], [0], [0], [1], [0, 0, 1, 1], [], []>} : vector<32x16xf32>, vector<16x256xf32>, vector<32x256xf32> -> vector<32x256xf32>
    %c0_112 = arith.constant 0 : index
    %c0_113 = arith.constant 0 : index
    %199 = vector.load %arg17[%c0_112, %c0_113] : memref<32x1xf32, #tpu.memory_space<vmem>>, vector<32x1xf32>
    %200 = vector.broadcast %199 : vector<32x1xf32> to vector<32x256xf32>
    %201 = arith.addf %198, %200 : vector<32x256xf32>
    %cst_114 = arith.constant 0.00999999977 : f32
    %202 = vector.broadcast %cst_114 : f32 to vector<32x256xf32>
    %203 = arith.mulf %202, %201 : vector<32x256xf32>
    %204 = arith.maximumf %201, %203 : vector<32x256xf32>
    %c0_115 = arith.constant 0 : index
    %c0_116 = arith.constant 0 : index
    %c0_117 = arith.constant 0 : index
    %205 = vector.load %arg18[%c0_115, %c0_116, %c0_117] : memref<1x32x256xf32, #tpu.memory_space<vmem>>, vector<1x32x256xf32>
    %206 = vector.shape_cast %205 : vector<1x32x256xf32> to vector<32x256xf32>
    %207 = vector.shape_cast %204 : vector<32x256xf32> to vector<1x32x256xf32>
    tpu.vector_store %arg18[%c0_115, %c0_116, %c0_117], %207 {strides = array<i32>} : memref<1x32x256xf32, #tpu.memory_space<vmem>>, vector<1x32x256xf32>,
    return
  }
  func.func @transform_0(%arg0: i32) -> (i32, i32, i32, i32) {
    %c0_i32 = arith.constant 0 : i32
    %c0_i32_0 = arith.constant 0 : i32
    %c0_i32_1 = arith.constant 0 : i32
    %c0_i32_2 = arith.constant 0 : i32
    return %arg0, %c0_i32, %c0_i32_0, %c0_i32_1 : i32, i32, i32, i32
  }
  func.func @transform_1(%arg0: i32) -> (i32, i32) {
    %c0_i32 = arith.constant 0 : i32
    %c0_i32_0 = arith.constant 0 : i32
    %c0_i32_1 = arith.constant 0 : i32
    return %c0_i32, %c0_i32_0 : i32, i32
  }
  func.func @transform_2(%arg0: i32) -> (i32, i32, i32) {
    %c0_i32 = arith.constant 0 : i32
    %c0_i32_0 = arith.constant 0 : i32
    %c0_i32_1 = arith.constant 0 : i32
    %c0_i32_2 = arith.constant 0 : i32
    return %c0_i32, %c0_i32_0, %c0_i32_1 : i32, i32, i32
  }
  func.func @transform_3(%arg0: i32) -> (i32, i32) {
    %c0_i32 = arith.constant 0 : i32
    %c0_i32_0 = arith.constant 0 : i32
    %c0_i32_1 = arith.constant 0 : i32
    return %c0_i32, %c0_i32_0 : i32, i32
  }
  func.func @transform_4(%arg0: i32) -> (i32, i32) {
    %c0_i32 = arith.constant 0 : i32
    %c0_i32_0 = arith.constant 0 : i32
    %c0_i32_1 = arith.constant 0 : i32
    return %c0_i32, %c0_i32_0 : i32, i32
  }
  func.func @transform_5(%arg0: i32) -> (i32, i32) {
    %c0_i32 = arith.constant 0 : i32
    %c0_i32_0 = arith.constant 0 : i32
    %c0_i32_1 = arith.constant 0 : i32
    return %c0_i32, %c0_i32_0 : i32, i32
  }
  func.func @transform_6(%arg0: i32) -> (i32, i32) {
    %c0_i32 = arith.constant 0 : i32
    %c0_i32_0 = arith.constant 0 : i32
    %c0_i32_1 = arith.constant 0 : i32
    return %c0_i32, %c0_i32_0 : i32, i32
  }
  func.func @transform_7(%arg0: i32) -> (i32, i32) {
    %c0_i32 = arith.constant 0 : i32
    %c0_i32_0 = arith.constant 0 : i32
    %c0_i32_1 = arith.constant 0 : i32
    return %c0_i32, %c0_i32_0 : i32, i32
  }
  func.func @transform_8(%arg0: i32) -> (i32, i32) {
    %c0_i32 = arith.constant 0 : i32
    %c0_i32_0 = arith.constant 0 : i32
    %c0_i32_1 = arith.constant 0 : i32
    return %c0_i32, %c0_i32_0 : i32, i32
  }
  func.func @transform_9(%arg0: i32) -> (i32, i32) {
    %c0_i32 = arith.constant 0 : i32
    %c0_i32_0 = arith.constant 0 : i32
    %c0_i32_1 = arith.constant 0 : i32
    return %c0_i32, %c0_i32_0 : i32, i32
  }
  func.func @transform_10(%arg0: i32) -> (i32, i32) {
    %c0_i32 = arith.constant 0 : i32
    %c0_i32_0 = arith.constant 0 : i32
    %c0_i32_1 = arith.constant 0 : i32
    return %c0_i32, %c0_i32_0 : i32, i32
  }
  func.func @transform_11(%arg0: i32) -> (i32, i32) {
    %c0_i32 = arith.constant 0 : i32
    %c0_i32_0 = arith.constant 0 : i32
    %c0_i32_1 = arith.constant 0 : i32
    return %c0_i32, %c0_i32_0 : i32, i32
  }
  func.func @transform_12(%arg0: i32) -> (i32, i32) {
    %c0_i32 = arith.constant 0 : i32
    %c0_i32_0 = arith.constant 0 : i32
    %c0_i32_1 = arith.constant 0 : i32
    return %c0_i32, %c0_i32_0 : i32, i32
  }
  func.func @transform_13(%arg0: i32) -> (i32, i32) {
    %c0_i32 = arith.constant 0 : i32
    %c0_i32_0 = arith.constant 0 : i32
    %c0_i32_1 = arith.constant 0 : i32
    return %c0_i32, %c0_i32_0 : i32, i32
  }
  func.func @transform_14(%arg0: i32) -> (i32, i32) {
    %c0_i32 = arith.constant 0 : i32
    %c0_i32_0 = arith.constant 0 : i32
    %c0_i32_1 = arith.constant 0 : i32
    return %c0_i32, %c0_i32_0 : i32, i32
  }
  func.func @transform_15(%arg0: i32) -> (i32, i32) {
    %c0_i32 = arith.constant 0 : i32
    %c0_i32_0 = arith.constant 0 : i32
    %c0_i32_1 = arith.constant 0 : i32
    return %c0_i32, %c0_i32_0 : i32, i32
  }
  func.func @transform_16(%arg0: i32) -> (i32, i32) {
    %c0_i32 = arith.constant 0 : i32
    %c0_i32_0 = arith.constant 0 : i32
    %c0_i32_1 = arith.constant 0 : i32
    return %c0_i32, %c0_i32_0 : i32, i32
  }
  func.func @transform_17(%arg0: i32) -> (i32, i32, i32) {
    %c0_i32 = arith.constant 0 : i32
    %c0_i32_0 = arith.constant 0 : i32
    %c0_i32_1 = arith.constant 0 : i32
    return %arg0, %c0_i32, %c0_i32_0 : i32, i32, i32
  }
}

</mosaic_0001>

<bundles_post_ra>
// kernel: tpu_custom_call.1
= control target key start
LH: loop header
LB: loop body
LE: loop exit
PB: predicated region body
PF: predicated region fallthrough
CT: control target
= control target key end

     0   :  { %s6961_s0 = inlined_call_operand.vmem [shape: f32[2,16,4,64], index: 0, kind: input, shape index: {}]   ;;  %s6962_s1 = inlined_call_operand.vmem [shape: f32[48,16], index: 1, kind: input, shape index: {}]   ;;  %s6963_s2 = inlined_call_operand.hbm [shape: f32[9,64,64], index: 2, kind: input, shape index: {}]   ;;  %s6964_s3 = inlined_call_operand.vmem [shape: f32[48,9], index: 3, kind: input, shape index: {}]   ;;  %s6965_s4 = inlined_call_operand.vmem [shape: f32[16,1], index: 4, kind: input, shape index: {}]   ;;  %s6966_s5 = inlined_call_operand.vmem [shape: f32[16,16], index: 5, kind: input, shape index: {}]   ;;  %s6967_s6 = inlined_call_operand.vmem [shape: f32[16,16], index: 6, kind: input, shape index: {}]   ;;  %s6968_s7 = inlined_call_operand.vmem [shape: f32[16,4], index: 7, kind: input, shape index: {}]   ;;  %s6969_s8 = inlined_call_operand.vmem [shape: f32[16,16], index: 8, kind: input, shape index: {}]   ;;  %s6970_s9 = inlined_call_operand.vmem [shape: f32[16,16], index: 9, kind: input, shape index: {}]   ;;  %s6971_s10 = inlined_call_operand.vmem [shape: f32[16,16], index: 10, kind: input, shape index: {}]   ;;  %s6972_s11 = inlined_call_operand.vmem [shape: f32[16,16], index: 11, kind: input, shape index: {}]   ;;  %s6973_s12 = inlined_call_operand.vmem [shape: f32[16,1], index: 12, kind: input, shape index: {}]   ;;  %s6974_s13 = inlined_call_operand.vmem [shape: f32[16,16], index: 13, kind: input, shape index: {}]   ;;  %s6975_s14 = inlined_call_operand.vmem [shape: f32[16,1], index: 14, kind: input, shape index: {}]   ;;  %s6976_s15 = inlined_call_operand.vmem [shape: f32[32,16], index: 15, kind: input, shape index: {}]   ;;  %s6977_s16 = inlined_call_operand.vmem [shape: f32[32,1], index: 16, kind: input, shape index: {}]   ;;  %s6978_s17 = inlined_call_operand.hbm [shape: f32[2,32,256], index: 17, kind: output, shape index: {}]  }
   0x1   :  { %7010 = sst [smem:[#allocation28_spill]] %s6961_s0 }
   0x2   :  { %7011 = sst [smem:[#allocation29_spill]] %s6962_s1 }
   0x3   :  { %22 = vsyncpa [#allocation4], 0 }
   0x4   :  { %23 = vsyncpa [#allocation5], 0 }
   0x5   :  { %25 = vsyncpa [#allocation5 + $0x1], 0  ;;  %s5604_s24 = smov 0   ;;  %s5606_s25 = smov 0  }
   0x6   :  { %s5608_s26 = smov 0   ;;  %s5610_s27 = smov 0  }
   0x7 LB: > { %7012 = sst [smem:[#allocation9_spill]] %s5482_s24  ;;  %s5625_s28 = sadd.s32 4294967295, %s5494_s27   ;;  %s5494_s27 = sphi %s5610_s27, %s7088_s27   ;;  %s5490_s26 = sphi %s5608_s26, %s7090_s26   ;;  %s5486_s25 = sphi %s5606_s25, %s7092_s25   ;;  %s5482_s24 = sphi %s5604_s24, %s7091_s24  }
   0x8   : > { %7013 = sst [smem:[#allocation10_spill]] %s5490_s26  ;;  %s4431_s29 = sadd.s32 4294967294, %s5494_s27  }
   0x9   : > { %7014 = sst [smem:[#allocation11_spill]] %s5494_s27  ;;  %s5629_s0 = sadd.s32 1, %s5494_s27  }
   0xa   : > { %7015 = sst [smem:[#allocation12_spill]] %s5629_s0  ;;  %s400_s30 = sadd.s32 1, %s5490_s26 }
   0xb   : > { %s397_s18 = ssub.s32 %s5494_s27, %s5629_s0  ;;  %p410_p0 = scmp.ne.s32.totalorder %s5490_s26, %s5486_s25 }
   0xc   : > { %p398_p1 = scmp.eq.s32.totalorder %s397_s18, 0  ;;  %p411_p2 = scmp.eq.s32.totalorder %s5625_s28, 1 }
   0xd   : > { %p416_p3 = scmp.ne.s32.totalorder %s5486_s25, %s5482_s24  ;;  %p417_p4 = scmp.eq.s32.totalorder %s4431_s29, 1 }
   0xe   : > { %s5640_s19 = scalar_select %p398_p1, %s5490_s26, %s400_s30  }
   0xf   : > { %p5642_p5 = por %p411_p2, %p410_p0  ;;  %p5646_p6 = por %p417_p4, %p416_p3 }
  0x10   : > { %7016 = sst [smem:[#allocation13_spill]] %s5640_s19  ;;  %p4432_p7 = scmp.ge.s32.totalorder %s5494_s27, 1 }
  0x11   : > { %s7017_s1 = scalar_select %p5642_p5, 1, 0 }
  0x12   : > { %s7018_s20 = scalar_select %p5646_p6, 1, 0 }
  0x13   : > { %p424_p8 = scmp.lt.s32.totalorder %s5494_s27, 3  ;;  %p6985_p9 = scmp.eq.s32.totalorder %s5625_s28, 0 }
  0x14   : > { %7019 = sst [smem:[#allocation14_spill]] %s7018_s20  ;;  %s5496_s22 = smov [#allocation3]  }
  0x15   : > { %p5653_p10 = pnand %p4432_p7, %p424_p8  ;;  %s439_s23 = sshll.u32 %s5496_s22, 4  ;;  %s440_s23 = int_to_ptr.vmem [resolvable:$true] %s439_s23 }
  0x16   : > { %s5400_s19 = scalar_lea.hbm %s6963_s2, 9216 }
  0x17   : > { %s7020_s21 = scalar_select %p5653_p10, 1, 0 }
  0x18   : > { %p5204_p11 = pneg %p5653_p10  ;;  %p5401_p13 = scmp.ne.s32.totalorder %s6963_s2, %s5400_s19 }
  0x19   : > { %p5407_p3 = scmp.lt.u32.totalorder %s5400_s19, %s6963_s2 }
  0x1a   : > { %p5661_p12 = pnand %p6985_p9, %p5204_p11 }
  0x1c   : > { %p5402_p0 = pneg %p5661_p12 }
  0x1e   : > { %p5403_p1 = pnand %p5402_p0, %p5401_p13 }
  0x20   : > { %p5404_p2 = pneg %p5403_p1 }
  0x22   : > { %p5409_p4 = pnand %p5407_p3, %p5404_p2 }
  0x24   : > { %5412 = shalt.err (!%p5409_p4)
}
  0x25   : > { %s5413_s24 = scalar_lea.vmem %s440_s23, 9216  ;;  %p5421_p9 = scmp.lt.s32.totalorder %s440_s23, %s440_s23 }
  0x26   : > { %p5414_p7 = scmp.ne.s32.totalorder %s440_s23, %s5413_s24  ;;  %p5422_p6 = scmp.lt.s32.totalorder %s5413_s24, %s5413_s24 }
  0x28   : > { %p5416_p8 = pnand %p5414_p7, %p5402_p0  ;;  %p5423_p5 = por %p5422_p6, %p5421_p9 }
  0x2a   : > { %p5417_p11 = pneg %p5416_p8 }
  0x2c   : > { %p5424_p10 = pnand %p5423_p5, %p5417_p11 }
  0x2e   : > { %5427 = shalt.err (!%p5424_p10)
}
  0x2f   : > { %s5497_s26 = smov 128   ;;  %s5498_s0 = smov 8  }
  0x30   : > { %5207 = dma.hbm_to_vmem [thread:$0]  (!%p5661_p12), %s6963_s2, 9216, %s440_s23, [#allocation4], %s5497_s26, %s5497_s26, %s5498_s0  }
  0x31   : > { %p7022_p13 = scmp.ne.s32.totalorder %s7020_s21, 0 }
  0x33   : > { %505 = sbr.rel (%p7022_p13) target bundleno = 3685 (0xe65), region = 88 }
  0x3a   : > { %p7023_p1 = scmp.eq.s32.totalorder %s5625_s28, 0 }
  0x3c   : > { %5473 = dma.done.wait (%p7023_p1), [#allocation4], 9216   ;;  %p7024_p0 = pmov %p7023_p1 }
  0x3d   : > { %p557_p5 = scmp.lt.s32.totalorder %s5625_s28, 1  ;;  %s7025_s22 = sld [smem:[#allocation28_spill]]  ;;  %vm578_vm0 = vcmask 519168   ;;  %vm802_vm1 = vcmask 130048   ;;  %vm779_vm2 = vcmask 1041409   ;;  %vm781_vm3 = vcmask 1042434  }
  0x3e   : > { %5475 = vsyncadd (%p7024_p0), [#allocation4], 4294958080  ;;  %s7026_s26 = sld [smem:[#allocation29_spill]]  ;;  %vm783_vm4 = vcmask 1043459   ;;  %vm785_vm5 = vcmask 1044484   ;;  %vm787_vm6 = vcmask 1045509  }
  0x3f   : > { %s558_s24 = scalar_select %p557_p5, %s5625_s28, 1  ;;  %vm789_vm7 = vcmask 1046534   ;;  %vm791_vm8 = vcmask 1047559   ;;  %vm930_vm9 = vcmask 523264  }
  0x40   : > { %s5510_s23 = smov 64   ;;  %s554_s30 = sand.u32 1, %s5486_s25  }
  0x41   : > { %s4533_s19 = sshll.u32 %s558_s24, 6  ;;  %s4437_s18 = sshll.u32 %s554_s30, 6 }
  0x42   : > { %s6899_s24 = scalar_lea.vmem [#allocation6], %s4437_s18  ;;  %s4534_s20 = sshll.u32 %s5625_s28, 10 }
  0x43   : > { %s5692_s27 = scalar_lea.vmem %s7025_s22, %s4533_s19  ;;  %s4357_s19 = sshll.u32 %s6899_s24, 4  ;;  %s6909_s19 = int_to_ptr.vmem [resolvable:$true] %s4357_s19 }
  0x44   : > { %v562_v0 = vld [vmem:[%s5692_s27] sm:$0xf]  ;;  %v563_v1 = vld [vmem:[%s5692_s27 + $0x4] sm:$0xf]  ;;  %v564_v2 = vld [vmem:[%s5692_s27 + $0x8] sm:$0xf]  ;;  %s7027_s0 = smov %s7026_s26  ;;  %s6914_s21 = scalar_lea.hbm %s6978_s17, %s4534_s20 }
  0x45   : > { %v565_v3 = vld [vmem:[%s5692_s27 + $0xc] sm:$0xf]  ;;  %v566_v4 = vld [vmem:[%s5692_s27 + $0x10] sm:$0xf]  ;;  %v567_v5 = vld [vmem:[%s5692_s27 + $0x14] sm:$0xf] }
  0x46   : > { %v568_v6 = vld [vmem:[%s5692_s27 + $0x18] sm:$0xf]  ;;  %v569_v7 = vld [vmem:[%s5692_s27 + $0x1c] sm:$0xf]  ;;  %v5703_v8 = vsel %vm578_vm0, %v562_v0, 0.0  ;;  %v5706_v9 = vsel %vm578_vm0, %v563_v1, 0.0 }
  0x47   : > { %v5709_v10 = vsel %vm578_vm0, %v564_v2, 0.0  ;;  %v5712_v11 = vsel %vm578_vm0, %v565_v3, 0.0  ;;  %v580_v12 = vrot.slane %v5703_v8, 4  ;;  %v587_v13 = vrot.slane %v5706_v9, 4  ;;  %v757_v16 = vld [vmem:[%s7026_s26] sm:$0xff]  ;;  %s5428_s28 = scalar_lea.vmem %s6909_s19, 1024 }
  0x48   : > { %v594_v14 = vrot.slane %v5709_v10, 4  ;;  %v601_v15 = vrot.slane %v5712_v11, 4  ;;  %v5722_v17 = vsel %vm578_vm0, %v566_v4, 0.0  ;;  %v5725_v18 = vsel %vm578_vm0, %v567_v5, 0.0  ;;  %4709 = vmatprep.mubr.msk.f32.mxu0 %vm802_vm1, %v757_v16  ;;  %v570_v45 = vld [vmem:[%s5692_s27 + $0x20] sm:$0xf]  ;;  %p5429_p6 = scmp.ne.s32.totalorder %s6909_s19, %s5428_s28 }
  0x49   : > { %v5728_v19 = vsel %vm578_vm0, %v568_v6, 0.0  ;;  %v5731_v20 = vsel %vm578_vm0, %v569_v7, 0.0  ;;  %v581_v21 = vadd.f32 %v580_v12, %v5703_v8  ;;  %v588_v22 = vadd.f32 %v587_v13, %v5706_v9  ;;  %v571_v50 = vld [vmem:[%s5692_s27 + $0x24] sm:$0xf]  ;;  %v572_v51 = vld [vmem:[%s5692_s27 + $0x28] sm:$0xf] }
  0x4a   : > { %v595_v23 = vadd.f32 %v594_v14, %v5709_v10  ;;  %v602_v24 = vadd.f32 %v601_v15, %v5712_v11  ;;  %v608_v25 = vrot.slane %v5722_v17, 4  ;;  %v615_v26 = vrot.slane %v5725_v18, 4  ;;  %v573_v52 = vld [vmem:[%s5692_s27 + $0x2c] sm:$0xf]  ;;  %v574_v57 = vld [vmem:[%s5692_s27 + $0x30] sm:$0xf] }
  0x4b   : > { %v622_v27 = vrot.slane %v5728_v19, 4  ;;  %v629_v28 = vrot.slane %v5731_v20, 4  ;;  %v582_v29 = vrot.slane %v581_v21, 2  ;;  %v589_v30 = vrot.slane %v588_v22, 2  ;;  %v575_v58 = vld [vmem:[%s5692_s27 + $0x34] sm:$0xf] }
  0x4c   : > { %v596_v31 = vrot.slane %v595_v23, 2  ;;  %v603_v32 = vrot.slane %v602_v24, 2  ;;  %v609_v33 = vadd.f32 %v608_v25, %v5722_v17  ;;  %v616_v34 = vadd.f32 %v615_v26, %v5725_v18  ;;  %v576_v59 = vld [vmem:[%s5692_s27 + $0x38] sm:$0xf]  ;;  %v577_v0 = vld [vmem:[%s5692_s27 + $0x3c] sm:$0xf] }
  0x4d   : > { %v623_v35 = vadd.f32 %v622_v27, %v5728_v19  ;;  %v630_v36 = vadd.f32 %v629_v28, %v5731_v20  ;;  %v583_v37 = vadd.f32 %v582_v29, %v581_v21  ;;  %v590_v38 = vadd.f32 %v589_v30, %v588_v22  ;;  %p7083_p9 = scmp.ne.s32.totalorder %s7017_s1, 0 }
  0x4e   : > { %v597_v39 = vadd.f32 %v596_v31, %v595_v23  ;;  %v604_v40 = vadd.f32 %v603_v32, %v602_v24  ;;  %v610_v41 = vrot.slane %v609_v33, 2  ;;  %v617_v42 = vrot.slane %v616_v34, 2 }
  0x4f   : > { %v624_v43 = vrot.slane %v623_v35, 2  ;;  %v631_v44 = vrot.slane %v630_v36, 2  ;;  %v584_v46 = vrot.slane %v583_v37, 1  ;;  %v591_v47 = vrot.slane %v590_v38, 1  ;;  %p5430_p10 = pnand %p5429_p6, %p7083_p9 }
  0x50   : > { %v598_v48 = vrot.slane %v597_v39, 1  ;;  %v605_v49 = vrot.slane %v604_v40, 1  ;;  %v5750_v53 = vadd.f32 %v610_v41, %v609_v33  ;;  %v5752_v54 = vadd.f32 %v617_v42, %v616_v34 }
  0x51   : > { %v5754_v55 = vadd.f32 %v624_v43, %v623_v35  ;;  %v5756_v56 = vadd.f32 %v631_v44, %v630_v36  ;;  %v5761_v60 = vadd.f32 %v584_v46, %v583_v37  ;;  %v5763_v61 = vadd.f32 %v591_v47, %v590_v38  ;;  %p5431_p12 = pneg %p5430_p10 }
  0x52   : > { %v5765_v62 = vadd.f32 %v598_v48, %v597_v39  ;;  %v5767_v63 = vadd.f32 %v605_v49, %v604_v40  ;;  %v5771_v1 = vsel %vm578_vm0, %v570_v45, 0.0  ;;  %v5774_v2 = vsel %vm578_vm0, %v571_v50, 0.0 }
  0x53   : > { %v5777_v3 = vsel %vm578_vm0, %v572_v51, 0.0  ;;  %v5780_v4 = vsel %vm578_vm0, %v573_v52, 0.0  ;;  %v612_v5 = vrot.slane %v5750_v53, 1  ;;  %v619_v6 = vrot.slane %v5752_v54, 1 }
  0x54   : > { %v626_v7 = vrot.slane %v5754_v55, 1  ;;  %v633_v12 = vrot.slane %v5756_v56, 1  ;;  %v636_v13 = vrot.slane %v5771_v1, 4  ;;  %v643_v14 = vrot.slane %v5774_v2, 4 }
  0x55   : > { %v650_v15 = vrot.slane %v5777_v3, 4  ;;  %v657_v16 = vrot.slane %v5780_v4, 4  ;;  %v5791_v21 = vsel %vm578_vm0, %v574_v57, 0.0  ;;  %v5794_v22 = vsel %vm578_vm0, %v575_v58, 0.0 }
  0x56   : > { %v5797_v23 = vsel %vm578_vm0, %v576_v59, 0.0  ;;  %v5800_v24 = vsel %vm578_vm0, %v577_v0, 0.0  ;;  %v637_v25 = vadd.f32 %v636_v13, %v5771_v1  ;;  %v644_v26 = vadd.f32 %v643_v14, %v5774_v2 }
  0x57   : > { %v651_v27 = vadd.f32 %v650_v15, %v5777_v3  ;;  %v658_v28 = vadd.f32 %v657_v16, %v5780_v4  ;;  %v664_v29 = vrot.slane %v5791_v21, 4  ;;  %v671_v30 = vrot.slane %v5794_v22, 4 }
  0x58   : > { %v678_v31 = vrot.slane %v5797_v23, 4  ;;  %v685_v32 = vrot.slane %v5800_v24, 4  ;;  %v638_v33 = vrot.slane %v637_v25, 2  ;;  %v645_v34 = vrot.slane %v644_v26, 2 }
  0x59   : > { %v652_v35 = vrot.slane %v651_v27, 2  ;;  %v659_v36 = vrot.slane %v658_v28, 2  ;;  %v665_v37 = vadd.f32 %v664_v29, %v5791_v21  ;;  %v672_v38 = vadd.f32 %v671_v30, %v5794_v22 }
  0x5a   : > { %v679_v39 = vadd.f32 %v678_v31, %v5797_v23  ;;  %v686_v40 = vadd.f32 %v685_v32, %v5800_v24  ;;  %v639_v41 = vadd.f32 %v638_v33, %v637_v25  ;;  %v646_v42 = vadd.f32 %v645_v34, %v644_v26 }
  0x5b   : > { %v653_v43 = vadd.f32 %v652_v35, %v651_v27  ;;  %v660_v44 = vadd.f32 %v659_v36, %v658_v28  ;;  %v666_v45 = vrot.slane %v665_v37, 2  ;;  %v673_v46 = vrot.slane %v672_v38, 2 }
  0x5c   : > { %v680_v47 = vrot.slane %v679_v39, 2  ;;  %v687_v48 = vrot.slane %v686_v40, 2  ;;  %v640_v49 = vrot.slane %v639_v41, 1  ;;  %v647_v50 = vrot.slane %v646_v42, 1 }
  0x5d   : > { %v654_v51 = vrot.slane %v653_v43, 1  ;;  %v661_v52 = vrot.slane %v660_v44, 1  ;;  %v667_v57 = vadd.f32 %v666_v45, %v665_v37  ;;  %v674_v58 = vadd.f32 %v673_v46, %v672_v38 }
  0x5e   : > { %v681_v59 = vadd.f32 %v680_v47, %v679_v39  ;;  %v688_v0 = vadd.f32 %v687_v48, %v686_v40  ;;  %v641_v13 = vadd.f32 %v640_v49, %v639_v41  ;;  %v648_v14 = vadd.f32 %v647_v50, %v646_v42  ;;  %v922_v41 = vld [vmem:[#allocation3] sm:$0xff]  ;;  %v927_v50 = vld [vmem:[#allocation3 + $0x28] sm:$0xff] }
  0x5f   : > { %v655_v15 = vadd.f32 %v654_v51, %v653_v43  ;;  %v662_v16 = vadd.f32 %v661_v52, %v660_v44  ;;  %v668_v25 = vrot.slane %v667_v57, 1  ;;  %v675_v26 = vrot.slane %v674_v58, 1  ;;  %v926_v49 = vld [vmem:[#allocation3 + $0x20] sm:$0xff] }
  0x60   : > { %v682_v27 = vrot.slane %v681_v59, 1  ;;  %v689_v28 = vrot.slane %v688_v0, 1  ;;  %v613_v29 = vadd.f32 %v612_v5, %v5750_v53  ;;  %v620_v30 = vadd.f32 %v619_v6, %v5752_v54  ;;  %v923_v53 = vld [vmem:[#allocation3 + $0x8] sm:$0xff] }
  0x61   : > { %v627_v31 = vadd.f32 %v626_v7, %v5754_v55  ;;  %v634_v32 = vadd.f32 %v633_v12, %v5756_v56  ;;  %v669_v33 = vadd.f32 %v668_v25, %v667_v57  ;;  %v676_v34 = vadd.f32 %v675_v26, %v674_v58  ;;  %v924_v7 = vld [vmem:[#allocation3 + $0x10] sm:$0xff]  ;;  %v925_v56 = vld [vmem:[#allocation3 + $0x18] sm:$0xff] }
  0x62   : > { %v692_v35 = vmul.f32 0.25, %v5761_v60  ;;  %v693_v36 = vmul.f32 0.25, %v5763_v61  ;;  %v683_v37 = vadd.f32 %v682_v27, %v681_v59  ;;  %v690_v38 = vadd.f32 %v689_v28, %v688_v0  ;;  %v928_v28 = vld [vmem:[#allocation3 + $0x30] sm:$0xff] }
  0x63   : > { %v694_v39 = vmul.f32 0.25, %v5765_v62  ;;  %v695_v40 = vmul.f32 0.25, %v5767_v63  ;;  %v700_v5 = vmul.f32 0.25, %v641_v13  ;;  %v701_v54 = vmul.f32 0.25, %v648_v14 }
  0x64   : > { %v702_v6 = vmul.f32 0.25, %v655_v15  ;;  %v703_v55 = vmul.f32 0.25, %v662_v16  ;;  %v696_v12 = vmul.f32 0.25, %v613_v29  ;;  %v697_v42 = vmul.f32 0.25, %v620_v30  ;;  %v1081_v15 = vld [vmem:[#allocation3 + $0x40] sm:$0xff]  ;;  %v1082_v16 = vld [vmem:[#allocation3 + $0x48] sm:$0xff] }
  0x65   : > { %v698_v43 = vmul.f32 0.25, %v627_v31  ;;  %v704_v60 = vmul.f32 0.25, %v669_v33  ;;  %v705_v44 = vmul.f32 0.25, %v676_v34  ;;  %v780_v61 = vsel %vm779_vm2, %v693_v36, %v692_v35  ;;  %v929_v29 = vld [vmem:[#allocation3 + $0x38] sm:$0xff]  ;;  %v1083_v34 = vld [vmem:[#allocation3 + $0x50] sm:$0xff] }
  0x66   : > { %v793_v45 = vsel %vm779_vm2, %v701_v54, %v700_v5  ;;  %v5016_v62 = vpack.c.bf16 %v923_v53, %v922_v41  ;;  %v706_v46 = vmul.f32 0.25, %v683_v37  ;;  %v782_v63 = vsel %vm781_vm3, %v694_v39, %v780_v61  ;;  %v1084_v35 = vld [vmem:[#allocation3 + $0x58] sm:$0xff]  ;;  %v758_v37 = vld [vmem:[%s7027_s0 + $0x8] sm:$0xff]  ;;  %v761_v5 = vld [vmem:[%s7027_s0 + $0x20] sm:$0xff] }
  0x67   : > { %v794_v47 = vsel %vm781_vm3, %v702_v6, %v793_v45  ;;  %v5020_v48 = vpack.c.bf16 %v925_v56, %v924_v7  ;;  %v699_v51 = vmul.f32 0.25, %v634_v32  ;;  %v707_v52 = vmul.f32 0.25, %v690_v38  ;;  %v759_v38 = vld [vmem:[%s7027_s0 + $0x10] sm:$0xff]  ;;  %v1086_v41 = vld [vmem:[#allocation3 + $0x68] sm:$0xff]  ;;  %v760_v53 = vld [vmem:[%s7027_s0 + $0x18] sm:$0xff] }
  0x68   : > { %v784_v57 = vsel %vm783_vm4, %v695_v40, %v782_v63  ;;  %v795_v58 = vsel %vm783_vm4, %v703_v55, %v794_v47  ;;  %5017 = vmatprep.subr.bf16.mxu1 %v5016_v62  ;;  %v5024_v25 = vpack.c.bf16 %v927_v50, %v926_v49  ;;  %v5032_v33 = vpack.c.bf16 %v1082_v16, %v1081_v15  ;;  %v1085_v40 = vld [vmem:[#allocation3 + $0x60] sm:$0xff]  ;;  %v1087_v6 = vld [vmem:[#allocation3 + $0x70] sm:$0xff]  ;;  %v1088_v55 = vld [vmem:[#allocation3 + $0x78] sm:$0xff] }
  0x69   : > { %v786_v59 = vsel %vm785_vm5, %v696_v12, %v784_v57  ;;  %v796_v0 = vsel %vm785_vm5, %v704_v60, %v795_v58  ;;  %5019 = vmatpush3.bf16.msra.mxu1 %v5016_v62  ;;  %v5028_v36 = vpack.c.bf16 %v929_v29, %v928_v28  ;;  %v5036_v39 = vpack.c.bf16 %v1084_v35, %v1083_v34  ;;  %v762_v7 = vld [vmem:[%s7027_s0 + $0x28] sm:$0xff]  ;;  %v1221_v12 = vld [vmem:[#allocation3 + $0x80] sm:$0xff]  ;;  %v918_v45 = vld [vmem:[%s6964_s3 + $0x10] sm:$0xff] }
  0x6a   : > { %v788_v13 = vsel %vm787_vm6, %v697_v42, %v786_v59  ;;  %v797_v14 = vsel %vm787_vm6, %v705_v44, %v796_v0  ;;  %5021 = vmatprep.subr.bf16.mxu1 %v5020_v48  ;;  %v5040_v54 = vpack.c.bf16 %v1086_v41, %v1085_v40  ;;  %v5044_v56 = vpack.c.bf16 %v1088_v55, %v1087_v6  ;;  %v1222_v42 = vld [vmem:[#allocation3 + $0x88] sm:$0xff]  ;;  %v5876_v50 = vld [vmem:[%s6964_s3] sm:$0xff]  ;;  %v1223_v0 = vld [vmem:[#allocation3 + $0x90] sm:$0xff] }
  0x6b   : > { %v790_v26 = vsel %vm789_vm7, %v698_v43, %v788_v13  ;;  %v798_v27 = vsel %vm789_vm7, %v706_v46, %v797_v14  ;;  %v1361_v43 = vld [vmem:[#allocation3 + $0xc0] sm:$0xff]  ;;  %v5856_v60 = vpack.c.bf16 %v1222_v42, %v1221_v12  ;;  %v1362_v44 = vld [vmem:[#allocation3 + $0xc8] sm:$0xff]  ;;  %v6999_v62 = vmov 1   ;;  %v919_v46 = vld [vmem:[%s6964_s3 + $0x18] sm:$0xff] }
  0x6c   : > { %v792_v30 = vsel %vm791_vm8, %v699_v51, %v790_v26  ;;  %v799_v31 = vsel %vm791_vm8, %v707_v52, %v798_v27  ;;  %v5858_v61 = vpack.c.bf16 %v1362_v44, %v1361_v43  ;;  %5265 = vset.pattern.permute.xlu1 %v6999_v62  ;;  %v6997_v63 = vmov 2   ;;  %v5884_v52 = vld [vmem:[%s6964_s3 + $0x8] sm:$0xff]  ;;  %v1224_v13 = vld [vmem:[#allocation3 + $0x98] sm:$0xff]  ;;  %v1363_v14 = vld [vmem:[#allocation3 + $0xd0] sm:$0xff] }
  0x6d   : > { %v5012_v32 = vpack.c.bf16 %v799_v31, %v792_v30  ;;  %5023 = vmatpush3.bf16.msra.mxu1 %v5020_v48  ;;  %1193 = vperm.xlu1 %5265, %v918_v45   ;;  %v7001_v47 = vmov 3   ;;  %v6996_v48 = vmov 4   ;;  %v6995_v49 = vmov 5   ;;  %v1364_v15 = vld [vmem:[#allocation3 + $0xd8] sm:$0xff]  ;;  %v1225_v28 = vld [vmem:[#allocation3 + $0xa0] sm:$0xff]  ;;  %v1226_v29 = vld [vmem:[#allocation3 + $0xa8] sm:$0xff] }
  0x6e   : > { %5025 = vmatprep.subr.bf16.mxu1 %v5024_v25  ;;  %v6989_v51 = vmov 0   ;;  %v6993_v57 = vmov 6   ;;  %v6992_v58 = vmov 7   ;;  %v6991_v59 = vmov 8   ;;  %v1365_v30 = vld [vmem:[#allocation3 + $0xe0] sm:$0xff]  ;;  %v1366_v31 = vld [vmem:[#allocation3 + $0xe8] sm:$0xff] }
  0x6f   : > { %5013 = vmatprep.subr.bf16.mxu0 %v5012_v32  ;;  %5264 = vset.pattern.permute.xlu0 %v6989_v51  ;;  %v5052_v26 = vpack.c.bf16 %v1224_v13, %v1223_v0  ;;  %v5068_v27 = vpack.c.bf16 %v1364_v15, %v1363_v14  ;;  %v5056_v34 = vpack.c.bf16 %v1226_v29, %v1225_v28  ;;  %v1502_v6 = vld [vmem:[#allocation3 + $0x108] sm:$0xff]  ;;  %v1641_v55 = vld [vmem:[#allocation3 + $0x140] sm:$0xff]  ;;  %v1503_v42 = vld [vmem:[#allocation3 + $0x110] sm:$0xff] }
  0x70   : > { %5015 = vmatpush3.bf16.msra.mxu0 %v5012_v32  ;;  %1056 = vperm.xlu0 %5264, %v918_v45   ;;  %v5072_v35 = vpack.c.bf16 %v1366_v31, %v1365_v30  ;;  %v1504_v43 = vld [vmem:[#allocation3 + $0x118] sm:$0xff]  ;;  %v1506_v0 = vld [vmem:[#allocation3 + $0x128] sm:$0xff]  ;;  %v1645_v13 = vld [vmem:[#allocation3 + $0x160] sm:$0xff] }
  0x71   : > { %5033 = vmatprep.subr.bf16.mxu0 %v5032_v33  ;;  %5027 = vmatpush3.bf16.msra.mxu1 %v5024_v25  ;;  %v1644_v44 = vld [vmem:[#allocation3 + $0x158] sm:$0xff]  ;;  %v1646_v14 = vld [vmem:[#allocation3 + $0x168] sm:$0xff]  ;;  %v1647_v28 = vld [vmem:[#allocation3 + $0x170] sm:$0xff] }
  0x72   : > { %5029 = vmatprep.subr.bf16.mxu1 %v5028_v36  ;;  %1197 = vperm.xlu1 %5265, %v919_v46   ;;  %v5104_v15 = vpack.c.bf16 %v1646_v14, %v1645_v13  ;;  %v1648_v29 = vld [vmem:[#allocation3 + $0x178] sm:$0xff] }
  0x73   : > { %4710 = vmatmul.mubr.msk.f32.vlgmr.msra.gmra.mrb[0].mxu0 %vm802_vm1, %v758_v37  ;;  %v1228_v37 = vld [vmem:[#allocation3 + $0xb8] sm:$0xff]  ;;  %v5108_v31 = vpack.c.bf16 %v1648_v29, %v1647_v28 }
  0x74   : > { %4712 = vmatprep.mubr.msk.f32.mxu0 %vm802_vm1, %v759_v38  ;;  %5035 = vmatpush3.bf16.msra.mxu0 %v5032_v33  ;;  %v1367_v38 = vld [vmem:[#allocation3 + $0xf0] sm:$0xff]  ;;  %v2064_v28 = vld [vmem:[#allocation3 + $0x218] sm:$0xff] }
  0x75   : > { %5037 = vmatprep.subr.bf16.mxu0 %v5036_v39  ;;  %5031 = vmatpush3.bf16.msra.mxu1 %v5028_v36  ;;  %v1227_v36 = vld [vmem:[#allocation3 + $0xb0] sm:$0xff] }
  0x76   : > { %5049 = vmatprep.subr.bf16.mxu1 %v5856_v60  ;;  %5266 = vset.pattern.permute.xlu1 %v6997_v63 }
  0x77   : > { %4713 = vmatmul.mubr.msk.f32.gmra.mrb[2].mxu0 %vm802_vm1, %v760_v53  ;;  %1337 = vperm.xlu1 %5266, %v919_v46   ;;  %v1501_v53 = vld [vmem:[#allocation3 + $0x100] sm:$0xff] }
  0x78   : > { %4715 = vmatprep.mubr.msk.f32.mxu0 %vm802_vm1, %v761_v5  ;;  %5039 = vmatpush3.bf16.msra.mxu0 %v5036_v39  ;;  %v1368_v39 = vld [vmem:[#allocation3 + $0xf8] sm:$0xff]  ;;  %v5060_v5 = vpack.c.bf16 %v1228_v37, %v1227_v36  ;;  %v1921_v36 = vld [vmem:[#allocation3 + $0x1c0] sm:$0xff]  ;;  %v1922_v37 = vld [vmem:[#allocation3 + $0x1c8] sm:$0xff] }
  0x79   : > { %5041 = vmatprep.subr.bf16.mxu0 %v5040_v54  ;;  %1061 = vperm.xlu0 %5264, %v919_v46  }
  0x7b   : > { %4716 = vmatmul.mubr.msk.f32.gmra.mrb[4].mxu0 %vm802_vm1, %v762_v7  ;;  %5267 = vset.pattern.permute.xlu1 %v7001_v47  ;;  %v1642_v7 = vld [vmem:[#allocation3 + $0x148] sm:$0xff] }
  0x7c   : > { %5043 = vmatpush3.bf16.msra.mxu0 %v5040_v54  ;;  %1473 = vperm.xlu1 %5267, %v918_v45   ;;  %v5076_v54 = vpack.c.bf16 %v1368_v39, %v1367_v38  ;;  %v5096_v12 = vpack.c.bf16 %v1642_v7, %v1641_v55  ;;  %v5128_v39 = vpack.c.bf16 %v1922_v37, %v1921_v36 }
  0x7d   : > { %5045 = vmatprep.subr.bf16.mxu0 %v5044_v56  ;;  %5271 = vset.pattern.permute.xlu0 %v6999_v62 }
  0x7e   : > { %1185 = vperm.xlu0 %5271, %v5876_v50  }
  0x80   : > { %5047 = vmatpush3.bf16.msra.mxu0 %v5044_v56  ;;  %5268 = vset.pattern.permute.xlu1 %v6996_v48  ;;  %v5080_v56 = vpack.c.bf16 %v1502_v6, %v1501_v53  ;;  %v1783_v53 = vld [vmem:[#allocation3 + $0x190] sm:$0xff]  ;;  %v1924_v6 = vld [vmem:[#allocation3 + $0x1d8] sm:$0xff] }
  0x81   : > { %5065 = vmatprep.subr.bf16.mxu0 %v5858_v61  ;;  %1613 = vperm.xlu1 %5268, %v918_v45  }
  0x82   : > { %5273 = vset.pattern.permute.xlu0 %v6993_v57 }
  0x83   : > { %1893 = vperm.xlu0 %5273, %v918_v45  }
  0x85   : > { %1617 = vperm.xlu1 %5268, %v919_v46  }
  0x87   : > { %5274 = vset.pattern.permute.xlu0 %v6997_v63 }
  0x88   : > { %1333 = vperm.xlu0 %5274, %v918_v45  }
  0x89   : > { %5269 = vset.pattern.permute.xlu1 %v6995_v49 }
  0x8a   : > { %1757 = vperm.xlu1 %5269, %v919_v46  }
  0x8c   : > { %1329 = vperm.xlu0 %5274, %v5884_v52  }
  0x8e   : > { %5270 = vset.pattern.permute.xlu1 %v6989_v51 }
  0x8f   : > { %1046 = vperm.xlu1 %5270, %v5876_v50  }
  0x90   : > { %5277 = vset.pattern.permute.xlu0 %v7001_v47 }
  0x91   : > { %1477 = vperm.xlu0 %5277, %v919_v46  }
  0x93   : > { %1051 = vperm.xlu1 %5270, %v5884_v52  }
  0x95   : > { %1465 = vperm.xlu0 %5277, %v5876_v50  }
  0x97   : > { %5272 = vset.pattern.permute.xlu1 %v6999_v62 }
  0x98   : > { %1189 = vperm.xlu1 %5272, %v5884_v52  }
  0x99   : > { %5281 = vset.pattern.permute.xlu0 %v6991_v59 }
  0x9a   : > { %2177 = vperm.xlu0 %5281, %v919_v46  }
  0x9c   : > { %5275 = vset.pattern.permute.xlu1 %v6993_v57 }
  0x9d   : > { %1897 = vperm.xlu1 %5275, %v919_v46  }
  0x9e   : > { %5282 = vset.pattern.permute.xlu0 %v6995_v49 }
  0x9f   : > { %1753 = vperm.xlu0 %5282, %v918_v45  }
  0xa1   : > { %5276 = vset.pattern.permute.xlu1 %v6997_v63 }
  0xa2   : > { %1325 = vperm.xlu1 %5276, %v5876_v50  }
  0xa3   : > { %1745 = vperm.xlu0 %5282, %v5876_v50  }
  0xa6   : > { %5278 = vset.pattern.permute.xlu1 %v6992_v58 }
  0xa7   : > { %2033 = vperm.xlu1 %5278, %v918_v45   ;;  %5286 = vset.pattern.permute.xlu0 %v6993_v57 }
  0xa8   : > { %1889 = vperm.xlu0 %5286, %v5884_v52  }
  0xab   : > { %2037 = vperm.xlu1 %5278, %v919_v46   ;;  %v1505_v46 = vld [vmem:[#allocation3 + $0x120] sm:$0xff] }
  0xac   : > { %5288 = vset.pattern.permute.xlu0 %v6991_v59 }
  0xad   : > { %2165 = vperm.xlu0 %5288, %v5876_v50  }
  0xaf   : > { %5279 = vset.pattern.permute.xlu1 %v7001_v47 }
  0xb0   : > { %1469 = vperm.xlu1 %5279, %v5884_v52  }
  0xb1   : > { %5290 = vset.pattern.permute.xlu0 %v6989_v51 }
  0xb4   : > { %5280 = vset.pattern.permute.xlu1 %v6991_v59 }
  0xb5   : > { %2173 = vperm.xlu1 %5280, %v918_v45  }
  0xb9   : > { %5283 = vset.pattern.permute.xlu1 %v6996_v48 }
  0xba   : > { %1605 = vperm.xlu1 %5283, %v5876_v50  }
  0xbe   : > { %1609 = vperm.xlu1 %5283, %v5884_v52  }
  0xc2   : > { %5284 = vset.pattern.permute.xlu1 %v6995_v49 }
  0xc3   : > { %1749 = vperm.xlu1 %5284, %v5884_v52  }
  0xc7   : > { %5285 = vset.pattern.permute.xlu1 %v6993_v57 }
  0xc8   : > { %1885 = vperm.xlu1 %5285, %v5876_v50  }
  0xcc   : > { %5287 = vset.pattern.permute.xlu1 %v6992_v58 }
  0xcd   : > { %2025 = vperm.xlu1 %5287, %v5876_v50   ;;  %v5088_v50 = vpack.c.bf16 %v1506_v0, %v1505_v46  ;;  %v1927_v46 = vld [vmem:[#allocation3 + $0x1f0] sm:$0xff]  ;;  %v1928_v0 = vld [vmem:[#allocation3 + $0x1f8] sm:$0xff] }
  0xce   : > { %v5140_v14 = vpack.c.bf16 %v1928_v0, %v1927_v46 }
  0xd1   : > { %2029 = vperm.xlu1 %5287, %v5884_v52  }
  0xd5   : > { %5289 = vset.pattern.permute.xlu1 %v6991_v59 }
  0xd6   : > { %2169 = vperm.xlu1 %5289, %v5884_v52  }
  0xda   : > { %5291 = vset.pattern.permute.xlu1 %v6989_v51 }
  0xec   : > { %v1194_v37 = vpop.permute.xlu1 %1193 }
 0x146   : > { %v5917_v16 = vpop.f32.mrb[0].mxu0 }
 0x147   : > { %v5919_v25 = vpop.f32.mrb[1].mxu0 }
 0x148   : > { %4734 = vmatprep.mubr.msk.f32.mxu1 %vm930_vm9, %v5919_v25  ;;  %4759 = vmatprep.mubr.msk.f32.mxu0 %vm930_vm9, %v5919_v25 }
 0x149   : > { %4735 = vmatmul.mubr.msk.f32.vlgmr.msra.gmra.mrb[0].mxu1 %vm930_vm9, %v5917_v16  ;;  %4760 = vmatmul.mubr.msk.f32.vlgmr.msra.gmra.mrb[6].mxu0 %vm930_vm9, %v5917_v16 }
 0x14a   : > { %5051 = vmatpush3.bf16.msra.mxu1 %v5856_v60  ;;  %5067 = vmatpush3.bf16.msra.mxu0 %v5858_v61  ;;  %v5932_v32 = vpop.f32.mrb[2].mxu0  ;;  %v1643_v60 = vld [vmem:[#allocation3 + $0x150] sm:$0xff]  ;;  %v5084_v61 = vpack.c.bf16 %v1504_v43, %v1503_v42  ;;  %v1925_v42 = vld [vmem:[#allocation3 + $0x1e0] sm:$0xff]  ;;  %v1926_v43 = vld [vmem:[#allocation3 + $0x1e8] sm:$0xff] }
 0x14b   : > { %v5934_v33 = vpop.f32.mrb[3].mxu0  ;;  %5053 = vmatprep.subr.bf16.mxu1 %v5052_v26  ;;  %5069 = vmatprep.subr.bf16.mxu0 %v5068_v27  ;;  %v5100_v45 = vpack.c.bf16 %v1644_v44, %v1643_v60  ;;  %v5136_v44 = vpack.c.bf16 %v1926_v43, %v1925_v42 }
 0x14c   : > { %4737 = vmatprep.mubr.msk.f32.mxu1 %vm930_vm9, %v5934_v33  ;;  %4762 = vmatprep.mubr.msk.f32.mxu0 %vm930_vm9, %v5934_v33 }
 0x14d   : > { %4738 = vmatmul.mubr.msk.f32.gmra.mrb[2].mxu1 %vm930_vm9, %v5932_v32  ;;  %4763 = vmatmul.mubr.msk.f32.gmra.mrb[8].mxu0 %vm930_vm9, %v5932_v32 }
 0x14e   : > { %5055 = vmatpush3.bf16.msra.mxu1 %v5052_v26  ;;  %5071 = vmatpush3.bf16.msra.mxu0 %v5068_v27  ;;  %v5944_v40 = vpop.f32.mrb[4].mxu0  ;;  %v1507_v26 = vld [vmem:[#allocation3 + $0x130] sm:$0xff]  ;;  %v1508_v27 = vld [vmem:[#allocation3 + $0x138] sm:$0xff] }
 0x14f   : > { %v5946_v41 = vpop.f32.mrb[5].mxu0  ;;  %5057 = vmatprep.subr.bf16.mxu1 %v5056_v34  ;;  %5073 = vmatprep.subr.bf16.mxu0 %v5072_v35  ;;  %v5092_v30 = vpack.c.bf16 %v1508_v27, %v1507_v26  ;;  %v2063_v27 = vld [vmem:[#allocation3 + $0x210] sm:$0xff] }
 0x150   : > { %4740 = vmatprep.mubr.msk.f32.mxu1 %vm930_vm9, %v5946_v41  ;;  %4765 = vmatprep.mubr.msk.f32.mxu0 %vm930_vm9, %v5946_v41  ;;  %v5148_v29 = vpack.c.bf16 %v2064_v28, %v2063_v27 }
 0x151   : > { %4741 = vmatmul.mubr.msk.f32.gmra.mrb[4].mxu1 %vm930_vm9, %v5944_v40  ;;  %4766 = vmatmul.mubr.msk.f32.gmra.mrb[10].mxu0 %vm930_vm9, %v5944_v40 }
 0x152   : > { %5059 = vmatpush3.bf16.msra.mxu1 %v5056_v34  ;;  %5075 = vmatpush3.bf16.msra.mxu0 %v5072_v35  ;;  %v1781_v34 = vld [vmem:[#allocation3 + $0x180] sm:$0xff]  ;;  %v1782_v35 = vld [vmem:[#allocation3 + $0x188] sm:$0xff] }
 0x153   : > { %4784 = vmatprep.mubr.msk.f32.mxu1 %vm930_vm9, %v5919_v25  ;;  %4809 = vmatprep.mubr.msk.f32.mxu0 %vm930_vm9, %v5919_v25  ;;  %v5112_v38 = vpack.c.bf16 %v1782_v35, %v1781_v34  ;;  %v2067_v34 = vld [vmem:[#allocation3 + $0x230] sm:$0xff]  ;;  %v2068_v35 = vld [vmem:[#allocation3 + $0x238] sm:$0xff] }
 0x154   : > { %5061 = vmatprep.subr.bf16.mxu1 %v5060_v5  ;;  %5077 = vmatprep.subr.bf16.mxu0 %v5076_v54  ;;  %v5156_v36 = vpack.c.bf16 %v2068_v35, %v2067_v34 }
 0x156   : > { %5063 = vmatpush3.bf16.msra.mxu1 %v5060_v5  ;;  %5079 = vmatpush3.bf16.msra.mxu0 %v5076_v54  ;;  %v1784_v5 = vld [vmem:[#allocation3 + $0x198] sm:$0xff]  ;;  %v1923_v54 = vld [vmem:[#allocation3 + $0x1d0] sm:$0xff] }
 0x157   : > { %5081 = vmatprep.subr.bf16.mxu1 %v5080_v56  ;;  %5097 = vmatprep.subr.bf16.mxu0 %v5096_v12  ;;  %v5116_v55 = vpack.c.bf16 %v1784_v5, %v1783_v53  ;;  %v5132_v7 = vpack.c.bf16 %v1924_v6, %v1923_v54  ;;  %v1057_v54 = vpop.permute.xlu0 %1056 }
 0x159   : > { %4785 = vmatmul.mubr.msk.f32.vlgmr.msra.gmra.mrb[6].mxu1 %vm930_vm9, %v5917_v16  ;;  %4810 = vmatmul.mubr.msk.f32.vlgmr.msra.gmra.mrb[12].mxu0 %vm930_vm9, %v5917_v16 }
 0x15a   : > { %4787 = vmatprep.mubr.msk.f32.mxu1 %vm930_vm9, %v5934_v33  ;;  %4812 = vmatprep.mubr.msk.f32.mxu0 %vm930_vm9, %v5934_v33 }
 0x15b   : > { %5083 = vmatpush3.bf16.msra.mxu1 %v5080_v56  ;;  %5099 = vmatpush3.bf16.msra.mxu0 %v5096_v12  ;;  %v1785_v56 = vld [vmem:[#allocation3 + $0x1a0] sm:$0xff]  ;;  %v1786_v12 = vld [vmem:[#allocation3 + $0x1a8] sm:$0xff]  ;;  %v1062_v6 = vpop.permute.xlu0 %1061 }
 0x15c   : > { %5085 = vmatprep.subr.bf16.mxu1 %v5084_v61  ;;  %5101 = vmatprep.subr.bf16.mxu0 %v5100_v45  ;;  %v5120_v60 = vpack.c.bf16 %v1786_v12, %v1785_v56 }
 0x15d   : > { %4788 = vmatmul.mubr.msk.f32.gmra.mrb[8].mxu1 %vm930_vm9, %v5932_v32  ;;  %4813 = vmatmul.mubr.msk.f32.gmra.mrb[14].mxu0 %vm930_vm9, %v5932_v32 }
 0x15e   : > { %4790 = vmatprep.mubr.msk.f32.mxu1 %vm930_vm9, %v5946_v41  ;;  %4815 = vmatprep.mubr.msk.f32.mxu0 %vm930_vm9, %v5946_v41 }
 0x15f   : > { %5087 = vmatpush3.bf16.msra.mxu1 %v5084_v61  ;;  %5103 = vmatpush3.bf16.msra.mxu0 %v5100_v45  ;;  %v1787_v61 = vld [vmem:[#allocation3 + $0x1b0] sm:$0xff]  ;;  %v1788_v45 = vld [vmem:[#allocation3 + $0x1b8] sm:$0xff] }
 0x160   : > { %5089 = vmatprep.subr.bf16.mxu1 %v5088_v50  ;;  %5105 = vmatprep.subr.bf16.mxu0 %v5104_v15  ;;  %v5124_v13 = vpack.c.bf16 %v1788_v45, %v1787_v61 }
 0x161   : > { %4791 = vmatmul.mubr.msk.f32.gmra.mrb[10].mxu1 %vm930_vm9, %v5944_v40  ;;  %4816 = vmatmul.mubr.msk.f32.gmra.mrb[16].mxu0 %vm930_vm9, %v5944_v40 }
 0x162   : > { %4834 = vmatprep.mubr.msk.f32.mxu1 %vm930_vm9, %v5919_v25  ;;  %4859 = vmatprep.mubr.msk.f32.mxu0 %vm930_vm9, %v5919_v25 }
 0x163   : > { %5091 = vmatpush3.bf16.msra.mxu1 %v5088_v50  ;;  %5107 = vmatpush3.bf16.msra.mxu0 %v5104_v15  ;;  %v2061_v50 = vld [vmem:[#allocation3 + $0x200] sm:$0xff]  ;;  %v2062_v15 = vld [vmem:[#allocation3 + $0x208] sm:$0xff] }
 0x164   : > { %5093 = vmatprep.subr.bf16.mxu1 %v5092_v30  ;;  %5109 = vmatprep.subr.bf16.mxu0 %v5108_v31  ;;  %v5144_v26 = vpack.c.bf16 %v2062_v15, %v2061_v50 }
 0x167   : > { %5095 = vmatpush3.bf16.msra.mxu1 %v5092_v30  ;;  %5111 = vmatpush3.bf16.msra.mxu0 %v5108_v31  ;;  %v2065_v30 = vld [vmem:[#allocation3 + $0x220] sm:$0xff]  ;;  %v2066_v31 = vld [vmem:[#allocation3 + $0x228] sm:$0xff] }
 0x168   : > { %5113 = vmatprep.subr.bf16.mxu1 %v5112_v38  ;;  %5129 = vmatprep.subr.bf16.mxu0 %v5128_v39  ;;  %v5152_v52 = vpack.c.bf16 %v2066_v31, %v2065_v30 }
 0x16a   : > { %4835 = vmatmul.mubr.msk.f32.vlgmr.msra.gmra.mrb[12].mxu1 %vm930_vm9, %v5917_v16  ;;  %4860 = vmatmul.mubr.msk.f32.vlgmr.msra.gmra.mrb[18].mxu0 %vm930_vm9, %v5917_v16 }
 0x16b   : > { %4837 = vmatprep.mubr.msk.f32.mxu1 %vm930_vm9, %v5934_v33  ;;  %4862 = vmatprep.mubr.msk.f32.mxu0 %vm930_vm9, %v5934_v33 }
 0x16c   : > { %5115 = vmatpush3.bf16.msra.mxu1 %v5112_v38  ;;  %5131 = vmatpush3.bf16.msra.mxu0 %v5128_v39 }
 0x16d   : > { %5117 = vmatprep.subr.bf16.mxu1 %v5116_v55  ;;  %5133 = vmatprep.subr.bf16.mxu0 %v5132_v7 }
 0x16e   : > { %4838 = vmatmul.mubr.msk.f32.gmra.mrb[14].mxu1 %vm930_vm9, %v5932_v32  ;;  %4863 = vmatmul.mubr.msk.f32.gmra.mrb[20].mxu0 %vm930_vm9, %v5932_v32 }
 0x16f   : > { %4840 = vmatprep.mubr.msk.f32.mxu1 %vm930_vm9, %v5946_v41  ;;  %4865 = vmatprep.mubr.msk.f32.mxu0 %vm930_vm9, %v5946_v41 }
 0x170   : > { %5119 = vmatpush3.bf16.msra.mxu1 %v5116_v55  ;;  %5135 = vmatpush3.bf16.msra.mxu0 %v5132_v7 }
 0x171   : > { %5121 = vmatprep.subr.bf16.mxu1 %v5120_v60  ;;  %5137 = vmatprep.subr.bf16.mxu0 %v5136_v44 }
 0x172   : > { %4841 = vmatmul.mubr.msk.f32.gmra.mrb[16].mxu1 %vm930_vm9, %v5944_v40  ;;  %4866 = vmatmul.mubr.msk.f32.gmra.mrb[22].mxu0 %vm930_vm9, %v5944_v40 }
 0x173   : > { %4884 = vmatprep.mubr.msk.f32.mxu1 %vm930_vm9, %v5919_v25  ;;  %4909 = vmatprep.mubr.msk.f32.mxu0 %vm930_vm9, %v5919_v25 }
 0x174   : > { %5123 = vmatpush3.bf16.msra.mxu1 %v5120_v60  ;;  %5139 = vmatpush3.bf16.msra.mxu0 %v5136_v44 }
 0x175   : > { %5125 = vmatprep.subr.bf16.mxu1 %v5124_v13  ;;  %5141 = vmatprep.subr.bf16.mxu0 %v5140_v14 }
 0x178   : > { %5127 = vmatpush3.bf16.msra.mxu1 %v5124_v13  ;;  %5143 = vmatpush3.bf16.msra.mxu0 %v5140_v14 }
 0x179   : > { %5145 = vmatprep.subr.bf16.mxu1 %v5144_v26 }
 0x17b   : > { %4885 = vmatmul.mubr.msk.f32.vlgmr.msra.gmra.mrb[18].mxu1 %vm930_vm9, %v5917_v16  ;;  %4910 = vmatmul.mubr.msk.f32.vlgmr.msra.gmra.mrb[24].mxu0 %vm930_vm9, %v5917_v16 }
 0x17c   : > { %4887 = vmatprep.mubr.msk.f32.mxu1 %vm930_vm9, %v5934_v33  ;;  %4912 = vmatprep.mubr.msk.f32.mxu0 %vm930_vm9, %v5934_v33 }
 0x17d   : > { %5147 = vmatpush3.bf16.msra.mxu1 %v5144_v26 }
 0x17e   : > { %5149 = vmatprep.subr.bf16.mxu1 %v5148_v29 }
 0x17f   : > { %4888 = vmatmul.mubr.msk.f32.gmra.mrb[20].mxu1 %vm930_vm9, %v5932_v32  ;;  %4913 = vmatmul.mubr.msk.f32.gmra.mrb[26].mxu0 %vm930_vm9, %v5932_v32 }
 0x180   : > { %4890 = vmatprep.mubr.msk.f32.mxu1 %vm930_vm9, %v5946_v41  ;;  %4915 = vmatprep.mubr.msk.f32.mxu0 %vm930_vm9, %v5946_v41 }
 0x181   : > { %5151 = vmatpush3.bf16.msra.mxu1 %v5148_v29 }
 0x182   : > { %5153 = vmatprep.subr.bf16.mxu1 %v5152_v52 }
 0x183   : > { %4891 = vmatmul.mubr.msk.f32.gmra.mrb[22].mxu1 %vm930_vm9, %v5944_v40  ;;  %4916 = vmatmul.mubr.msk.f32.gmra.mrb[28].mxu0 %vm930_vm9, %v5944_v40 }
 0x184   : > { %4934 = vmatprep.mubr.msk.f32.mxu1 %vm930_vm9, %v5919_v25  ;;  %v1198_v25 = vpop.permute.xlu1 %1197 }
 0x185   : > { %5155 = vmatpush3.bf16.msra.mxu1 %v5152_v52 }
 0x186   : > { %5157 = vmatprep.subr.bf16.mxu1 %v5156_v36 }
 0x188   : > { %v1338_v38 = vpop.permute.xlu1 %1337 }
 0x189   : > { %5159 = vmatpush3.bf16.msra.mxu1 %v5156_v36 }
 0x18c   : > { %4935 = vmatmul.mubr.msk.f32.vlgmr.msra.gmra.mrb[24].mxu1 %vm930_vm9, %v5917_v16  ;;  %v6046_v39 = vpop.permute.xlu1 %1473 }
 0x18d   : > { %4937 = vmatprep.mubr.msk.f32.mxu1 %vm930_vm9, %v5934_v33 }
 0x190   : > { %4938 = vmatmul.mubr.msk.f32.gmra.mrb[26].mxu1 %vm930_vm9, %v5932_v32  ;;  %v6048_v53 = vpop.permute.xlu1 %1613 }
 0x191   : > { %4940 = vmatprep.mubr.msk.f32.mxu1 %vm930_vm9, %v5946_v41  ;;  %v1186_v41 = vpop.permute.xlu0 %1185 }
 0x194   : > { %4941 = vmatmul.mubr.msk.f32.gmra.mrb[28].mxu1 %vm930_vm9, %v5944_v40  ;;  %v6050_v16 = vpop.permute.xlu1 %1617 }
 0x195   : > { %v6056_v40 = vpop.permute.xlu0 %1893 }
 0x198   : > { %v6052_v5 = vpop.permute.xlu1 %1757 }
 0x199   : > { %v1334_v12 = vpop.permute.xlu0 %1333 }
 0x19c   : > { %v1047_v33 = vpop.permute.xlu1 %1046 }
 0x19d   : > { %v1330_v43 = vpop.permute.xlu0 %1329 }
 0x1a0   : > { %v1052_v32 = vpop.permute.xlu1 %1051 }
 0x1a1   : > { %v1478_v51 = vpop.permute.xlu0 %1477 }
 0x1a4   : > { %v1190_v55 = vpop.permute.xlu1 %1189 }
 0x1a8   : > { %v6054_v7 = vpop.permute.xlu1 %1897 }
 0x1ac   : > { %v1326_v56 = vpop.permute.xlu1 %1325 }
 0x1b0   : > { %v6058_v42 = vpop.permute.xlu1 %2033 }
 0x1b4   : > { %v6060_v60 = vpop.permute.xlu1 %2037 }
 0x1b8   : > { %v1470_v59 = vpop.permute.xlu1 %1469 }
 0x21c   : > { %v4736_v44 = vpop.f32.mrb[0].mxu1  ;;  %v4761_v61 = vpop.f32.mrb[6].mxu0 }
 0x21d   : > { %v1075_v45 = vmul.f32 %v4736_v44, %v1052_v32  ;;  %v1209_v46 = vmul.f32 %v4761_v61, %v1190_v55  ;;  %v1015_v0 = vpop.f32.mrb[1].mxu1  ;;  %v1155_v13 = vpop.f32.mrb[7].mxu0 }
 0x21e   : > { %v1074_v14 = vmul.f32 %v1047_v33, %v1015_v0  ;;  %v1208_v50 = vmul.f32 %v1186_v41, %v1155_v13  ;;  %v6070_v44 = vpop.permute.xlu1 %2173 }
 0x21f   : > { %v1215_v15 = vadd.f32 %v1209_v46, %v1075_v45 }
 0x220   : > { %v1214_v26 = vadd.f32 %v1208_v50, %v1074_v14  ;;  %v4739_v27 = vpop.f32.mrb[2].mxu1  ;;  %v4764_v28 = vpop.f32.mrb[8].mxu0 }
 0x221   : > { %v1077_v29 = vmul.f32 %v4739_v27, %v1062_v6  ;;  %v1211_v30 = vmul.f32 %v4764_v28, %v1198_v25  ;;  %v1025_v31 = vpop.f32.mrb[3].mxu1  ;;  %v1165_v52 = vpop.f32.mrb[9].mxu0 }
 0x222   : > { %v1076_v34 = vmul.f32 %v1057_v54, %v1025_v31  ;;  %v1210_v35 = vmul.f32 %v1194_v37, %v1165_v52  ;;  %v1466_v6 = vpop.permute.xlu0 %1465  ;;  %v1606_v14 = vpop.permute.xlu1 %1605 }
 0x223   : > { %v1217_v36 = vadd.f32 %v1211_v30, %v1077_v29 }
 0x224   : > { %v1216_v58 = vadd.f32 %v1210_v35, %v1076_v34  ;;  %v6062_v32 = vpop.f32.mrb[4].mxu1  ;;  %v6064_v55 = vpop.f32.mrb[10].mxu0 }
 0x225   : > { %v6066_v33 = vpop.f32.mrb[5].mxu1  ;;  %v6068_v41 = vpop.f32.mrb[11].mxu0 }
 0x226   : > { %v6072_v50 = vpop.permute.xlu0 %2177 }
 0x22c   : > { %v4786_v25 = vpop.f32.mrb[6].mxu1  ;;  %v4811_v61 = vpop.f32.mrb[12].mxu0 }
 0x22d   : > { %v1349_v45 = vmul.f32 %v4786_v25, %v1330_v43  ;;  %v1295_v54 = vpop.f32.mrb[7].mxu1  ;;  %v1435_v37 = vpop.f32.mrb[13].mxu0  ;;  %v1489_v13 = vmul.f32 %v4811_v61, %v1470_v59 }
 0x22e   : > { %v1348_v46 = vmul.f32 %v1326_v56, %v1295_v54  ;;  %v1488_v28 = vmul.f32 %v1466_v6, %v1435_v37  ;;  %v1754_v54 = vpop.permute.xlu0 %1753 }
 0x22f   : > { %v1355_v0 = vadd.f32 %v1349_v45, %v1215_v15 }
 0x230   : > { %v1354_v27 = vadd.f32 %v1348_v46, %v1214_v26  ;;  %v4789_v29 = vpop.f32.mrb[8].mxu1  ;;  %v4814_v30 = vpop.f32.mrb[14].mxu0 }
 0x231   : > { %v1495_v31 = vadd.f32 %v1489_v13, %v1355_v0  ;;  %v1351_v52 = vmul.f32 %v4789_v29, %v1338_v38  ;;  %v1305_v34 = vpop.f32.mrb[9].mxu1  ;;  %v1445_v35 = vpop.f32.mrb[15].mxu0  ;;  %v1491_v43 = vmul.f32 %v4814_v30, %v1478_v51 }
 0x232   : > { %v1494_v57 = vadd.f32 %v1488_v28, %v1354_v27  ;;  %v1350_v49 = vmul.f32 %v1334_v12, %v1305_v34  ;;  %v1490_v56 = vmul.f32 %v6046_v39, %v1445_v35  ;;  %v1610_v38 = vpop.permute.xlu1 %1609  ;;  %v1746_v46 = vpop.permute.xlu0 %1745 }
 0x233   : > { %v1357_v48 = vadd.f32 %v1351_v52, %v1217_v36 }
 0x234   : > { %v1356_v25 = vadd.f32 %v1350_v49, %v1216_v58  ;;  %v6075_v15 = vpop.f32.mrb[10].mxu1  ;;  %v6077_v59 = vpop.f32.mrb[16].mxu0 }
 0x235   : > { %v1497_v61 = vadd.f32 %v1491_v43, %v1357_v48  ;;  %v6079_v26 = vpop.f32.mrb[11].mxu1  ;;  %v6081_v6 = vpop.f32.mrb[17].mxu0 }
 0x236   : > { %v1496_v45 = vadd.f32 %v1490_v56, %v1356_v25  ;;  %v1750_v37 = vpop.permute.xlu1 %1749 }
 0x23a   : > { %v1886_v27 = vpop.permute.xlu1 %1885 }
 0x23d   : > { %v4836_v12 = vpop.f32.mrb[12].mxu1  ;;  %v4861_v36 = vpop.f32.mrb[18].mxu0 }
 0x23e   : > { %v1629_v51 = vmul.f32 %v4836_v12, %v1610_v38  ;;  %v1575_v49 = vpop.f32.mrb[13].mxu1  ;;  %v1715_v58 = vpop.f32.mrb[19].mxu0  ;;  %v1769_v13 = vmul.f32 %v4861_v36, %v1750_v37 }
 0x23f   : > { %v1628_v39 = vmul.f32 %v1606_v14, %v1575_v49  ;;  %v1768_v48 = vmul.f32 %v1746_v46, %v1715_v58  ;;  %v1890_v49 = vpop.permute.xlu0 %1889 }
 0x240   : > { %v1635_v0 = vadd.f32 %v1629_v51, %v1495_v31  ;;  %v2026_v51 = vpop.permute.xlu1 %2025 }
 0x241   : > { %v1634_v28 = vadd.f32 %v1628_v39, %v1494_v57  ;;  %v4839_v29 = vpop.f32.mrb[14].mxu1  ;;  %v4864_v30 = vpop.f32.mrb[20].mxu0 }
 0x242   : > { %v1775_v52 = vadd.f32 %v1769_v13, %v1635_v0  ;;  %v1631_v34 = vmul.f32 %v4839_v29, %v6050_v16  ;;  %v1585_v35 = vpop.f32.mrb[15].mxu1  ;;  %v1725_v43 = vpop.f32.mrb[21].mxu0  ;;  %v1771_v38 = vmul.f32 %v4864_v30, %v6052_v5 }
 0x243   : > { %v1774_v25 = vadd.f32 %v1768_v48, %v1634_v28  ;;  %v1630_v56 = vmul.f32 %v6048_v53, %v1585_v35  ;;  %v1770_v14 = vmul.f32 %v1754_v54, %v1725_v43 }
 0x244   : > { %v1637_v63 = vadd.f32 %v1631_v34, %v1497_v61  ;;  %v2030_v58 = vpop.permute.xlu1 %2029 }
 0x245   : > { %v1636_v12 = vadd.f32 %v1630_v56, %v1496_v45  ;;  %v6086_v31 = vpop.f32.mrb[16].mxu1  ;;  %v6088_v37 = vpop.f32.mrb[22].mxu0 }
 0x246   : > { %v1777_v57 = vadd.f32 %v1771_v38, %v1637_v63  ;;  %v6090_v46 = vpop.f32.mrb[17].mxu1  ;;  %v6092_v36 = vpop.f32.mrb[23].mxu0 }
 0x247   : > { %v1776_v16 = vadd.f32 %v1770_v14, %v1636_v12 }
 0x24e   : > { %v4886_v39 = vpop.f32.mrb[18].mxu1  ;;  %v4911_v53 = vpop.f32.mrb[24].mxu0 }
 0x24f   : > { %v1909_v61 = vmul.f32 %v4886_v39, %v1890_v49  ;;  %v1855_v0 = vpop.f32.mrb[19].mxu1  ;;  %v1995_v5 = vpop.f32.mrb[25].mxu0  ;;  %v2049_v13 = vmul.f32 %v4911_v53, %v2030_v58 }
 0x250   : > { %v1908_v45 = vmul.f32 %v1886_v27, %v1855_v0  ;;  %v2048_v48 = vmul.f32 %v2026_v51, %v1995_v5  ;;  %v2170_v53 = vpop.permute.xlu1 %2169 }
 0x251   : > { %v1915_v54 = vadd.f32 %v1909_v61, %v1775_v52  ;;  %v2166_v61 = vpop.permute.xlu0 %2165 }
 0x252   : > { %v1914_v28 = vadd.f32 %v1908_v45, %v1774_v25  ;;  %v4889_v29 = vpop.f32.mrb[20].mxu1  ;;  %v4914_v63 = vpop.f32.mrb[26].mxu0 }
 0x253   : > { %v2055_v30 = vadd.f32 %v2049_v13, %v1915_v54  ;;  %v1911_v34 = vmul.f32 %v4889_v29, %v6054_v7  ;;  %v1865_v35 = vpop.f32.mrb[21].mxu1  ;;  %v2005_v43 = vpop.f32.mrb[27].mxu0  ;;  %v2051_v14 = vmul.f32 %v4914_v63, %v6060_v60 }
 0x254   : > { %v2054_v56 = vadd.f32 %v2048_v48, %v1914_v28  ;;  %v1910_v38 = vmul.f32 %v6056_v40, %v1865_v35  ;;  %v2050_v27 = vmul.f32 %v6058_v42, %v2005_v43 }
 0x255   : > { %v1917_v12 = vadd.f32 %v1911_v34, %v1777_v57 }
 0x256   : > { %v1916_v49 = vadd.f32 %v1910_v38, %v1776_v16  ;;  %v6098_v52 = vpop.f32.mrb[22].mxu1  ;;  %v6100_v25 = vpop.f32.mrb[28].mxu0 }
 0x257   : > { %7028 = vst [vmem:[#allocation15_spill] sm:$0xff] %v6100_v25  ;;  %v2057_v51 = vadd.f32 %v2051_v14, %v1917_v12  ;;  %v6102_v58 = vpop.f32.mrb[23].mxu1  ;;  %v6104_v39 = vpop.f32.mrb[29].mxu0  ;;  %v2344_v12 = vld [vmem:[%s6965_s4 + $0x8] sm:$0xff]  ;;  %v2343_v14 = vld [vmem:[%s6965_s4] sm:$0xff] }
 0x258   : > { %v2056_v7 = vadd.f32 %v2050_v27, %v1916_v49  ;;  %v6141_v49 = vld [vmem:[%s6964_s3 + $0x20] sm:$0xff]  ;;  %v6147_v27 = vld [vmem:[%s6964_s3 + $0x28] sm:$0xff] }
 0x25f   : > { %v4936_v0 = vpop.f32.mrb[24].mxu1 }
 0x260   : > { %v2189_v40 = vmul.f32 %v4936_v0, %v2170_v53  ;;  %v2135_v57 = vpop.f32.mrb[25].mxu1  ;;  %v7032_v53 = vmov 5  }
 0x261   : > { %v2188_v5 = vmul.f32 %v2166_v61, %v2135_v57  ;;  %v7033_v61 = vmov 6  }
 0x262   : > { %v6106_v60 = vadd.f32 %v2189_v40, %v2055_v30 }
 0x263   : > { %v6108_v16 = vadd.f32 %v2188_v5, %v2054_v56  ;;  %v4939_v42 = vpop.f32.mrb[26].mxu1 }
 0x264   : > { %v2191_v45 = vmul.f32 %v4939_v42, %v6072_v50  ;;  %v2145_v54 = vpop.f32.mrb[27].mxu1  ;;  %v2201_v43 = vmul.f32 %v6106_v60, %v6106_v60 }
 0x265   : > { %v2190_v13 = vmul.f32 %v6070_v44, %v2145_v54  ;;  %v2200_v50 = vmul.f32 %v6108_v16, %v6108_v16 }
 0x266   : > { %v6112_v28 = vadd.f32 %v2191_v45, %v2057_v51  ;;  %v2205_v38 = vsel %vm930_vm9, %v2201_v43, 0.0  ;;  %v7030_v51 = vmov 2  }
 0x267   : > { %v6114_v48 = vadd.f32 %v2190_v13, %v2056_v7  ;;  %v6116_v29 = vpop.f32.mrb[28].mxu1  ;;  %v2202_v56 = vsel %vm930_vm9, %v2200_v50, 0.0  ;;  %v7031_v7 = vmov 4  }
 0x268   : > { %7029 = vst [vmem:[#allocation16_spill] sm:$0xff] %v6116_v29  ;;  %v6118_v63 = vpop.f32.mrb[29].mxu1  ;;  %v2229_v30 = vmul.f32 %v6112_v28, %v6112_v28 }
 0x269   : > { %v2228_v34 = vmul.f32 %v6114_v48, %v6114_v48 }
 0x26a   : > { %v2233_v35 = vsel %vm930_vm9, %v2229_v30, 0.0 }
 0x26b   : > { %2234 = vadd.xlane.f32.xlu0 %v2233_v35  ;;  %v2230_v44 = vsel %vm930_vm9, %v2228_v34, 0.0 }
 0x26c   : > { %2231 = vadd.xlane.f32.xlu1 %v2230_v44 }
 0x26f   : > { %2203 = vadd.xlane.f32.xlu0 %v2202_v56 }
 0x270   : > { %2206 = vadd.xlane.f32.xlu1 %v2205_v38 }
 0x281   : > { %2352 = vperm.xlu1 %5291, %v2344_v12  }
 0x285   : > { %2347 = vperm.xlu0 %5290, %v2343_v14   ;;  %1066 = vperm.xlu1 %5291, %v6141_v49  }
 0x289   : > { %5292 = vset.pattern.permute.xlu0 %v6999_v62  ;;  %1071 = vperm.xlu1 %5291, %v6147_v27  }
 0x28a   : > { %1201 = vperm.xlu0 %5292, %v6141_v49  }
 0x28d   : > { %5293 = vset.pattern.permute.xlu1 %v6999_v62 }
 0x28e   : > { %1205 = vperm.xlu1 %5293, %v6147_v27   ;;  %5295 = vset.pattern.permute.xlu0 %v7001_v47 }
 0x292   : > { %5294 = vset.pattern.permute.xlu1 %v7030_v51 }
 0x293   : > { %1341 = vperm.xlu1 %5294, %v6141_v49  }
 0x297   : > { %1345 = vperm.xlu1 %5294, %v6147_v27  }
 0x29b   : > { %5296 = vset.pattern.permute.xlu1 %v7001_v47 }
 0x29c   : > { %1485 = vperm.xlu1 %5296, %v6147_v27  }
 0x2a0   : > { %5297 = vset.pattern.permute.xlu1 %v7031_v7 }
 0x2a1   : > { %1621 = vperm.xlu1 %5297, %v6141_v49  }
 0x2a5   : > { %1625 = vperm.xlu1 %5297, %v6147_v27  }
 0x2a9   : > { %5298 = vset.pattern.permute.xlu1 %v7032_v53 }
 0x2aa   : > { %1761 = vperm.xlu1 %5298, %v6141_v49  }
 0x2ae   : > { %1765 = vperm.xlu1 %5298, %v6147_v27  }
 0x2b2   : > { %5299 = vset.pattern.permute.xlu1 %v7033_v61 }
 0x2f8   : > { %v2235_v0 = vpop.xlane.xlu0 %2234 }
 0x2f9   : > { %5352 = vrsqrt.f32 %v2235_v0  ;;  %v2232_v40 = vpop.xlane.xlu1 %2231  ;;  %vm2245_vm10 = vcmp.eq.f32.partialorder %v2235_v0, inf  ;;  %vm2247_vm11 = vcmp.eq.f32.partialorder %v2235_v0, 0.0  ;;  %v2248_v34 = vand.u32 2147483648, %v2235_v0 }
 0x2fa   : > { %5354 = vrsqrt.f32 %v2232_v40  ;;  %vm2238_vm12 = vcmp.eq.f32.partialorder %v2232_v40, inf  ;;  %vm2240_vm13 = vcmp.eq.f32.partialorder %v2232_v40, 0.0  ;;  %v2241_v43 = vand.u32 2147483648, %v2232_v40 }
 0x2fc   : > { %v2204_v57 = vpop.xlane.xlu0 %2203 }
 0x2fd   : > { %5356 = vrsqrt.f32 %v2204_v57  ;;  %v2207_v5 = vpop.xlane.xlu1 %2206  ;;  %vm2210_vm14 = vcmp.eq.f32.partialorder %v2204_v57, inf  ;;  %vm2212_vm15 = vcmp.eq.f32.partialorder %v2204_v57, 0.0  ;;  %v2213_v62 = vand.u32 2147483648, %v2204_v57 }
 0x2fe   : > { %5358 = vrsqrt.f32 %v2207_v5  ;;  %vm2217_vm0 = vcmp.eq.f32.partialorder %v2207_v5, inf  ;;  %v2220_v29 = vand.u32 2147483648, %v2207_v5 }
 0x301   : > { %v6167_v42 = vpop.permute.xlu1 %2352 }
 0x303   : > { %v5353_v45 = vpop.eup %5352 }
 0x304   : > { %v5355_v54 = vpop.eup %5354  ;;  %v2244_v13 = vmul.f32 %v5353_v45, %v2235_v0  ;;  %v6169_v30 = vpop.permute.xlu0 %2347 }
 0x305   : > { %v2237_v35 = vmul.f32 %v5355_v54, %v2232_v40  ;;  %v1067_v50 = vpop.permute.xlu1 %1066 }
 0x306   : > { %v2246_v44 = vsel %vm2245_vm10, %v2235_v0, %v2244_v13  ;;  %v1078_v13 = vmul.f32 %v1067_v50, %v6066_v33  ;;  %vm2219_vm10 = vcmp.eq.f32.partialorder %v2207_v5, 0.0 }
 0x307   : > { %v5357_v56 = vpop.eup %5356  ;;  %v2249_v38 = vsel %vm2247_vm11, %v2248_v34, %v2246_v44  ;;  %v2239_v12 = vsel %vm2238_vm12, %v2232_v40, %v2237_v35  ;;  %vm5161_vm11 = vmpackc.low %vm930_vm9, %vm930_vm9  ;;  %vm5509_vm12 = vmmov 0  }
 0x308   : > { %v5359_v14 = vpop.eup %5358  ;;  %v2251_v7 = vmax.f32 %v2249_v38, 1e-12  ;;  %v2242_v53 = vsel %vm2240_vm13, %v2241_v43, %v2239_v12  ;;  %v2209_v45 = vmul.f32 %v5357_v56, %v2204_v57  ;;  %vm3122_vm13 = vcmask 64512  }
 0x309   : > { %v2250_v47 = vmax.f32 %v2242_v53, 1e-12  ;;  %v2216_v51 = vmul.f32 %v5359_v14, %v2207_v5  ;;  %v1202_v54 = vpop.permute.xlu0 %1201  ;;  %v1072_v25 = vpop.permute.xlu1 %1071 }
 0x30a   : > { %5360 = vrcp.f32 %v2251_v7  ;;  %v2211_v0 = vsel %vm2210_vm14, %v2204_v57, %v2209_v45  ;;  %v1212_v34 = vmul.f32 %v1202_v54, %v6068_v41  ;;  %v1079_v12 = vmul.f32 %v6062_v32, %v1072_v25 }
 0x30b   : > { %5362 = vrcp.f32 %v2250_v47  ;;  %v2214_v40 = vsel %vm2212_vm15, %v2213_v62, %v2211_v0  ;;  %v2218_v35 = vsel %vm2217_vm0, %v2207_v5, %v2216_v51  ;;  %vm3197_vm14 = vcmask 27648  }
 0x30c   : > { %v2222_v44 = vmax.f32 %v2214_v40, 1e-12  ;;  %v2221_v43 = vsel %vm2219_vm10, %v2220_v29, %v2218_v35  ;;  %v1218_v56 = vadd.f32 %v1212_v34, %v1078_v13  ;;  %vm3209_vm15 = vcmask 31744  }
 0x30d   : > { %v1206_v38 = vpop.permute.xlu1 %1205  ;;  %v2223_v7 = vmax.f32 %v2221_v43, 1e-12 }
 0x30e   : > { %5364 = vrcp.f32 %v2222_v44  ;;  %v1213_v14 = vmul.f32 %v6064_v55, %v1206_v38 }
 0x30f   : > { %5366 = vrcp.f32 %v2223_v7 }
 0x310   : > { %v1219_v53 = vadd.f32 %v1213_v14, %v1079_v12 }
 0x312   : > { %v1342_v45 = vpop.permute.xlu1 %1341 }
 0x313   : > { %v1352_v33 = vmul.f32 %v1342_v45, %v6079_v26  ;;  %v7034_v45 = vmov 7  }
 0x314   : > { %v5361_v47 = vpop.eup %5360 }
 0x315   : > { %v5363_v41 = vpop.eup %5362  ;;  %v6177_v62 = vadd.f32 %v1352_v33, %v1218_v56  ;;  %v2255_v51 = vmul.f32 %v5361_v47, %v6112_v28 }
 0x316   : > { %v1346_v29 = vpop.permute.xlu1 %1345  ;;  %v2254_v57 = vmul.f32 %v5363_v41, %v6114_v48 }
 0x317   : > { %v1353_v5 = vmul.f32 %v6075_v15, %v1346_v29 }
 0x318   : > { %v5365_v32 = vpop.eup %5364  ;;  %v5160_v55 = vpack.c.bf16 %v2255_v51, %v2254_v57 }
 0x319   : > { %v1359_v25 = vadd.f32 %v1353_v5, %v1219_v53  ;;  %v2226_v50 = vmul.f32 %v5365_v32, %v6108_v16  ;;  %v5367_v54 = vpop.eup %5366 }
 0x31a   : > { %5162 = vmatprep.subr.msk.bf16.mxu0 %vm5161_vm11, %v5160_v55  ;;  %v2227_v15 = vmul.f32 %v5367_v54, %v6106_v60  ;;  %v2358_v60 = vld [vmem:[%s6966_s5 + $0x8] sm:$0xff] }
 0x31b   : > { %5165 = vmatpush3.bf16.xpose.msk.msra.mxu0 %vm5161_vm11, %v5160_v55  ;;  %4947 = vmatprep.mubr.msk.f32.mxu0 %vm930_vm9, %v2226_v50  ;;  %v1486_v26 = vpop.permute.xlu1 %1485 }
 0x31c   : > { %v1493_v28 = vmul.f32 %v6077_v59, %v1486_v26 }
 0x31e   : > { %v1499_v0 = vadd.f32 %v1493_v28, %v1359_v25 }
 0x320   : > { %v1622_v48 = vpop.permute.xlu1 %1621 }
 0x321   : > { %v1632_v13 = vmul.f32 %v1622_v48, %v6090_v46 }
 0x322   : > { %4948 = vmatmul.mubr.msk.f32.vlgmr.msra.gmra.mrb[30].mxu0 %vm930_vm9, %v2227_v15 }
 0x324   : > { %v1626_v34 = vpop.permute.xlu1 %1625 }
 0x325   : > { %v1633_v40 = vmul.f32 %v6086_v31, %v1626_v34  ;;  %v2357_v31 = vld [vmem:[%s6966_s5] sm:$0xff] }
 0x327   : > { %v1639_v16 = vadd.f32 %v1633_v40, %v1499_v0 }
 0x329   : > { %v1762_v35 = vpop.permute.xlu1 %1761 }
 0x32a   : > { %v1772_v44 = vmul.f32 %v1762_v35, %v6092_v36 }
 0x32d   : > { %v1766_v43 = vpop.permute.xlu1 %1765 }
 0x32e   : > { %v1773_v56 = vmul.f32 %v6088_v37, %v1766_v43 }
 0x330   : > { %v6193_v59 = vadd.f32 %v1773_v56, %v1639_v16 }
 0x3f5   : > { %v4949_v38 = vpop.f32.mrb[30].mxu0 }
 0x3f6   : > { %v2356_v46 = vmul.f32 %v4949_v38, %v6167_v42  ;;  %v2334_v12 = vpop.f32.mrb[31].mxu0  ;;  %v7035_v42 = vmov 8  }
 0x3f7   : > { %v2355_v14 = vmul.f32 %v6169_v30, %v2334_v12  ;;  %v2551_v30 = vlaneseq }
 0x3f8   : > { %v2360_v36 = vadd.f32 %v2358_v60, %v2356_v46 }
 0x3f9   : > { %v2359_v7 = vadd.f32 %v2357_v31, %v2355_v14  ;;  %v6213_v33 = vshrl.u32 %v2551_v30, 7  ;;  %v2762_v47 = vand.u32 127, %v2551_v30 }
 0x3fa   : > { %v2364_v37 = vsel %vm802_vm1, %v2360_v36, -inf }
 0x3fb   : > { %2365 = vmax.xlane.f32.xlu0 %v2364_v37  ;;  %v2361_v53 = vsel %vm802_vm1, %v2359_v7, -inf  ;;  %v6216_v41 = vsub.s32 %v2762_v47, %v6213_v33 }
 0x3fc   : > { %2362 = vmax.xlane.f32.xlu1 %v2361_v53 }
 0x40d   : > { %1901 = vperm.xlu1 %5299, %v6141_v49  }
 0x411   : > { %5301 = vset.pattern.permute.xlu1 %v7034_v45  ;;  %1481 = vperm.xlu0 %5295, %v6141_v49  }
 0x412   : > { %2041 = vperm.xlu1 %5301, %v6141_v49  }
 0x415   : > { %5300 = vset.pattern.permute.xlu0 %v7033_v61 }
 0x416   : > { %2045 = vperm.xlu1 %5301, %v6147_v27  }
 0x41a   : > { %5302 = vset.pattern.permute.xlu1 %v7035_v42  ;;  %v7037_v42 = vld [vmem:[#allocation15_spill] sm:$0xff] }
 0x41b   : > { %2181 = vperm.xlu1 %5302, %v6141_v49  }
 0x488   : > { %v2366_v51 = vpop.xlane.xlu0 %2365 }
 0x489   : > { %v2368_v29 = vsub.f32 %v2360_v36, %v2366_v51  ;;  %v2363_v57 = vpop.xlane.xlu1 %2362  ;;  %v7038_v51 = vld [vmem:[#allocation16_spill] sm:$0xff] }
 0x48a   : > { %v2367_v5 = vsub.f32 %v2359_v7, %v2363_v57 }
 0x48b   : > { %v2371_v32 = vmul.f32 1.442695, %v2368_v29 }
 0x48c   : > { %v2369_v55 = vmul.f32 1.442695, %v2367_v5 }
 0x48d   : > { %5368 = vpow2.f32 %v2371_v32  ;;  %v1902_v61 = vpop.permute.xlu1 %1901 }
 0x48e   : > { %5370 = vpow2.f32 %v2369_v55  ;;  %v1912_v48 = vmul.f32 %v1902_v61, %v6102_v58  ;;  %v7036_v58 = vmov 0  }
 0x490   : > { %v1482_v25 = vpop.permute.xlu0 %1481 }
 0x491   : > { %v1492_v50 = vmul.f32 %v1482_v25, %v6081_v6  ;;  %v2042_v49 = vpop.permute.xlu1 %2041 }
 0x492   : > { %v2052_v35 = vmul.f32 %v2042_v49, %v6104_v39 }
 0x493   : > { %v1498_v26 = vadd.f32 %v1492_v50, %v6177_v62 }
 0x495   : > { %v1638_v28 = vadd.f32 %v1632_v13, %v1498_v26  ;;  %v6220_v54 = vpop.permute.xlu1 %2045 }
 0x496   : > { %v2053_v30 = vmul.f32 %v7037_v42, %v6220_v54 }
 0x497   : > { %v6222_v0 = vpop.eup %5368  ;;  %v1778_v15 = vadd.f32 %v1772_v44, %v1638_v28 }
 0x498   : > { %v6225_v34 = vpop.eup %5370  ;;  %v2376_v40 = vsel %vm802_vm1, %v6222_v0, 0.0 }
 0x499   : > { %v1918_v16 = vadd.f32 %v1912_v48, %v1778_v15  ;;  %2377 = vadd.xlane.f32.xlu0 %v2376_v40  ;;  %v2373_v6 = vsel %vm802_vm1, %v6225_v34, 0.0 }
 0x49a   : > { %2374 = vadd.xlane.f32.xlu1 %v2373_v6  ;;  %v2182_v62 = vpop.permute.xlu1 %2181 }
 0x49b   : > { %v2058_v13 = vadd.f32 %v2052_v35, %v1918_v16  ;;  %v2192_v43 = vmul.f32 %v2182_v62, %v6118_v63 }
 0x49d   : > { %v6233_v56 = vadd.f32 %v2192_v43, %v2058_v13 }
 0x4ab   : > { %2185 = vperm.xlu1 %5302, %v6147_v27  }
 0x4af   : > { %1905 = vperm.xlu0 %5300, %v6147_v27   ;;  %5303 = vset.pattern.permute.xlu1 %v7036_v58 }
 0x4b3   : > { %5309 = vset.pattern.permute.xlu0 %v7036_v58 }
 0x4ce   : > { %710 = vadd.xlane.f32.xlu0 %v5706_v9  ;;  %v2547_v9 = vld [vmem:[%s6968_s7] sm:$0xff] }
 0x4cf   : > { %708 = vadd.xlane.f32.xlu1 %v5703_v8  ;;  %v2553_v8 = vsub.s32 0, %v6213_v33 }
 0x4d2   : > { %716 = vadd.xlane.f32.xlu0 %v5722_v17  ;;  %v2554_v17 = vrot.slane %v2547_v9, %v2553_v8 }
 0x4d3   : > { %724 = vadd.xlane.f32.xlu1 %v5771_v1  ;;  %v2574_v1 = vsub.s32 3, %v6213_v33 }
 0x4d5   : > { %v2575_v60 = vrot.slane %v2547_v9, %v2574_v1 }
 0x4d6   : > { %718 = vadd.xlane.f32.xlu0 %v5725_v18  ;;  %v2548_v18 = vld [vmem:[%s6968_s7 + $0x8] sm:$0xff] }
 0x4d7   : > { %726 = vadd.xlane.f32.xlu1 %v5774_v2  ;;  %v2631_v2 = vrot.slane %v2548_v18, %v2574_v1  ;;  %v2610_v27 = vrot.slane %v2548_v18, %v2553_v8 }
 0x4da   : > { %720 = vadd.xlane.f32.xlu0 %v5728_v19  ;;  %v2567_v19 = vsub.s32 2, %v6213_v33 }
 0x4db   : > { %712 = vadd.xlane.f32.xlu1 %v5709_v10  ;;  %v2560_v10 = vsub.s32 1, %v6213_v33 }
 0x4dc   : > { %v2568_v38 = vrot.slane %v2547_v9, %v2567_v19 }
 0x4dd   : > { %v2561_v39 = vrot.slane %v2547_v9, %v2560_v10 }
 0x4de   : > { %722 = vadd.xlane.f32.xlu0 %v5731_v20  ;;  %v2624_v20 = vrot.slane %v2548_v18, %v2567_v19 }
 0x4df   : > { %728 = vadd.xlane.f32.xlu1 %v5777_v3  ;;  %v2581_v3 = vsub.s32 4, %v6213_v33 }
 0x4e1   : > { %v2582_v46 = vrot.slane %v2547_v9, %v2581_v3 }
 0x4e3   : > { %714 = vadd.xlane.f32.xlu1 %v5712_v11  ;;  %v2617_v11 = vrot.slane %v2548_v18, %v2560_v10 }
 0x4e7   : > { %730 = vadd.xlane.f32.xlu1 %v5780_v4  ;;  %v2638_v4 = vrot.slane %v2548_v18, %v2581_v3 }
 0x4eb   : > { %732 = vadd.xlane.f32.xlu1 %v5791_v21  ;;  %v2588_v21 = vsub.s32 5, %v6213_v33 }
 0x4ed   : > { %v2589_v12 = vrot.slane %v2547_v9, %v2588_v21 }
 0x4ef   : > { %734 = vadd.xlane.f32.xlu1 %v5794_v22  ;;  %v2645_v22 = vrot.slane %v2548_v18, %v2588_v21 }
 0x4f3   : > { %736 = vadd.xlane.f32.xlu1 %v5797_v23  ;;  %v2595_v23 = vsub.s32 6, %v6213_v33 }
 0x4f4   : > { %2556 = vbcast.lane.b32.xlu0 %v2554_v17, 256 }
 0x4f5   : > { %v2652_v63 = vrot.slane %v2548_v18, %v2595_v23  ;;  %v2596_v31 = vrot.slane %v2547_v9, %v2595_v23 }
 0x4f7   : > { %738 = vadd.xlane.f32.xlu1 %v5800_v24  ;;  %v2602_v24 = vsub.s32 7, %v6213_v33 }
 0x4f8   : > { %2619 = vbcast.lane.b32.xlu0 %v2617_v11, 256 }
 0x4f9   : > { %v2659_v44 = vrot.slane %v2548_v18, %v2602_v24  ;;  %v2603_v14 = vrot.slane %v2547_v9, %v2602_v24 }
 0x4fc   : > { %2626 = vbcast.lane.b32.xlu0 %v2624_v20, 256 }
 0x500   : > { %2633 = vbcast.lane.b32.xlu0 %v2631_v2, 256 }
 0x504   : > { %2640 = vbcast.lane.b32.xlu0 %v2638_v4, 256 }
 0x508   : > { %2647 = vbcast.lane.b32.xlu0 %v2645_v22, 256  ;;  %2563 = vbcast.lane.b32.xlu1 %v2561_v39, 256 }
 0x50c   : > { %2654 = vbcast.lane.b32.xlu0 %v2652_v63, 256  ;;  %2612 = vbcast.lane.b32.xlu1 %v2610_v27, 256 }
 0x510   : > { %2661 = vbcast.lane.b32.xlu0 %v2659_v44, 256  ;;  %2570 = vbcast.lane.b32.xlu1 %v2568_v38, 256 }
 0x514   : > { %2577 = vbcast.lane.b32.xlu1 %v2575_v60, 256 }
 0x518   : > { %2584 = vbcast.lane.b32.xlu1 %v2582_v46, 256 }
 0x51c   : > { %2591 = vbcast.lane.b32.xlu1 %v2589_v12, 256 }
 0x520   : > { %2598 = vbcast.lane.b32.xlu1 %v2596_v31, 256 }
 0x524   : > { %2605 = vbcast.lane.b32.xlu1 %v2603_v14, 256 }
 0x526   : > { %v2378_v7 = vpop.xlane.xlu0 %2377 }
 0x527   : > { %v2375_v36 = vpop.xlane.xlu1 %2374 }
 0x528   : > { %5372 = vrcp.f32 %v2375_v36 }
 0x529   : > { %5374 = vrcp.f32 %v2378_v7 }
 0x52b   : > { %v2186_v45 = vpop.permute.xlu1 %2185 }
 0x52c   : > { %v2193_v29 = vmul.f32 %v7038_v51, %v2186_v45 }
 0x52e   : > { %v1906_v37 = vpop.permute.xlu0 %1905 }
 0x52f   : > { %v1913_v53 = vmul.f32 %v6098_v52, %v1906_v37 }
 0x531   : > { %v1919_v33 = vadd.f32 %v1913_v53, %v6193_v59 }
 0x532   : > { %v5373_v47 = vpop.eup %5372 }
 0x533   : > { %v2059_v57 = vadd.f32 %v2053_v30, %v1919_v33  ;;  %v2381_v5 = vmul.f32 %v5373_v47, %v6225_v34  ;;  %v5375_v61 = vpop.eup %5374 }
 0x534   : > { %v2382_v52 = vmul.f32 %v5375_v61, %v6222_v0 }
 0x535   : > { %4954 = vmatprep.mubr.msk.f32.mxu0 %vm802_vm1, %v2381_v5  ;;  %v2199_v32 = vadd.f32 %v2193_v29, %v2059_v57 }
 0x537   : > { %v5166_v55 = vpack.c.bf16 %v2199_v32, %v6233_v56 }
 0x539   : > { %5167 = vmatprep.subr.bf16.mxu0 %v5166_v55 }
 0x53a   : > { %5169 = vmatpush3.bf16.msra.mxu0 %v5166_v55 }
 0x53d   : > { %4955 = vmatmul.mubr.msk.f32.vlgmr.msra.gmra.mrb[32].mxu0 %vm802_vm1, %v2382_v52 }
 0x55b   : > { %v711_v25 = vpop.xlane.xlu0 %710 }
 0x55c   : > { %v709_v59 = vpop.xlane.xlu1 %708  ;;  %v742_v8 = vmul.f32 0.015625, %v711_v25 }
 0x55d   : > { %v741_v9 = vmul.f32 0.015625, %v709_v59 }
 0x55f   : > { %v717_v50 = vpop.xlane.xlu0 %716 }
 0x560   : > { %v725_v49 = vpop.xlane.xlu1 %724  ;;  %v745_v36 = vmul.f32 0.015625, %v717_v50 }
 0x561   : > { %v749_v19 = vmul.f32 0.015625, %v725_v49 }
 0x563   : > { %v719_v28 = vpop.xlane.xlu0 %718 }
 0x564   : > { %v727_v26 = vpop.xlane.xlu1 %726  ;;  %v746_v30 = vmul.f32 0.015625, %v719_v28 }
 0x565   : > { %v750_v20 = vmul.f32 0.015625, %v727_v26 }
 0x567   : > { %v721_v48 = vpop.xlane.xlu0 %720 }
 0x568   : > { %v713_v54 = vpop.xlane.xlu1 %712  ;;  %v747_v32 = vmul.f32 0.015625, %v721_v48  ;;  %v2464_v48 = vld [vmem:[%s6967_s6] sm:$0xff] }
 0x569   : > { %v743_v21 = vmul.f32 0.015625, %v713_v54  ;;  %4961 = vmatprep.mubr.msk.f32.mxu0 %vm802_vm1, %v2464_v48  ;;  %v2925_v48 = vld [vmem:[%s6970_s9 + $0x8] sm:$0xff] }
 0x56b   : > { %v723_v40 = vpop.xlane.xlu0 %722 }
 0x56c   : > { %v729_v15 = vpop.xlane.xlu1 %728  ;;  %v748_v49 = vmul.f32 0.015625, %v723_v40  ;;  %v2465_v40 = vld [vmem:[%s6967_s6 + $0x8] sm:$0xff] }
 0x56d   : > { %v751_v22 = vmul.f32 0.015625, %v729_v15 }
 0x56f   : > { %v2557_v35 = vpop.permute.xlu0 %2556 }
 0x570   : > { %v715_v34 = vpop.xlane.xlu1 %714  ;;  %v2679_v10 = vadd.f32 %v2557_v35, %v741_v9 }
 0x571   : > { %v744_v44 = vmul.f32 0.015625, %v715_v34 }
 0x573   : > { %v2620_v13 = vpop.permute.xlu0 %2619 }
 0x574   : > { %v731_v16 = vpop.xlane.xlu1 %730  ;;  %v2688_v3 = vadd.f32 %v2620_v13, %v750_v20 }
 0x575   : > { %v752_v38 = vmul.f32 0.015625, %v731_v16 }
 0x577   : > { %v2627_v0 = vpop.permute.xlu0 %2626 }
 0x578   : > { %v733_v6 = vpop.xlane.xlu1 %732  ;;  %v2689_v24 = vadd.f32 %v2627_v0, %v751_v22  ;;  %v2695_v0 = vld [vmem:[%s6969_s8] sm:$0xff] }
 0x579   : > { %v753_v7 = vmul.f32 0.015625, %v733_v6 }
 0x57b   : > { %v2634_v11 = vpop.permute.xlu0 %2633 }
 0x57c   : > { %v735_v62 = vpop.xlane.xlu1 %734  ;;  %v2690_v12 = vadd.f32 %v2634_v11, %v752_v38 }
 0x57d   : > { %v754_v33 = vmul.f32 0.015625, %v735_v62 }
 0x57f   : > { %v2641_v39 = vpop.permute.xlu0 %2640 }
 0x580   : > { %v737_v43 = vpop.xlane.xlu1 %736  ;;  %v2691_v45 = vadd.f32 %v2641_v39, %v753_v7 }
 0x581   : > { %v755_v55 = vmul.f32 0.015625, %v737_v43 }
 0x583   : > { %v2648_v14 = vpop.permute.xlu0 %2647 }
 0x584   : > { %v739_v56 = vpop.xlane.xlu1 %738  ;;  %v2692_v57 = vadd.f32 %v2648_v14, %v754_v33 }
 0x585   : > { %v756_v26 = vmul.f32 0.015625, %v739_v56 }
 0x587   : > { %v2655_v51 = vpop.permute.xlu0 %2654 }
 0x588   : > { %v2564_v17 = vpop.permute.xlu1 %2563  ;;  %v2693_v25 = vadd.f32 %v2655_v51, %v755_v55 }
 0x589   : > { %v2680_v18 = vadd.f32 %v2564_v17, %v742_v8 }
 0x58b   : > { %v5304_v1 = vpack.i.bf16 %v2680_v18, %v2679_v10  ;;  %v2662_v50 = vpop.permute.xlu0 %2661 }
 0x58c   : > { %v2613_v2 = vpop.permute.xlu1 %2612  ;;  %v2694_v28 = vadd.f32 %v2662_v50, %v756_v26 }
 0x58d   : > { %v2687_v4 = vadd.f32 %v2613_v2, %v749_v19  ;;  %5305 = vperm.xlu1 %5303, %v5304_v1  }
 0x58f   : > { %v5310_v23 = vpack.i.bf16 %v2688_v3, %v2687_v4 }
 0x590   : > { %v2571_v63 = vpop.permute.xlu1 %2570 }
 0x591   : > { %v2681_v27 = vadd.f32 %v2571_v63, %v743_v21  ;;  %5311 = vperm.xlu0 %5309, %v5310_v23  }
 0x593   : > { %v5315_v60 = vpack.i.bf16 %v2689_v24, %v2681_v27 }
 0x594   : > { %v2578_v46 = vpop.permute.xlu1 %2577 }
 0x595   : > { %v2682_v31 = vadd.f32 %v2578_v46, %v744_v44  ;;  %5316 = vperm.xlu1 %5303, %v5315_v60  }
 0x597   : > { %v5320_v37 = vpack.i.bf16 %v2690_v12, %v2682_v31 }
 0x598   : > { %v2585_v53 = vpop.permute.xlu1 %2584 }
 0x599   : > { %v2683_v42 = vadd.f32 %v2585_v53, %v745_v36  ;;  %5321 = vperm.xlu1 %5303, %v5320_v37  }
 0x59b   : > { %v5325_v47 = vpack.i.bf16 %v2691_v45, %v2683_v42 }
 0x59c   : > { %v2592_v29 = vpop.permute.xlu1 %2591 }
 0x59d   : > { %v2684_v5 = vadd.f32 %v2592_v29, %v746_v30  ;;  %5326 = vperm.xlu0 %5309, %v5325_v47  }
 0x59f   : > { %v5330_v61 = vpack.i.bf16 %v2692_v57, %v2684_v5 }
 0x5a0   : > { %v2599_v52 = vpop.permute.xlu1 %2598 }
 0x5a1   : > { %v2685_v59 = vadd.f32 %v2599_v52, %v747_v32  ;;  %5331 = vperm.xlu1 %5303, %v5330_v61  }
 0x5a3   : > { %v5335_v54 = vpack.i.bf16 %v2693_v25, %v2685_v59 }
 0x5a4   : > { %v2606_v15 = vpop.permute.xlu1 %2605 }
 0x5a5   : > { %v2686_v34 = vadd.f32 %v2606_v15, %v748_v49  ;;  %5336 = vperm.xlu0 %5309, %v5335_v54  }
 0x5a7   : > { %v5340_v16 = vpack.i.bf16 %v2694_v28, %v2686_v34 }
 0x5a9   : > { %5341 = vperm.xlu1 %5303, %v5340_v16   ;;  %v2696_v16 = vld [vmem:[%s6969_s8 + $0x8] sm:$0xff] }
 0x60c   : > { %v5306_v62 = vpop.permute.xlu1 %5305 }
 0x60d   : > { %v5308_v9 = vunpack.i.h.bf16 %v5306_v62  ;;  %v5307_v17 = vunpack.i.l.bf16 %v5306_v62 }
 0x60f   : > { %v2770_v4 = vrot.slane %v5308_v9, %v6216_v41  ;;  %v2766_v21 = vrot.slane %v5307_v17, %v6216_v41  ;;  %v3007_v9 = vld [vmem:[%s6971_s10] sm:$0xff]  ;;  %v3008_v17 = vld [vmem:[%s6971_s10 + $0x8] sm:$0xff] }
 0x610   : > { %v4956_v35 = vpop.f32.mrb[32].mxu0  ;;  %v5312_v56 = vpop.permute.xlu0 %5311 }
 0x611   : > { %v2455_v6 = vpop.f32.mrb[33].mxu0  ;;  %v5314_v10 = vunpack.i.h.bf16 %v5312_v56  ;;  %v5313_v18 = vunpack.i.l.bf16 %v5312_v56  ;;  %v2827_v37 = vsel %vm779_vm2, %v2770_v4, %v2766_v21  ;;  %v3481_v4 = vld [vmem:[%s6973_s12] sm:$0xff]  ;;  %v7039_v21 = vmov 3  }
 0x612   : > { %v5170_v13 = vpack.c.bf16 %v4956_v35, %v2455_v6  ;;  %v7002_v35 = vmov 0.0  }
 0x613   : > { %v2802_v39 = vrot.slane %v5314_v10, %v6216_v41  ;;  %v2798_v63 = vrot.slane %v5313_v18, %v6216_v41  ;;  %4985 = vmatprep.subr.mxu1 %v7002_v35  ;;  %4987 = vmatprep.mubr.msk.f32.mxu1 %vm5509_vm12, %v7002_v35 }
 0x614   : > { %5171 = vmatprep.subr.bf16.mxu0 %v5170_v13  ;;  %v5317_v43 = vpop.permute.xlu1 %5316 }
 0x615   : > { %5173 = vmatpush3.bf16.msra.mxu0 %v5170_v13  ;;  %v5319_v19 = vunpack.i.h.bf16 %v5317_v43  ;;  %v5318_v20 = vunpack.i.l.bf16 %v5317_v43  ;;  %v2834_v53 = vsel %vm779_vm2, %v2802_v39, %v2798_v63 }
 0x617   : > { %v2806_v44 = vrot.slane %v5319_v19, %v6216_v41  ;;  %v2774_v38 = vrot.slane %v5318_v20, %v6216_v41 }
 0x618   : > { %4962 = vmatmul.mubr.msk.f32.vlgmr.msra.gmra.mrb[34].mxu0 %vm802_vm1, %v2465_v40  ;;  %v5322_v8 = vpop.permute.xlu1 %5321 }
 0x619   : > { %4968 = vmatprep.mubr.msk.f32.mxu0 %vm802_vm1, %v2695_v0  ;;  %v5324_v2 = vunpack.i.h.bf16 %v5322_v8  ;;  %v5323_v3 = vunpack.i.l.bf16 %v5322_v8  ;;  %v2835_v30 = vsel %vm781_vm3, %v2806_v44, %v2834_v53  ;;  %v2828_v33 = vsel %vm781_vm3, %v2774_v38, %v2827_v37 }
 0x61b   : > { %v2810_v46 = vrot.slane %v5324_v2, %v6216_v41  ;;  %v2778_v12 = vrot.slane %v5323_v3, %v6216_v41 }
 0x61c   : > { %v5327_v11 = vpop.permute.xlu0 %5326 }
 0x61d   : > { %v5329_v22 = vunpack.i.h.bf16 %v5327_v11  ;;  %v5328_v23 = vunpack.i.l.bf16 %v5327_v11  ;;  %v2829_v57 = vsel %vm783_vm4, %v2778_v12, %v2828_v33  ;;  %v2836_v5 = vsel %vm783_vm4, %v2810_v46, %v2835_v30  ;;  %v3482_v12 = vld [vmem:[%s6973_s12 + $0x8] sm:$0xff]  ;;  %v3479_v33 = vld [vmem:[%s6972_s11] sm:$0xff] }
 0x61f   : > { %v2814_v36 = vrot.slane %v5329_v22, %v6216_v41  ;;  %v2782_v7 = vrot.slane %v5328_v23, %v6216_v41 }
 0x620   : > { %v5332_v1 = vpop.permute.xlu1 %5331 }
 0x621   : > { %v5334_v24 = vunpack.i.h.bf16 %v5332_v1  ;;  %v5333_v27 = vunpack.i.l.bf16 %v5332_v1  ;;  %v2830_v61 = vsel %vm785_vm5, %v2782_v7, %v2829_v57  ;;  %v2837_v52 = vsel %vm785_vm5, %v2814_v36, %v2836_v5 }
 0x622   : > { %v7040_v36 = vmov 1  }
 0x623   : > { %v2818_v45 = vrot.slane %v5334_v24, %v6216_v41  ;;  %v2786_v42 = vrot.slane %v5333_v27, %v6216_v41 }
 0x624   : > { %v5337_v60 = vpop.permute.xlu0 %5336 }
 0x625   : > { %v5339_v31 = vunpack.i.h.bf16 %v5337_v60  ;;  %v5338_v14 = vunpack.i.l.bf16 %v5337_v60  ;;  %v2831_v25 = vsel %vm787_vm6, %v2786_v42, %v2830_v61  ;;  %v2838_v59 = vsel %vm787_vm6, %v2818_v45, %v2837_v52 }
 0x627   : > { %v2822_v47 = vrot.slane %v5339_v31, %v6216_v41  ;;  %v2790_v51 = vrot.slane %v5338_v14, %v6216_v41 }
 0x628   : > { %v5342_v29 = vpop.permute.xlu1 %5341 }
 0x629   : > { %v5344_v32 = vunpack.i.h.bf16 %v5342_v29  ;;  %v5343_v55 = vunpack.i.l.bf16 %v5342_v29  ;;  %v2832_v26 = vsel %vm789_vm7, %v2790_v51, %v2831_v25  ;;  %v2839_v54 = vsel %vm789_vm7, %v2822_v47, %v2838_v59 }
 0x62b   : > { %v2826_v50 = vrot.slane %v5344_v32, %v6216_v41  ;;  %v2794_v49 = vrot.slane %v5343_v55, %v6216_v41  ;;  %v2924_v41 = vld [vmem:[%s6970_s9] sm:$0xff]  ;;  %v3480_v32 = vld [vmem:[%s6972_s11 + $0x8] sm:$0xff] }
 0x62d   : > { %v2833_v15 = vsel %vm791_vm8, %v2794_v49, %v2832_v26  ;;  %v2840_v28 = vsel %vm791_vm8, %v2826_v50, %v2839_v54  ;;  %v7041_v49 = vmov 2  }
 0x62e   : > { %v5174_v34 = vpack.c.bf16 %v2840_v28, %v2833_v15 }
 0x630   : > { %5175 = vmatprep.subr.bf16.mxu0 %v5174_v34 }
 0x631   : > { %5177 = vmatpush3.bf16.msra.mxu0 %v5174_v34 }
 0x632   : > { %5179 = vmatprep.subr.bf16.mxu0 %v5174_v34 }
 0x634   : > { %4969 = vmatmul.mubr.msk.f32.vlgmr.msra.gmra.mrb[36].mxu0 %vm802_vm1, %v2696_v16 }
 0x635   : > { %5181 = vmatpush3.bf16.msra.mxu0 %v5174_v34  ;;  %4975 = vmatprep.mubr.msk.f32.mxu0 %vm802_vm1, %v2924_v41 }
 0x636   : > { %5183 = vmatprep.subr.bf16.mxu0 %v5174_v34 }
 0x638   : > { %4976 = vmatmul.mubr.msk.f32.vlgmr.msra.gmra.mrb[38].mxu0 %vm802_vm1, %v2925_v48 }
 0x639   : > { %5185 = vmatpush3.bf16.msra.mxu0 %v5174_v34  ;;  %4982 = vmatprep.mubr.msk.f32.mxu0 %vm802_vm1, %v3007_v9 }
 0x63a   : > { %4990 = vmatprep.subr.mxu0 %v7002_v35 }
 0x63c   : > { %4983 = vmatmul.mubr.msk.f32.vlgmr.msra.gmra.mrb[40].mxu0 %vm802_vm1, %v3008_v17 }
 0x63d   : > { %4992 = vmatprep.mubr.msk.f32.mxu0 %vm5509_vm12, %v7002_v35 }
 0x6eb   : > { %v6337_v6 = vpop.f32.mrb[34].mxu0 }
 0x6ec   : > { %v6339_v62 = vpop.f32.mrb[35].mxu0  ;;  %v6385_v26 = vrot.slane %v6337_v6, 6  ;;  %v6388_v54 = vrot.slane %v6337_v6, 7  ;;  %v6397_v34 = vrot.slane %v6337_v6, 1  ;;  %v6400_v16 = vrot.slane %v6337_v6, 2 }
 0x6ed   : > { %v6391_v15 = vrot.slane %v6339_v62, 6  ;;  %v6394_v28 = vrot.slane %v6339_v62, 7  ;;  %v6406_v41 = vrot.slane %v6337_v6, 4  ;;  %v6409_v48 = vrot.slane %v6337_v6, 5 }
 0x707   : > { %v4970_v13 = vpop.f32.mrb[36].mxu0 }
 0x708   : > { %v2915_v40 = vpop.f32.mrb[37].mxu0  ;;  %3286 = vxpose.xlu1.b32.start.end [1/1] (short) (narrow) %v4970_v13, 8  ;;  %v6412_v13 = vrot.slane %v6339_v62, 1 }
 0x709   : > { %3090 = vxpose.xlu0.b32.start.end [1/1] (short) (narrow) %v2915_v40, 8 }
 0x70b   : > { %v4977_v43 = vpop.f32.mrb[38].mxu0 }
 0x70c   : > { %v2998_v0 = vpop.f32.mrb[39].mxu0 }
 0x70d   : > { %4986 = vmatpush3.msra.mxu1 %v2998_v0  ;;  %v6418_v0 = vrot.slane %v6339_v62, 3 }
 0x70e   : > { %4995 = vmatprep.subr.mxu1 %v7002_v35 }
 0x70f   : > { %v4984_v31 = vpop.f32.mrb[40].mxu0 }
 0x710   : > { %v3081_v14 = vpop.f32.mrb[41].mxu0 }
 0x788   : > { %v3302_v8 = vpop.trf.xlu1 }
 0x789   : > { %v3106_v56 = vpop.trf.xlu0 }
 0x78a   : > { %4988 = vmatmul.mubr.msk.f32.vlgmr.msra.gmra.mrb[30].mxu1 %vm3122_vm13, %v3106_v56  ;;  %v6421_v56 = vrot.slane %v6339_v62, 4 }
 0x78b   : > { %4996 = vmatpush3.msra.mxu1 %v4977_v43  ;;  %4997 = vmatprep.mubr.msk.f32.mxu1 %vm5509_vm12, %v7002_v35  ;;  %v6415_v43 = vrot.slane %v6339_v62, 2 }
 0x78e   : > { %4998 = vmatmul.mubr.msk.f32.vlgmr.msra.gmra.mrb[32].mxu1 %vm3122_vm13, %v3302_v8  ;;  %v6424_v8 = vrot.slane %v6339_v62, 5 }
 0x78f   : > { %5009 = vmatprep.mubr.msk.f32.mxu1 %vm802_vm1, %v3479_v33 }
 0x85d   : > { %v3192_v10 = vpop.f32.mrb[30].mxu1 }
 0x85e   : > { %v3196_v18 = vmul.f32 0.35355338, %v3192_v10  ;;  %v4989_v11 = vpop.f32.mrb[31].mxu1 }
 0x860   : > { %v3198_v19 = vsel %vm3197_vm14, %v3196_v18, -inf }
 0x861   : > { %3199 = vmax.xlane.f32.xlu0 %v3198_v19  ;;  %v3387_v20 = vpop.f32.mrb[32].mxu1 }
 0x862   : > { %v3391_v1 = vmul.f32 0.35355338, %v3387_v20  ;;  %v4999_v2 = vpop.f32.mrb[33].mxu1 }
 0x864   : > { %v3392_v3 = vsel %vm3197_vm14, %v3391_v1, -inf }
 0x865   : > { %3393 = vmax.xlane.f32.xlu1 %v3392_v3 }
 0x876   : > { %3485 = vperm.xlu1 %5303, %v3481_v4   ;;  %v6438_v4 = vld [vmem:[%s5692_s27 + $0x20] sm:$0xf] }
 0x87a   : > { %5345 = vset.pattern.permute.xlu1 %v7039_v21 }
 0x8ee   : > { %v3200_v22 = vpop.xlane.xlu0 %3199 }
 0x8ef   : > { %v3201_v23 = vsub.f32 %v3196_v18, %v3200_v22  ;;  %v6442_v22 = vld [vmem:[%s5692_s27 + $0x24] sm:$0xf] }
 0x8f1   : > { %v3202_v39 = vmul.f32 1.442695, %v3201_v23 }
 0x8f2   : > { %v3394_v63 = vpop.xlane.xlu1 %3393 }
 0x8f3   : > { %5376 = vpow2.f32 %v3202_v39  ;;  %v3395_v24 = vsub.f32 %v3391_v1, %v3394_v63  ;;  %v6431_v1 = vld [vmem:[%s5692_s27 + $0x4] sm:$0xf] }
 0x8f5   : > { %v3396_v27 = vmul.f32 1.442695, %v3395_v24  ;;  %v6446_v24 = vld [vmem:[%s5692_s27] sm:$0xf] }
 0x8f6   : > { %v3486_v52 = vpop.permute.xlu1 %3485 }
 0x8f7   : > { %5378 = vpow2.f32 %v3396_v27 }
 0x8fd   : > { %v5377_v44 = vpop.eup %5376 }
 0x8fe   : > { %v3204_v38 = vsel %vm3197_vm14, %v5377_v44, 0.0 }
 0x8ff   : > { %3205 = vadd.xlane.f32.xlu0 %v3204_v38  ;;  %v6454_v38 = vld [vmem:[%s5692_s27 + $0x28] sm:$0xf] }
 0x901   : > { %v5379_v60 = vpop.eup %5378 }
 0x902   : > { %v3398_v46 = vsel %vm3197_vm14, %v5379_v60, 0.0 }
 0x903   : > { %3399 = vadd.xlane.f32.xlu0 %v3398_v46  ;;  %v6458_v46 = vld [vmem:[%s5692_s27 + $0x2c] sm:$0xf] }
 0x919   : > { %3490 = vperm.xlu0 %5309, %v3482_v12  }
 0x91d   : > { %5346 = vset.pattern.permute.xlu0 %v7040_v36 }
 0x98c   : > { %v3206_v7 = vpop.xlane.xlu0 %3205 }
 0x98d   : > { %5380 = vrcp.f32 %v3206_v7 }
 0x990   : > { %v3400_v37 = vpop.xlane.xlu0 %3399 }
 0x991   : > { %5382 = vrcp.f32 %v3400_v37  ;;  %v6558_v37 = vld [vmem:[%s5692_s27 + $0x10] sm:$0xf] }
 0x997   : > { %v5381_v53 = vpop.eup %5380 }
 0x998   : > { %v3208_v45 = vmul.f32 %v5381_v53, %v5377_v44  ;;  %v3491_v55 = vpop.permute.xlu0 %3490  ;;  %v6469_v53 = vld [vmem:[%s5692_s27 + $0x34] sm:$0xf] }
 0x99a   : > { %4991 = vmatpush3.xpose.msk.msra.mxu0 %vm3209_vm15, %v3208_v45 }
 0x99b   : > { %v5383_v42 = vpop.eup %5382  ;;  %5000 = vmatprep.subr.mxu0 %v7002_v35 }
 0x99c   : > { %v3402_v30 = vmul.f32 %v5383_v42, %v5379_v60 }
 0x99d   : > { %4993 = vmatmul.mubr.msk.f32.vlgmr.msra.gmra.mrb[42].mxu0 %vm3209_vm15, %v3081_v14 }
 0x99e   : > { %5001 = vmatpush3.xpose.msk.msra.mxu0 %vm3209_vm15, %v3402_v30  ;;  %5002 = vmatprep.mubr.msk.f32.mxu0 %vm5509_vm12, %v7002_v35  ;;  %v6475_v30 = vld [vmem:[%s5692_s27 + $0x38] sm:$0xf] }
 0x9a1   : > { %5003 = vmatmul.mubr.msk.f32.vlgmr.msra.gmra.mrb[44].mxu0 %vm3209_vm15, %v4984_v31  ;;  %v6462_v31 = vld [vmem:[%s5692_s27 + $0x30] sm:$0xf] }
 0x9a2   : > { %4169 = vmatprep.mubr.f32.mxu0 %v7002_v35 }
 0xa70   : > { %v3282_v47 = vpop.f32.mrb[42].mxu0 }
 0xa71   : > { %v4994_v51 = vpop.f32.mrb[43].mxu0 }
 0xa74   : > { %v3475_v29 = vpop.f32.mrb[44].mxu0 }
 0xa75   : > { %v5186_v57 = vpack.c.bf16 %v3475_v29, %v3282_v47  ;;  %v5004_v5 = vpop.f32.mrb[45].mxu0  ;;  %v6479_v47 = vld [vmem:[%s5692_s27 + $0x3c] sm:$0xf] }
 0xa77   : > { %5187 = vmatprep.subr.bf16.mxu1 %v5186_v57 }
 0xa78   : > { %5189 = vmatpush3.bf16.msra.mxu1 %v5186_v57 }
 0xa7b   : > { %5010 = vmatmul.mubr.msk.f32.vlgmr.msra.gmra.mrb[34].mxu1 %vm802_vm1, %v3480_v32 }
 0xa7c   : > { %4294 = vmatprep.mubr.f32.mxu1 %v7002_v35 }
 0xb4e   : > { %v5011_v61 = vpop.f32.mrb[34].mxu1 }
 0xb4f   : > { %v3571_v25 = vadd.f32 %v5011_v61, %v3491_v55  ;;  %v3565_v59 = vpop.f32.mrb[35].mxu1 }
 0xb50   : > { %v3566_v50 = vadd.f32 %v3565_v59, %v3486_v52 }
 0xb51   : > { %3965 = vperm.xlu1 %5345, %v3571_v25  }
 0xb52   : > { %3725 = vperm.xlu0 %5346, %v3566_v50  }
 0xb55   : > { %3962 = vperm.xlu1 %5345, %v3566_v50  }
 0xb56   : > { %5348 = vset.pattern.permute.xlu0 %v7041_v49 }
 0xb57   : > { %3849 = vperm.xlu0 %5348, %v3571_v25  }
 0xb59   : > { %5347 = vset.pattern.permute.xlu1 %v7040_v36 }
 0xb5a   : > { %3728 = vperm.xlu1 %5347, %v3571_v25  }
 0xb5b   : > { %5351 = vset.pattern.permute.xlu0 %v7036_v58 }
 0xb5e   : > { %5349 = vset.pattern.permute.xlu1 %v7041_v49 }
 0xb5f   : > { %3846 = vperm.xlu1 %5349, %v3566_v50  }
 0xb63   : > { %5350 = vset.pattern.permute.xlu1 %v7036_v58  ;;  %v6403_v58 = vrot.slane %v6337_v6, 3 }
 0xb64   : > { %3576 = vperm.xlu1 %5350, %v3566_v50  }
 0xb68   : > { %3580 = vperm.xlu1 %5350, %v3571_v25  }
 0xbd0   : > { %v3966_v40 = vpop.permute.xlu1 %3965 }
 0xbd1   : > { %v3974_v9 = vrot.slane %v3966_v40, 5  ;;  %v3975_v17 = vrot.slane %v3966_v40, 6  ;;  %v3976_v10 = vrot.slane %v3966_v40, 7  ;;  %v6426_v18 = vpop.permute.xlu0 %3725  ;;  %v3977_v11 = vrot.slane %v3966_v40, 1 }
 0xbd2   : > { %v3730_v19 = vrot.slane %v6426_v18, 7  ;;  %v6435_v2 = vadd.f32 %v6431_v1, %v6426_v18  ;;  %v3978_v3 = vrot.slane %v3966_v40, 2  ;;  %v3979_v39 = vrot.slane %v3966_v40, 3 }
 0xbd3   : > { %v4005_v21 = vadd.f32 %v6438_v4, %v3974_v9  ;;  %v4006_v23 = vadd.f32 %v6442_v22, %v3975_v17  ;;  %v3980_v63 = vrot.slane %v3966_v40, 4  ;;  %v4007_v60 = vadd.f32 %v6454_v38, %v3976_v10 }
 0xbd4   : > { %v6449_v27 = vadd.f32 %v6446_v24, %v3730_v19  ;;  %v6451_v44 = vpop.permute.xlu1 %3962  ;;  %v4008_v12 = vadd.f32 %v6458_v46, %v3966_v40  ;;  %v4009_v14 = vadd.f32 %v6462_v31, %v3977_v11  ;;  %v4010_v45 = vadd.f32 %v6469_v53, %v3978_v3 }
 0xbd5   : > { %v3967_v36 = vrot.slane %v6451_v44, 5  ;;  %v3968_v7 = vrot.slane %v6451_v44, 6  ;;  %v4011_v33 = vadd.f32 %v6475_v30, %v3979_v39  ;;  %v4012_v51 = vadd.f32 %v6479_v47, %v3980_v63 }
 0xbd6   : > { %v6472_v42 = vpop.permute.xlu0 %3849  ;;  %v4021_v29 = vadd.f32 %v4005_v21, %v6409_v48  ;;  %v4022_v57 = vadd.f32 %v4006_v23, %v6385_v26  ;;  %v4023_v10 = vadd.f32 %v4007_v60, %v6388_v54  ;;  %v6544_v60 = vld [vmem:[%s5692_s27 + $0x8] sm:$0xf]  ;;  %v6552_v21 = vld [vmem:[%s5692_s27 + $0xc] sm:$0xf] }
 0xbd7   : > { %v6485_v5 = vadd.f32 %v6446_v24, %v3967_v36  ;;  %v6488_v32 = vadd.f32 %v6431_v1, %v3968_v7  ;;  %v3858_v55 = vrot.slane %v6472_v42, 6  ;;  %v3859_v61 = vrot.slane %v6472_v42, 7 }
 0xbd8   : > { %v3860_v52 = vrot.slane %v6472_v42, 1  ;;  %v3861_v25 = vrot.slane %v6472_v42, 2  ;;  %v3891_v9 = vadd.f32 %v6454_v38, %v6472_v42  ;;  %v4059_v35 = vrot.slane %v4021_v29, 3 }
 0xbd9   : > { %v3889_v49 = vadd.f32 %v6438_v4, %v3858_v55  ;;  %v3890_v40 = vadd.f32 %v6442_v22, %v3859_v61  ;;  %v6500_v17 = vpop.permute.xlu1 %3728  ;;  %v4024_v55 = vadd.f32 %v6337_v6, %v4008_v12  ;;  %v4025_v61 = vadd.f32 %v4009_v14, %v6397_v34 }
 0xbda   : > { %v6504_v11 = vadd.f32 %v6458_v46, %v3860_v52  ;;  %v6507_v19 = vadd.f32 %v6462_v31, %v3861_v25  ;;  %v3737_v3 = vrot.slane %v6500_v17, 7  ;;  %v6518_v63 = vadd.f32 %v6337_v6, %v3891_v9 }
 0xbdb   : > { %v6512_v23 = vadd.f32 %v3889_v49, %v6385_v26  ;;  %v6515_v39 = vadd.f32 %v3890_v40, %v6388_v54  ;;  %v6526_v7 = vadd.f32 %v6442_v22, %v6500_v17  ;;  %v4026_v49 = vadd.f32 %v4010_v45, %v6400_v16 }
 0xbdc   : > { %7042 = vst [vmem:[#allocation15_spill] sm:$0xff] %v6518_v63  ;;  %v6522_v36 = vadd.f32 %v6438_v4, %v3737_v3  ;;  %v4027_v40 = vadd.f32 %v4011_v33, %v6403_v58  ;;  %v4028_v3 = vadd.f32 %v4012_v51, %v6406_v41  ;;  %v4060_v50 = vrot.slane %v4022_v57, 2 }
 0xbdd   : > { %v4062_v12 = vrot.slane %v4023_v10, 1 }
 0xbde   : > { %v6534_v9 = vpop.permute.xlu1 %3846  ;;  %v4061_v29 = vsel %vm779_vm2, %v4060_v50, %v4059_v35  ;;  %v4065_v35 = vrot.slane %v4025_v61, 7  ;;  %v4067_v50 = vrot.slane %v4026_v49, 6  ;;  %v6627_v61 = vld [vmem:[%s5692_s27 + $0x1c] sm:$0xf] }
 0xbdf   : > { %7043 = vst [vmem:[#allocation16_spill] sm:$0xff] %v6534_v9  ;;  %v3851_v14 = vrot.slane %v6534_v9, 6  ;;  %v3852_v59 = vrot.slane %v6534_v9, 7  ;;  %v3853_v52 = vrot.slane %v6534_v9, 1  ;;  %v3854_v25 = vrot.slane %v6534_v9, 2 }
 0xbe0   : > { %v3883_v51 = vadd.f32 %v6544_v60, %v6534_v9  ;;  %v4063_v9 = vsel %vm781_vm3, %v4062_v12, %v4061_v29 }
 0xbe1   : > { %v3881_v57 = vadd.f32 %v6446_v24, %v3851_v14  ;;  %v3882_v10 = vadd.f32 %v6431_v1, %v3852_v59  ;;  %v6555_v20 = vadd.f32 %v6552_v21, %v3853_v52  ;;  %v6561_v33 = vadd.f32 %v6558_v37, %v3854_v25 }
 0xbe2   : > { %v6564_v45 = vadd.f32 %v3883_v51, %v6339_v62  ;;  %v4064_v52 = vsel %vm783_vm4, %v4024_v55, %v4063_v9  ;;  %v6623_v9 = vld [vmem:[%s5692_s27 + $0x18] sm:$0xf] }
 0xbe3   : > { %7044 = vst [vmem:[#allocation17_spill] sm:$0xff] %v6555_v20  ;;  %7045 = vst [vmem:[#allocation18_spill] sm:$0xff] %v6561_v33  ;;  %v6568_v14 = vadd.f32 %v3881_v57, %v6391_v15  ;;  %v6571_v59 = vadd.f32 %v3882_v10, %v6394_v28  ;;  %v4069_v20 = vrot.slane %v4027_v40, 5  ;;  %v6574_v63 = vpop.permute.xlu1 %3576  ;;  %v4066_v25 = vsel %vm785_vm5, %v4065_v35, %v4064_v52 }
 0xbe4   : > { %7046 = vst [vmem:[#allocation19_spill] sm:$0xff] %v6564_v45  ;;  %7049 = vst [vmem:[#allocation22_spill] sm:$0xff] %v6574_v63  ;;  %v4071_v33 = vrot.slane %v4028_v3, 4  ;;  %v3582_v51 = vrot.slane %v6574_v63, 1  ;;  %v3583_v12 = vrot.slane %v6574_v63, 2  ;;  %v4068_v29 = vsel %vm787_vm6, %v4067_v50, %v4066_v25 }
 0xbe5   : > { %7047 = vst [vmem:[#allocation20_spill] sm:$0xff] %v6568_v14  ;;  %7048 = vst [vmem:[#allocation21_spill] sm:$0xff] %v6571_v59  ;;  %v3584_v57 = vrot.slane %v6574_v63, 3  ;;  %v4070_v55 = vsel %vm789_vm7, %v4069_v20, %v4068_v29  ;;  %v3585_v40 = vrot.slane %v6574_v63, 4  ;;  %v3612_v35 = vadd.f32 %v6446_v24, %v6574_v63 }
 0xbe6   : > { %v4072_v10 = vsel %vm791_vm8, %v4071_v33, %v4070_v55  ;;  %v6591_v52 = vadd.f32 %v6431_v1, %v3582_v51  ;;  %v6594_v50 = vadd.f32 %v6544_v60, %v3583_v12  ;;  %v3970_v25 = vrot.slane %v6451_v44, 1 }
 0xbe7   : > { %4075 = vrot.lane.b32.xlu1 %v4072_v10, %s5510_s23  ;;  %v6598_v20 = vadd.f32 %v6552_v21, %v3584_v57  ;;  %v6601_v33 = vadd.f32 %v6558_v37, %v3585_v40  ;;  %v3971_v24 = vrot.slane %v6451_v44, 2  ;;  %v6606_v1 = vadd.f32 %v3612_v35, %v6339_v62  ;;  %v6617_v10 = vld [vmem:[%s5692_s27 + $0x14] sm:$0xf]  ;;  %s5511_s27 = smov [#allocation6]  }
 0xbe8   : > { %7050 = vst [vmem:[#allocation23_spill] sm:$0xff] %v6591_v52  ;;  %7051 = vst [vmem:[#allocation24_spill] sm:$0xff] %v6594_v50  ;;  %v3972_v51 = vrot.slane %v6451_v44, 3  ;;  %v3973_v12 = vrot.slane %v6451_v44, 4  ;;  %v7055_v29 = vrot.slane %v6451_v44, 7  ;;  %v4000_v57 = vadd.f32 %v6552_v21, %v6451_v44  ;;  %s5432_s26 = sshll.u32 %s5511_s27, 4  ;;  %s5433_s26 = int_to_ptr.vmem [resolvable:$false] %s5432_s26 }
 0xbe9   : > { %7052 = vst [vmem:[#allocation25_spill] sm:$0xff] %v6598_v20  ;;  %7053 = vst [vmem:[#allocation26_spill] sm:$0xff] %v6601_v33  ;;  %v4001_v40 = vadd.f32 %v6558_v37, %v3970_v25  ;;  %v4002_v3 = vadd.f32 %v6617_v10, %v3971_v24  ;;  %v4013_v35 = vadd.f32 %v6485_v5, %v6424_v8  ;;  %s5434_s18 = scalar_lea.vmem %s5433_s26, 2048  ;;  %p5435_p2 = scmp.lt.s32.totalorder %s6909_s19, %s5433_s26 }
 0xbea   : > { %7054 = vst [vmem:[#allocation27_spill] sm:$0xff] %v6606_v1  ;;  %v3999_v55 = vadd.f32 %v6544_v60, %v7055_v29  ;;  %v4003_v49 = vadd.f32 %v6623_v9, %v3972_v51  ;;  %v4004_v29 = vadd.f32 %v6627_v61, %v3973_v12  ;;  %v4014_v44 = vadd.f32 %v6488_v32, %v6391_v15  ;;  %v6633_v1 = vpop.permute.xlu1 %3580  ;;  %p5436_p3 = scmp.lt.s32.totalorder %s5434_s18, %s5428_s28 }
 0xbeb   : > { %v4016_v24 = vadd.f32 %v4000_v57, %v6339_v62  ;;  %v4017_v33 = vadd.f32 %v4001_v40, %v6412_v13  ;;  %v4018_v5 = vadd.f32 %v4002_v3, %v6415_v43  ;;  %v4045_v20 = vrot.slane %v4013_v35, 3 }
 0xbec   : > { %v4015_v25 = vadd.f32 %v3999_v55, %v6394_v28  ;;  %v4019_v51 = vadd.f32 %v4003_v49, %v6418_v0  ;;  %v4020_v50 = vadd.f32 %v4004_v29, %v6421_v56  ;;  %v4046_v52 = vrot.slane %v4014_v44, 2  ;;  %p5437_p4 = por %p5436_p3, %p5435_p2 }
 0xbed   : > { %v4051_v63 = vrot.slane %v4017_v33, 7  ;;  %v4053_v45 = vrot.slane %v4018_v5, 6  ;;  %v3589_v32 = vrot.slane %v6633_v1, 1  ;;  %v3590_v55 = vrot.slane %v6633_v1, 2 }
 0xbee   : > { %v4048_v12 = vrot.slane %v4015_v25, 1  ;;  %v4047_v59 = vsel %vm779_vm2, %v4046_v52, %v4045_v20  ;;  %v4055_v57 = vrot.slane %v4019_v51, 5  ;;  %v4057_v14 = vrot.slane %v4020_v50, 4  ;;  %p5438_p7 = pnand %p5437_p4, %p5431_p12 }
 0xbef   : > { %v3591_v40 = vrot.slane %v6633_v1, 3  ;;  %v3592_v49 = vrot.slane %v6633_v1, 4  ;;  %v3593_v35 = vrot.slane %v6633_v1, 5  ;;  %v3594_v29 = vrot.slane %v6633_v1, 6 }
 0xbf0   : > { %v4049_v3 = vsel %vm781_vm3, %v4048_v12, %v4047_v59  ;;  %v3620_v44 = vadd.f32 %v6438_v4, %v6633_v1  ;;  %v3621_v25 = vadd.f32 %v6442_v22, %v3589_v32  ;;  %v3622_v52 = vadd.f32 %v6454_v38, %v3590_v55 }
 0xbf1   : > { %v4050_v33 = vsel %vm783_vm4, %v4016_v24, %v4049_v3  ;;  %v6655_v20 = vadd.f32 %v6458_v46, %v3591_v40  ;;  %v6658_v59 = vadd.f32 %v6462_v31, %v3592_v49  ;;  %v3732_v5 = vrot.slane %v6426_v18, 2 }
 0xbf2   : > { %v4052_v50 = vsel %vm785_vm5, %v4051_v63, %v4050_v33  ;;  %v6663_v24 = vadd.f32 %v6337_v6, %v3620_v44  ;;  %v6666_v4 = vadd.f32 %v6397_v34, %v3621_v25  ;;  %v6669_v22 = vadd.f32 %v6400_v16, %v3622_v52 }
 0xbf3   : > { %v4054_v51 = vsel %vm787_vm6, %v4053_v45, %v4052_v50  ;;  %v3733_v12 = vrot.slane %v6426_v18, 3  ;;  %v3734_v32 = vrot.slane %v6426_v18, 4  ;;  %v3735_v55 = vrot.slane %v6426_v18, 5 }
 0xbf4   : > { %v4056_v63 = vsel %vm789_vm7, %v4055_v57, %v4054_v51  ;;  %v3706_v45 = vrot.slane %v6666_v4, 7  ;;  %v3708_v3 = vrot.slane %v6669_v22, 6  ;;  %v3736_v49 = vrot.slane %v6426_v18, 6 }
 0xbf5   : > { %v4058_v40 = vsel %vm791_vm8, %v4057_v14, %v4056_v63  ;;  %v7056_v33 = vrot.slane %v6426_v18, 1  ;;  %v3763_v44 = vadd.f32 %v6552_v21, %v3732_v5  ;;  %v3764_v25 = vadd.f32 %v6558_v37, %v3733_v12 }
 0xbf6   : > { %4073 = vrot.lane.b32.xlu0 %v4058_v40, %s5510_s23  ;;  %v3765_v52 = vadd.f32 %v6617_v10, %v3734_v32  ;;  %v3766_v14 = vadd.f32 %v6623_v9, %v3735_v55  ;;  %v3767_v50 = vadd.f32 %v6627_v61, %v3736_v49  ;;  %v3776_v51 = vadd.f32 %v6449_v27, %v6394_v28 }
 0xbf7   : > { %v3762_v57 = vadd.f32 %v6544_v60, %v7056_v33  ;;  %v3777_v63 = vadd.f32 %v6435_v2, %v6339_v62  ;;  %v3779_v60 = vadd.f32 %v3763_v44, %v6415_v43  ;;  %v3780_v21 = vadd.f32 %v3764_v25, %v6418_v0 }
 0xbf8   : > { %v3781_v37 = vadd.f32 %v3765_v52, %v6421_v56  ;;  %v3782_v5 = vadd.f32 %v3766_v14, %v6424_v8  ;;  %v3783_v12 = vadd.f32 %v3767_v50, %v6391_v15  ;;  %v3808_v32 = vrot.slane %v3776_v51, 1 }
 0xbf9   : > { %v3778_v18 = vadd.f32 %v3762_v57, %v6412_v13  ;;  %v3740_v55 = vrot.slane %v6500_v17, 3  ;;  %v3812_v27 = vrot.slane %v3779_v60, 6  ;;  %v3814_v49 = vrot.slane %v3780_v21, 5 }
 0xbfa   : > { %v3816_v33 = vrot.slane %v3781_v37, 4  ;;  %v3809_v62 = vsel %vm779_vm2, %v3777_v63, %v3808_v32  ;;  %v3818_v2 = vrot.slane %v3782_v5, 3  ;;  %v3820_v57 = vrot.slane %v3783_v12, 2 }
 0xbfb   : > { %v3810_v40 = vrot.slane %v3778_v18, 7  ;;  %v3741_v44 = vrot.slane %v6500_v17, 4  ;;  %v3742_v52 = vrot.slane %v6500_v17, 5  ;;  %v3743_v14 = vrot.slane %v6500_v17, 6 }
 0xbfc   : > { %v7057_v50 = vrot.slane %v6500_v17, 1  ;;  %v7058_v60 = vrot.slane %v6500_v17, 2  ;;  %v3772_v21 = vadd.f32 %v6462_v31, %v3740_v55  ;;  %v3785_v17 = vadd.f32 %v6337_v6, %v6526_v7 }
 0xbfd   : > { %v3811_v25 = vsel %vm781_vm3, %v3810_v40, %v3809_v62  ;;  %v3773_v37 = vadd.f32 %v6469_v53, %v3741_v44  ;;  %v3774_v12 = vadd.f32 %v6475_v30, %v3742_v52  ;;  %v3775_v32 = vadd.f32 %v6479_v47, %v3743_v14 }
 0xbfe   : > { %v3770_v51 = vadd.f32 %v6454_v38, %v7057_v50  ;;  %v3813_v18 = vsel %vm783_vm4, %v3812_v27, %v3811_v25  ;;  %v3771_v63 = vadd.f32 %v6458_v46, %v7058_v60  ;;  %v3784_v40 = vadd.f32 %v6522_v36, %v6388_v54 }
 0xbff   : > { %v3815_v5 = vsel %vm785_vm5, %v3814_v49, %v3813_v18  ;;  %v3788_v27 = vadd.f32 %v3772_v21, %v6403_v58  ;;  %v3789_v49 = vadd.f32 %v3773_v37, %v6406_v41  ;;  %v3790_v62 = vadd.f32 %v3774_v12, %v6409_v48 }
 0xc00   : > { %v3817_v38 = vsel %vm787_vm6, %v3816_v33, %v3815_v5  ;;  %v3786_v46 = vadd.f32 %v3770_v51, %v6397_v34  ;;  %v3787_v31 = vadd.f32 %v3771_v63, %v6400_v16  ;;  %v3791_v36 = vadd.f32 %v3775_v32, %v6385_v26 }
 0xc01   : > { %v3819_v55 = vsel %vm789_vm7, %v3818_v2, %v3817_v38  ;;  %v3822_v33 = vrot.slane %v3784_v40, 1  ;;  %v3828_v7 = vrot.slane %v3788_v27, 5  ;;  %v3830_v52 = vrot.slane %v3789_v49, 4 }
 0xc02   : > { %v3821_v44 = vsel %vm791_vm8, %v3820_v57, %v3819_v55  ;;  %v3824_v25 = vrot.slane %v3786_v46, 7  ;;  %v3826_v6 = vrot.slane %v3787_v31, 6  ;;  %v3832_v14 = vrot.slane %v3790_v62, 3 }
 0xc03   : > { %3836 = vrot.lane.b32.xlu0 %v3821_v44, %s5510_s23  ;;  %v3823_v2 = vsel %vm779_vm2, %v3785_v17, %v3822_v33  ;;  %v3834_v50 = vrot.slane %v3791_v36, 2  ;;  %v3864_v51 = vrot.slane %v6472_v42, 5  ;;  %v7059_v18 = vrot.slane %v6472_v42, 3  ;;  %v7064_v44 = vld [vmem:[#allocation16_spill] sm:$0xff] }
 0xc04   : > { %v3825_v57 = vsel %vm781_vm3, %v3824_v25, %v3823_v2  ;;  %v7060_v63 = vrot.slane %v6472_v42, 4  ;;  %v3908_v37 = vadd.f32 %v6504_v11, %v6397_v34  ;;  %v3909_v5 = vadd.f32 %v6507_v19, %v6400_v16  ;;  %v7063_v34 = vld [vmem:[#allocation15_spill] sm:$0xff] }
 0xc05   : > { %v3894_v60 = vadd.f32 %v6469_v53, %v7059_v18  ;;  %v3827_v12 = vsel %vm783_vm4, %v3826_v6, %v3825_v57  ;;  %v3896_v32 = vadd.f32 %v6479_v47, %v3864_v51  ;;  %v7061_v38 = vrot.slane %v6512_v23, 2  ;;  %v4088_v57 = vld [vmem:[%s6975_s14 + $0x8] sm:$0xff] }
 0xc06   : > { %v3895_v21 = vadd.f32 %v6475_v30, %v7060_v63  ;;  %v7062_v17 = vrot.slane %v6515_v39, 1  ;;  %v3829_v46 = vsel %vm785_vm5, %v3828_v7, %v3827_v12  ;;  %v3947_v16 = vrot.slane %v3908_v37, 7  ;;  %v7069_v12 = vld [vmem:[#allocation20_spill] sm:$0xff] }
 0xc07   : > { %v3910_v40 = vadd.f32 %v3894_v60, %v6403_v58  ;;  %v3831_v19 = vsel %vm787_vm6, %v3830_v52, %v3829_v46  ;;  %v3912_v55 = vadd.f32 %v3896_v32, %v6409_v48  ;;  %v3949_v27 = vrot.slane %v3909_v5, 6  ;;  %v7067_v60 = vld [vmem:[#allocation17_spill] sm:$0xff] }
 0xc08   : > { %v3945_v42 = vsel %vm779_vm2, %v7062_v17, %v7061_v38  ;;  %v3911_v31 = vadd.f32 %v3895_v21, %v6406_v41  ;;  %v3833_v23 = vsel %vm789_vm7, %v3832_v14, %v3831_v19  ;;  %v3857_v36 = vrot.slane %v7064_v44, 5  ;;  %v7068_v21 = vld [vmem:[#allocation18_spill] sm:$0xff] }
 0xc09   : > { %v3946_v11 = vsel %vm781_vm3, %v7063_v34, %v3945_v42  ;;  %v3951_v49 = vrot.slane %v3910_v40, 5  ;;  %v3835_v33 = vsel %vm791_vm8, %v3834_v50, %v3833_v23  ;;  %v3955_v6 = vrot.slane %v3912_v55, 3  ;;  %v7071_v40 = vld [vmem:[#allocation21_spill] sm:$0xff]  ;;  %v7073_v34 = vld [vmem:[#allocation19_spill] sm:$0xff] }
 0xc0a   : > { %v3948_v39 = vsel %vm783_vm4, %v3947_v16, %v3946_v11  ;;  %v3953_v62 = vrot.slane %v3911_v31, 4  ;;  %v7065_v7 = vrot.slane %v7064_v44, 3  ;;  %3838 = vrot.lane.b32.xlu1 %v3835_v33, %s5510_s23  ;;  %v7066_v14 = vrot.slane %v7064_v44, 4  ;;  %s6920_s23 = scalar_lea.sflag [#allocation5], %s554_s30 }
 0xc0b   : > { %v3950_v25 = vsel %vm785_vm5, %v3949_v27, %v3948_v39  ;;  %v3888_v18 = vadd.f32 %v6627_v61, %v3857_v36  ;;  %v3900_v50 = vadd.f32 %v7067_v60, %v6412_v13  ;;  %v3901_v37 = vadd.f32 %v7068_v21, %v6415_v43  ;;  %v7074_v27 = vld [vmem:[#allocation22_spill] sm:$0xff] }
 0xc0c   : > { %v3886_v52 = vadd.f32 %v6617_v10, %v7065_v7  ;;  %v3952_v2 = vsel %vm787_vm6, %v3951_v49, %v3950_v25  ;;  %v3887_v51 = vadd.f32 %v6623_v9, %v7066_v14  ;;  %v7070_v32 = vrot.slane %v7069_v12, 2  ;;  %v4194_v25 = vld [vmem:[%s6977_s16] sm:$0xff]  ;;  %v7078_v14 = vld [vmem:[#allocation24_spill] sm:$0xff] }
 0xc0d   : > { %v3954_v63 = vsel %vm789_vm7, %v3953_v62, %v3952_v2  ;;  %v7072_v38 = vrot.slane %v7071_v40, 1  ;;  %v3904_v31 = vadd.f32 %v3888_v18, %v6424_v8  ;;  %v3933_v16 = vrot.slane %v3900_v50, 7  ;;  %v7079_v18 = vld [vmem:[#allocation25_spill] sm:$0xff] }
 0xc0e   : > { %v3902_v5 = vadd.f32 %v3886_v52, %v6418_v0  ;;  %v3956_v42 = vsel %vm791_vm8, %v3955_v6, %v3954_v63  ;;  %v3903_v46 = vadd.f32 %v3887_v51, %v6421_v56  ;;  %v3935_v19 = vrot.slane %v3901_v37, 6  ;;  %4096 = vperm.xlu1 %5350, %v4088_v57   ;;  %v7077_v52 = vld [vmem:[#allocation23_spill] sm:$0xff] }
 0xc0f   : > { %v3931_v17 = vsel %vm779_vm2, %v7072_v38, %v7070_v32  ;;  %3960 = vst.msk [vmem:[#allocation2 + $0x18] sm:$0xff] %vm930_vm9, %v3956_v42  ;;  %v3588_v49 = vrot.slane %v7074_v27, 7  ;;  %v3941_v39 = vrot.slane %v3904_v31, 3  ;;  %v7075_v62 = vrot.slane %v7074_v27, 5 }
 0xc10   : > { %v3932_v11 = vsel %vm781_vm3, %v7073_v34, %v3931_v17  ;;  %v3937_v55 = vrot.slane %v3902_v5, 5  ;;  %v3939_v23 = vrot.slane %v3903_v46, 4  ;;  %v7076_v36 = vrot.slane %v7074_v27, 6  ;;  %v4197_v27 = vld [vmem:[%s6977_s16 + $0x18] sm:$0xff] }
 0xc11   : > { %v3617_v44 = vadd.f32 %v6617_v10, %v7075_v62  ;;  %v3934_v6 = vsel %vm783_vm4, %v3933_v16, %v3932_v11  ;;  %v3619_v7 = vadd.f32 %v6627_v61, %v3588_v49  ;;  %v3661_v2 = vadd.f32 %v6412_v13, %v7077_v52  ;;  %v4087_v16 = vld [vmem:[%s6975_s14] sm:$0xff] }
 0xc12   : > { %v3618_v33 = vadd.f32 %v6623_v9, %v7076_v36  ;;  %v3662_v51 = vadd.f32 %v6415_v43, %v7078_v14  ;;  %v3936_v10 = vsel %vm785_vm5, %v3935_v19, %v3934_v6  ;;  %v3663_v60 = vadd.f32 %v6418_v0, %v7079_v18  ;;  %v7080_v9 = vld [vmem:[#allocation26_spill] sm:$0xff]  ;;  %4200 = vperm.xlu1 %5350, %v4194_v25   ;;  %v4196_v0 = vld [vmem:[%s6977_s16 + $0x10] sm:$0xff] }
 0xc13   : > { %v3664_v50 = vadd.f32 %v6421_v56, %v7080_v9  ;;  %v3665_v57 = vadd.f32 %v6424_v8, %v3617_v44  ;;  %v3938_v63 = vsel %vm787_vm6, %v3937_v55, %v3936_v10  ;;  %v3667_v21 = vadd.f32 %v6394_v28, %v3619_v7  ;;  %v7081_v8 = vld [vmem:[#allocation27_spill] sm:$0xff]  ;;  %4091 = vperm.xlu0 %5351, %v4087_v16  }
 0xc14   : > { %v3666_v61 = vadd.f32 %v6391_v15, %v3618_v33  ;;  %v3692_v13 = vrot.slane %v3661_v2, 7  ;;  %v3940_v43 = vsel %vm789_vm7, %v3939_v23, %v3938_v63  ;;  %v3694_v37 = vrot.slane %v3662_v51, 6  ;;  %v4085_v2 = vld [vmem:[%s6974_s13] sm:$0xff]  ;;  %v4086_v51 = vld [vmem:[%s6974_s13 + $0x8] sm:$0xff] }
 0xc15   : > { %v3696_v5 = vrot.slane %v3663_v60, 5  ;;  %v3698_v12 = vrot.slane %v3664_v50, 4  ;;  %v3942_v56 = vsel %vm791_vm8, %v3941_v39, %v3940_v43  ;;  %v3700_v40 = vrot.slane %v3665_v57, 3 }
 0xc16   : > { %v3693_v32 = vsel %vm779_vm2, %v3692_v13, %v7081_v8  ;;  %v3702_v15 = vrot.slane %v3666_v61, 2  ;;  %3959 = vst.msk [vmem:[#allocation2 + $0x8] sm:$0xff] %vm930_vm9, %v3942_v56  ;;  %v3704_v38 = vrot.slane %v3667_v21, 1  ;;  %v3595_v17 = vrot.slane %v6633_v1, 7  ;;  %4210 = vperm.xlu1 %5350, %v4196_v0  }
 0xc17   : > { %v3695_v28 = vsel %vm781_vm3, %v3694_v37, %v3693_v32  ;;  %v3625_v42 = vadd.f32 %v6469_v53, %v3593_v35  ;;  %v3626_v31 = vadd.f32 %v6475_v30, %v3594_v29  ;;  %v3671_v34 = vadd.f32 %v6403_v58, %v6655_v20 }
 0xc18   : > { %v3697_v46 = vsel %vm783_vm4, %v3696_v5, %v3695_v28  ;;  %v3672_v11 = vadd.f32 %v6406_v41, %v6658_v59  ;;  %v3627_v53 = vadd.f32 %v6479_v47, %v3595_v17  ;;  %v3707_v30 = vsel %vm779_vm2, %v3706_v45, %v6663_v24  ;;  %v4195_v59 = vld [vmem:[%s6977_s16 + $0x8] sm:$0xff]  ;;  %v4190_v28 = vld [vmem:[%s6976_s15] sm:$0xff]  ;;  %v4192_v17 = vld [vmem:[%s6976_s15 + $0x10] sm:$0xff] }
 0xc19   : > { %v3699_v19 = vsel %vm785_vm5, %v3698_v12, %v3697_v46  ;;  %v3673_v35 = vadd.f32 %v6409_v48, %v3625_v42  ;;  %v3674_v41 = vadd.f32 %v6385_v26, %v3626_v31  ;;  %v3709_v1 = vsel %vm781_vm3, %v3708_v3, %v3707_v30  ;;  %4205 = vperm.xlu0 %5351, %v4195_v59   ;;  %v4193_v42 = vld [vmem:[%s6976_s15 + $0x18] sm:$0xff] }
 0xc1a   : > { %v3701_v58 = vsel %vm787_vm6, %v3700_v40, %v3699_v19  ;;  %v3710_v29 = vrot.slane %v3671_v34, 5  ;;  %v3675_v47 = vadd.f32 %v6388_v54, %v3627_v53  ;;  %v3712_v48 = vrot.slane %v3672_v11, 4 }
 0xc1b   : > { %v3703_v20 = vsel %vm789_vm7, %v3702_v15, %v3701_v58  ;;  %v3714_v26 = vrot.slane %v3673_v35, 3  ;;  %v3716_v45 = vrot.slane %v3674_v41, 2  ;;  %vm3842_vm2 = vcmask 1048064  }
 0xc1c   : > { %v3705_v24 = vsel %vm791_vm8, %v3704_v38, %v3703_v20  ;;  %v3711_v4 = vsel %vm783_vm4, %v3710_v29, %v3709_v1  ;;  %v3718_v55 = vrot.slane %v3675_v47, 1  ;;  %v7082_v14 = vmov 0.0   ;;  %v4191_v38 = vld [vmem:[%s6976_s15 + $0x8] sm:$0xff] }
 0xc1d   : > { %3722 = vst.msk [vmem:[#allocation2] sm:$0xff] %vm930_vm9, %v3705_v24  ;;  %v3713_v22 = vsel %vm785_vm5, %v3712_v48, %v3711_v4  ;;  %4215 = vperm.xlu0 %5351, %v4197_v27  }
 0xc1e   : > { %v3715_v3 = vsel %vm787_vm6, %v3714_v26, %v3713_v22 }
 0xc1f   : > { %v3717_v54 = vsel %vm789_vm7, %v3716_v45, %v3715_v3 }
 0xc20   : > { %v3719_v49 = vsel %vm791_vm8, %v3718_v55, %v3717_v54 }
 0xc21   : > { %3723 = vst.msk [vmem:[#allocation2 + $0x10] sm:$0xff] %vm930_vm9, %v3719_v49 }
 0xc59   : > { %v4076_v23 = vpop.permute.xlu1 %4075 }
 0xc5a   : > { %4080 = vst.msk [vmem:[#allocation2 + $0x18] sm:$0xff] %vm3842_vm2, %v4076_v23 }
 0xc61   : > { %v4084_v44 = vld [vmem:[#allocation2 + $0x18] sm:$0xff] }
 0xc68   : > { %v4074_v39 = vpop.permute.xlu0 %4073 }
 0xc69   : > { %4079 = vst.msk [vmem:[#allocation2 + $0x8] sm:$0xff] %vm3842_vm2, %v4074_v39 }
 0xc70   : > { %v4082_v62 = vld [vmem:[#allocation2 + $0x8] sm:$0xff] }
 0xc71   : > { %v5190_v36 = vpack.c.bf16 %v4084_v44, %v4082_v62 }
 0xc73   : > { %5191 = vmatprep.subr.bf16.mxu0 %v5190_v36 }
 0xc75   : > { %v3837_v33 = vpop.permute.xlu0 %3836 }
 0xc76   : > { %3843 = vst.msk [vmem:[#allocation2] sm:$0xff] %vm3842_vm2, %v3837_v33 }
 0xc7c   : > { %v3839_v25 = vpop.permute.xlu1 %3838 }
 0xc7d   : > { %3844 = vst.msk [vmem:[#allocation2 + $0x10] sm:$0xff] %vm3842_vm2, %v3839_v25  ;;  %v4081_v6 = vld [vmem:[#allocation2] sm:$0xff] }
 0xc84   : > { %v4083_v7 = vld [vmem:[#allocation2 + $0x10] sm:$0xff] }
 0xc85   : > { %v5192_v52 = vpack.c.bf16 %v4083_v7, %v4081_v6 }
 0xc87   : > { %5193 = vmatpush1.bf16.msra.mxu0 %v5192_v52 }
 0xc8a   : > { %4522 = vmatmul.mubr.msk.f32.vlgmr.msra.gmra.mrb[46].mxu0 %vm802_vm1, %v4085_v2 }
 0xc8b   : > { %4175 = vmatprep.mubr.f32.mxu0 %v7082_v14 }
 0xc8d   : > { %v4097_v57 = vpop.permute.xlu1 %4096 }
 0xc8e   : > { %4523 = vmatmul.mubr.msk.f32.gmra.mrb[48].mxu0 %vm802_vm1, %v4086_v51 }
 0xc91   : > { %v4201_v46 = vpop.permute.xlu1 %4200 }
 0xc92   : > { %v4092_v10 = vpop.permute.xlu0 %4091 }
 0xc95   : > { %v4211_v48 = vpop.permute.xlu1 %4210 }
 0xc98   : > { %v4206_v53 = vpop.permute.xlu0 %4205 }
 0xc9c   : > { %v4216_v54 = vpop.permute.xlu0 %4215 }
 0xd5d   : > { %v4171_v18 = vpop.f32.mrb[46].mxu0 }
 0xd5e   : > { %v4172_v60 = vadd.f32 %v4171_v18, %v4092_v10  ;;  %v4173_v9 = vpop.f32.mrb[47].mxu0 }
 0xd5f   : > { %v4174_v50 = vadd.f32 %v4173_v9, %v4092_v10 }
 0xd60   : > { %v4182_v61 = vmul.f32 0.01, %v4172_v60 }
 0xd61   : > { %v4177_v63 = vpop.f32.mrb[48].mxu0  ;;  %v4183_v43 = vmul.f32 0.01, %v4174_v50 }
 0xd62   : > { %v4178_v21 = vadd.f32 %v4177_v63, %v4097_v57  ;;  %v4179_v13 = vpop.f32.mrb[49].mxu0  ;;  %v4186_v0 = vmax.f32 %v4172_v60, %v4182_v61 }
 0xd63   : > { %v4180_v37 = vadd.f32 %v4179_v13, %v4097_v57  ;;  %v4187_v8 = vmax.f32 %v4174_v50, %v4183_v43 }
 0xd64   : > { %v4184_v5 = vmul.f32 0.01, %v4178_v21 }
 0xd65   : > { %v4185_v12 = vmul.f32 0.01, %v4180_v37 }
 0xd66   : > { %v4188_v56 = vmax.f32 %v4178_v21, %v4184_v5 }
 0xd67   : > { %v4189_v32 = vmax.f32 %v4180_v37, %v4185_v12 }
 0xd68   : > { %v5196_v40 = vpack.c.bf16 %v4188_v56, %v4186_v0 }
 0xd69   : > { %v5194_v15 = vpack.c.bf16 %v4189_v32, %v4187_v8 }
 0xd6b   : > { %5195 = vmatprep.subr.bf16.mxu1 %v5194_v15 }
 0xd6c   : > { %5197 = vmatpush1.bf16.msra.mxu1 %v5196_v40 }
 0xd6f   : > { %4524 = vmatmul.mubr.msk.f32.vlgmr.msra.gmra.mrb[36].mxu1 %vm802_vm1, %v4190_v28 }
 0xd70   : > { %4300 = vmatprep.mubr.f32.mxu1 %v7082_v14 }
 0xd73   : > { %4525 = vmatmul.mubr.msk.f32.gmra.mrb[38].mxu1 %vm802_vm1, %v4191_v38 }
 0xd74   : > { %4306 = vmatprep.mubr.f32.mxu1 %v7082_v14 }
 0xd77   : > { %4526 = vmatmul.mubr.msk.f32.gmra.mrb[40].mxu1 %vm802_vm1, %v4192_v17 }
 0xd78   : > { %4312 = vmatprep.mubr.f32.mxu1 %v7082_v14 }
 0xd7b   : > { %4527 = vmatmul.mubr.msk.f32.gmra.mrb[42].mxu1 %vm802_vm1, %v4193_v42 }
 0xe42   : > { %v4296_v31 = vpop.f32.mrb[36].mxu1 }
 0xe43   : > { %v4297_v34 = vadd.f32 %v4296_v31, %v4201_v46  ;;  %v4298_v11 = vpop.f32.mrb[37].mxu1 }
 0xe44   : > { %v4299_v16 = vadd.f32 %v4298_v11, %v4201_v46 }
 0xe45   : > { %v4319_v19 = vmul.f32 0.01, %v4297_v34 }
 0xe46   : > { %v4320_v35 = vmul.f32 0.01, %v4299_v16  ;;  %v4302_v30 = vpop.f32.mrb[38].mxu1 }
 0xe47   : > { %v4327_v58 = vmax.f32 %v4297_v34, %v4319_v19  ;;  %v4303_v41 = vadd.f32 %v4302_v30, %v4206_v53  ;;  %v4304_v1 = vpop.f32.mrb[39].mxu1 }
 0xe48   : > { %v4328_v29 = vmax.f32 %v4299_v16, %v4320_v35  ;;  %v4305_v20 = vadd.f32 %v4304_v1, %v4206_v53 }
 0xe49   : > { %4335 = vst [vmem:[%s6899_s24] sm:$0xff] %v4327_v58  ;;  %v4321_v47 = vmul.f32 0.01, %v4303_v41 }
 0xe4a   : > { %4336 = vst [vmem:[%s6899_s24 + $0x8] sm:$0xff] %v4328_v29  ;;  %v4322_v59 = vmul.f32 0.01, %v4305_v20  ;;  %v4308_v24 = vpop.f32.mrb[40].mxu1 }
 0xe4b   : > { %v4329_v4 = vmax.f32 %v4303_v41, %v4321_v47  ;;  %v4309_v26 = vadd.f32 %v4308_v24, %v4211_v48  ;;  %v4310_v22 = vpop.f32.mrb[41].mxu1 }
 0xe4c   : > { %v4330_v45 = vmax.f32 %v4305_v20, %v4322_v59  ;;  %v4311_v3 = vadd.f32 %v4310_v22, %v4211_v48 }
 0xe4d   : > { %4337 = vst [vmem:[%s6899_s24 + $0x10] sm:$0xff] %v4329_v4  ;;  %v4323_v55 = vmul.f32 0.01, %v4309_v26 }
 0xe4e   : > { %4338 = vst [vmem:[%s6899_s24 + $0x18] sm:$0xff] %v4330_v45  ;;  %v4324_v27 = vmul.f32 0.01, %v4311_v3  ;;  %v4314_v49 = vpop.f32.mrb[42].mxu1 }
 0xe4f   : > { %v4331_v23 = vmax.f32 %v4309_v26, %v4323_v55  ;;  %v4315_v39 = vadd.f32 %v4314_v49, %v4216_v54  ;;  %v4316_v62 = vpop.f32.mrb[43].mxu1 }
 0xe50   : > { %v4332_v44 = vmax.f32 %v4311_v3, %v4324_v27  ;;  %v4317_v36 = vadd.f32 %v4316_v62, %v4216_v54 }
 0xe51   : > { %4339 = vst [vmem:[%s6899_s24 + $0x20] sm:$0xff] %v4331_v23  ;;  %v4325_v33 = vmul.f32 0.01, %v4315_v39 }
 0xe52   : > { %4340 = vst [vmem:[%s6899_s24 + $0x28] sm:$0xff] %v4332_v44  ;;  %v4326_v25 = vmul.f32 0.01, %v4317_v36 }
 0xe53   : > { %v4333_v6 = vmax.f32 %v4315_v39, %v4325_v33 }
 0xe54   : > { %v4334_v7 = vmax.f32 %v4317_v36, %v4326_v25 }
 0xe55   : > { %4341 = vst [vmem:[%s6899_s24 + $0x30] sm:$0xff] %v4333_v6 }
 0xe56   : > { %4342 = vst [vmem:[%s6899_s24 + $0x38] sm:$0xff] %v4334_v7 }
 0xe57   : > { %5441 = shalt.err (!%p5438_p7)
}
 0xe58   : > { %s5442_s30 = scalar_lea.hbm %s6914_s21, 1024  ;;  %s5446_s29 = scalar_lea.hbm %s6978_s17, 2048 }
 0xe59   : > { %p5443_p8 = scmp.ne.s32.totalorder %s6914_s21, %s5442_s30  ;;  %p5447_p1 = scmp.lt.u32.totalorder %s6914_s21, %s6978_s17 }
 0xe5a   : > { %p5448_p0 = scmp.lt.u32.totalorder %s5446_s29, %s5442_s30  ;;  %p5450_p6 = scmp.lt.u32.totalorder %s5442_s30, %s6914_s21 }
 0xe5b   : > { %p5444_p11 = pnand %p5443_p8, %p7083_p9 }
 0xe5c   : > { %p5449_p5 = por %p5448_p0, %p5447_p1 }
 0xe5d   : > { %p5445_p13 = pneg %p5444_p11 }
 0xe5e   : > { %p5451_p10 = por %p5450_p6, %p5449_p5 }
 0xe60   : > { %p5452_p12 = pnand %p5451_p10, %p5445_p13 }
 0xe62   : > { %5455 = shalt.err (!%p5452_p12)
}
 0xe63   : > { %s5512_s28 = smov 256   ;;  %s5513_s26 = smov 16  }
 0xe64   : > { %5202 = dma.vmem_to_hbm [thread:$0]  (%p7083_p9), %s6909_s19, 1024, %s6914_s21, %s6920_s23, %s5512_s28, %s5512_s28, %s5513_s26  }
 0xe65 PF: > { %s7084_s18 = sld [smem:[#allocation11_spill]]  ;;  %s7085_s24 = sld [smem:[#allocation9_spill]] }
 0xe66   : > { %s7086_s20 = sld [smem:[#allocation14_spill]] }
 0xe6b   : > { %p5214_p2 = scmp.ge.s32.totalorder %s7084_s18, 2  ;;  %s4372_s22 = sand.u32 1, %s7085_s24  }
 0xe6c   : > { %p7087_p3 = scmp.ne.s32.totalorder %s7086_s20, 0  ;;  %s4373_s30 = scalar_lea.sflag [#allocation5], %s4372_s22 }
 0xe6e   : > { %p5209_p4 = pnand %p5214_p2, %p7087_p3 }
 0xe70   : > { %5477 = dma.done.wait (!%p5209_p4), %s4373_s30, 1024  }
 0xe71   : > { %5479 = vsyncadd (!%p5209_p4), %s4373_s30, 4294966272  ;;  %s7088_s27 = sld [smem:[#allocation12_spill]]  ;;  %s7089_s29 = sld [smem:[#allocation10_spill]] }
 0xe72   : > { %s7090_s26 = sld [smem:[#allocation13_spill]]  ;;  %s7091_s24 = smov %s5486_s25 }
 0xe77   : > { %p28_p7 = scmp.ge.s32.totalorder %s7088_s27, 4   ;;  %s7092_s25 = smov %s7089_s29 }
 0xe79   :  { %30 = sbr.rel (!%p28_p7) target bundleno = 7 (0x7), region = 136 }
 0xe80   :  { %4378 = vsyncpa [#allocation4], 1 }
 0xe81   :  { %4380 = vsyncpa [#allocation4 + $0x1], 1 }
 0xe82   :  { %4381 = vsyncpa [#allocation5], 1 }
 0xe83   :  { %4383 = vsyncpa [#allocation5 + $0x1], 1 }

</bundles_post_ra>
